<compile_context>
chip_gen: v6e
topology: v6e:2x2x1
jax: 0.10.0
libtpu: 0.0.40
codegen_flags: <defaults>
</compile_context>

<pallas_src>
import functools
import math

import jax
import jax.numpy as jnp
from jax.experimental import pallas as pl
from jax.experimental.pallas import tpu as pltpu

_VMEM_LIMIT = 32 * 1024 * 1024  # <= scoped default on v6e/v7x, > v5e default


def _pick_tile(n, target, multiple):
    """Largest tile <= target that divides n and is a multiple of `multiple`.

    Falls back to the full dimension (always a legal block shape)."""
    if n <= target:
        return n
    best = None
    t = multiple
    while t <= target:
        if n % t == 0:
            best = t
        t += multiple
    return best if best is not None else n


# ----------------------------- Pallas kernels ------------------------------

def _col_stats_kernel(feat_ref, mean_ref, rstd_ref, *, n_rows):
    """Column mean and 1/(std+eps) over axis 0 (unbiased std, torch default).

    Reduction-gridded over row tiles; mean_ref / rstd_ref are resident
    accumulators (sum and sum-of-squares) finalized on the last tile.
    """
    i = pl.program_id(0)

    @pl.when(i == 0)
    def _():
        mean_ref[...] = jnp.zeros_like(mean_ref)
        rstd_ref[...] = jnp.zeros_like(rstd_ref)

    x = feat_ref[...].astype(jnp.float32)
    mean_ref[...] += jnp.sum(x, axis=0, keepdims=True)
    rstd_ref[...] += jnp.sum(x * x, axis=0, keepdims=True)

    @pl.when(i == pl.num_programs(0) - 1)
    def _():
        m = mean_ref[...] * (1.0 / float(n_rows))
        # unbiased variance; max(n-1, 1) guards the degenerate 1-row case
        var = (rstd_ref[...] - float(n_rows) * m * m) / float(max(n_rows - 1, 1))
        var = jnp.maximum(var, 0.0)
        mean_ref[...] = m
        rstd_ref[...] = 1.0 / (jnp.sqrt(var) + 1e-8)


def _encode_kernel(prev_ref, mean_ref, rstd_ref, feat_ref, w_ref, b_ref,
                   emb_ref, out_ref):
    """Per-row-tile: standardize features, project, add id-embedding, LN."""
    del prev_ref  # aliased combined buffer; only here so other row blocks of
    #               the output survive (input_output_aliases on the wrapper).
    x = feat_ref[...].astype(jnp.float32)
    xn = (x - mean_ref[...]) * rstd_ref[...]
    h = (emb_ref[...].astype(jnp.float32) + b_ref[...]
         + jnp.dot(xn, w_ref[...], preferred_element_type=jnp.float32))
    # layer norm over the embedding dim: no affine, eps=1e-5, biased variance
    mu = jnp.mean(h, axis=-1, keepdims=True)
    var = jnp.mean((h - mu) ** 2, axis=-1, keepdims=True)
    out_ref[...] = (h - mu) * jax.lax.rsqrt(var + 1e-5)


def _prop_layer_kernel(adj_ref, e_ref, acc_ref, e_out_ref, acc_out_ref, mm_sc,
                       *, out_scale):
    """One LightGCN layer: new_e = adj @ e ; new_acc = (acc + new_e)*scale."""
    k = pl.program_id(1)

    @pl.when(k == 0)
    def _():
        mm_sc[...] = jnp.zeros_like(mm_sc)

    # adj streamed as bf16 (halves the N^2 HBM traffic), accumulate in f32.
    mm_sc[...] += jnp.dot(adj_ref[...].astype(jnp.float32), e_ref[...],
                          preferred_element_type=jnp.float32)

    @pl.when(k == pl.num_programs(1) - 1)
    def _():
        new_e = mm_sc[...]
        e_out_ref[...] = new_e
        acc_out_ref[...] = (acc_ref[...] + new_e) * out_scale


# ------------------------------ JAX wrappers --------------------------------

def encode_into(combined, feat, w_t, b, emb, row_offset, *, tm=None):
    """Encode one entity type and write rows [row_offset, row_offset+n) of the
    shared (n_total, D) buffer in place (via input_output_aliases)."""
    n_rows, f = feat.shape
    n_total, d = combined.shape
    assert emb.shape == (n_rows, d)
    assert n_rows % 8 == 0 and row_offset % 8 == 0, (
        "row counts / offsets must be multiples of 8 (pad the dataset)")
    if tm is None:
        tm = _pick_tile(n_rows, 128, 8)
    assert n_rows % tm == 0 and row_offset % tm == 0 and tm % 8 == 0
    row_block_off = row_offset // tm
    grid = (n_rows // tm,)

    # pass 1: column stats (reduction over the row-tile grid axis)
    mean, rstd = pl.pallas_call(
        functools.partial(_col_stats_kernel, n_rows=n_rows),
        grid=grid,
        in_specs=[pl.BlockSpec((tm, f), lambda i: (i, 0))],
        out_specs=(pl.BlockSpec((1, f), lambda i: (0, 0)),
                   pl.BlockSpec((1, f), lambda i: (0, 0))),
        out_shape=(jax.ShapeDtypeStruct((1, f), jnp.float32),
                   jax.ShapeDtypeStruct((1, f), jnp.float32)),
        compiler_params=pltpu.CompilerParams(
            dimension_semantics=("arbitrary",),
            vmem_limit_bytes=_VMEM_LIMIT),
    )(feat)

    # pass 2: per-row-tile normalize + project + layernorm, written at a row
    # offset into the shared combined buffer (aliased in/out).
    out_map = lambda i: (i + row_block_off, 0)
    combined = pl.pallas_call(
        _encode_kernel,
        grid=grid,
        in_specs=[
            pl.BlockSpec((tm, d), out_map),           # prev combined (aliased)
            pl.BlockSpec((1, f), lambda i: (0, 0)),   # column mean
            pl.BlockSpec((1, f), lambda i: (0, 0)),   # 1/(std+eps)
            pl.BlockSpec((tm, f), lambda i: (i, 0)),  # raw features
            pl.BlockSpec((f, d), lambda i: (0, 0)),   # W^T
            pl.BlockSpec((1, d), lambda i: (0, 0)),   # bias
            pl.BlockSpec((tm, d), lambda i: (i, 0)),  # id embedding table
        ],
        out_specs=pl.BlockSpec((tm, d), out_map),
        out_shape=jax.ShapeDtypeStruct((n_total, d), jnp.float32),
        input_output_aliases={0: 0},
        compiler_params=pltpu.CompilerParams(
            dimension_semantics=("parallel",),
            vmem_limit_bytes=_VMEM_LIMIT),
        cost_estimate=pl.CostEstimate(
            flops=2 * n_rows * f * d,
            transcendentals=n_rows,
            bytes_accessed=4 * (n_rows * f + f * d + 3 * n_rows * d)),
    )(combined, mean, rstd, feat, w_t, b, emb)
    return combined


def propagate(adj_bf16, e0, n_layers, *, tm=None, tk=None):
    """Mean of [E0, adj@E0, ..., adj^L@E0]; one gridded matmul per layer."""
    n, d = e0.shape
    assert adj_bf16.shape == (n, n)
    if tm is None:
        tm = _pick_tile(n, 512, 8)
    if tk is None:
        tk = _pick_tile(n, 512, 128)
    assert n % tm == 0 and (tm % 8 == 0 or tm == n)
    assert n % tk == 0 and (tk % 128 == 0 or tk == n)
    grid = (n // tm, n // tk)

    def make_call(out_scale):
        return pl.pallas_call(
            functools.partial(_prop_layer_kernel, out_scale=out_scale),
            grid=grid,
            in_specs=[
                pl.BlockSpec((tm, tk), lambda i, k: (i, k)),  # adj tile (bf16)
                pl.BlockSpec((tk, d), lambda i, k: (k, 0)),   # current E tile
                pl.BlockSpec((tm, d), lambda i, k: (i, 0)),   # running sum in
            ],
            out_specs=(pl.BlockSpec((tm, d), lambda i, k: (i, 0)),   # new E
                       pl.BlockSpec((tm, d), lambda i, k: (i, 0))),  # new sum
            out_shape=(jax.ShapeDtypeStruct((n, d), jnp.float32),
                       jax.ShapeDtypeStruct((n, d), jnp.float32)),
            scratch_shapes=[pltpu.VMEM((tm, d), jnp.float32)],
            compiler_params=pltpu.CompilerParams(
                dimension_semantics=("parallel", "arbitrary"),
                vmem_limit_bytes=_VMEM_LIMIT),
            cost_estimate=pl.CostEstimate(
                flops=2 * n * n * d,
                transcendentals=0,
                bytes_accessed=n * n * 2 + 4 * n * d * 4),
        )

    step_call = make_call(1.0)
    last_call = make_call(1.0 / float(n_layers + 1))

    e, acc = e0, e0
    for layer in range(n_layers):
        call = last_call if layer == n_layers - 1 else step_call
        e, acc = call(adj_bf16, e, acc)
    return acc  # already scaled by 1/(n_layers+1) in the final layer call


@functools.partial(jax.jit,
                   static_argnames=("n_layers", "prop_tm", "prop_tk", "enc_tm"))
def lightgcn_forward(params, adj, user_features, item_features, n_layers,
                     prop_tm=None, prop_tk=None, enc_tm=None):
    """Full LightGCN forward pass. Returns (user_final, item_final)."""
    num_users, d = params["user_emb"].shape
    num_items = params["item_emb"].shape[0]
    n_total = num_users + num_items
    assert adj.shape == (n_total, n_total)
    assert num_users % 8 == 0 and num_items % 8 == 0, (
        "row counts must be multiples of 8 (pad the dataset)")

    if enc_tm is None:
        enc_tm = _pick_tile(math.gcd(num_users, num_items), 128, 8)

    # one shared (n_total, D) buffer; both encode calls write their row range
    # in place -> no wrapper concatenate / extra HBM round trip.
    combined = jnp.zeros((n_total, d), jnp.float32)
    combined = encode_into(combined, user_features, params["user_fc_w_t"],
                           params["user_fc_b"], params["user_emb"],
                           row_offset=0, tm=enc_tm)
    combined = encode_into(combined, item_features, params["item_fc_w_t"],
                           params["item_fc_b"], params["item_emb"],
                           row_offset=num_users, tm=enc_tm)

    # adj is the N^2 bandwidth hog and is re-read every layer -> stream bf16.
    adj_bf16 = adj.astype(jnp.bfloat16)
    final = propagate(adj_bf16, combined, n_layers, tm=prop_tm, tk=prop_tk)
    return final[:num_users], final[num_users:]


# ------------------------- deterministic param init -------------------------

def init_params(key, num_users, num_items, embedding_dim,
                user_feat_dim, item_feat_dim):
    ks = jax.random.split(key, 6)
    a_emb = math.sqrt(6.0 / (1 + embedding_dim))
    a_u = math.sqrt(6.0 / (user_feat_dim + embedding_dim))   # xavier uniform
    a_i = math.sqrt(6.0 / (item_feat_dim + embedding_dim))
    b_u = 1.0 / math.sqrt(user_feat_dim)                     # nn.Linear bias
    b_i = 1.0 / math.sqrt(item_feat_dim)
    return {
        "user_emb": jax.random.uniform(ks[0], (num_users, embedding_dim),
                                       jnp.float32, -a_emb, a_emb),
        "item_emb": jax.random.uniform(ks[1], (num_items, embedding_dim),
                                       jnp.float32, -a_emb, a_emb),
        # stored pre-transposed ([F, D]) for in-kernel feat @ W^T
        "user_fc_w_t": jax.random.uniform(ks[2], (user_feat_dim, embedding_dim),
                                          jnp.float32, -a_u, a_u),
        "item_fc_w_t": jax.random.uniform(ks[3], (item_feat_dim, embedding_dim),
                                          jnp.float32, -a_i, a_i),
        "user_fc_b": jax.random.uniform(ks[4], (1, embedding_dim),
                                        jnp.float32, -b_u, b_u),
        "item_fc_b": jax.random.uniform(ks[5], (1, embedding_dim),
                                        jnp.float32, -b_i, b_i),
    }


# ------------------------------ pure-JAX ref ---------------------------------

def reference_forward(params, adj, user_features, item_features, n_layers,
                      adj_matmul_dtype=jnp.float32):
    hi = jax.lax.Precision.HIGHEST

    def std_norm(x):
        mean = x.mean(axis=0)
        std = jnp.sqrt(((x - mean) ** 2).sum(axis=0) / (x.shape[0] - 1))
        return (x - mean) / (std + 1e-8)

    def layer_norm(h):
        mu = h.mean(axis=-1, keepdims=True)
        var = ((h - mu) ** 2).mean(axis=-1, keepdims=True)
        return (h - mu) / jnp.sqrt(var + 1e-5)

    uf, itf = std_norm(user_features), std_norm(item_features)
    u = layer_norm(params["user_emb"]
                   + jnp.dot(uf, params["user_fc_w_t"], precision=hi)
                   + params["user_fc_b"])
    it = layer_norm(params["item_emb"]
                    + jnp.dot(itf, params["item_fc_w_t"], precision=hi)
                    + params["item_fc_b"])
    e = jnp.concatenate([u, it], axis=0)
    adj_mm = adj.astype(adj_matmul_dtype).astype(jnp.float32)
    acc = e
    for _ in range(n_layers):
        e = jnp.dot(adj_mm, e, precision=hi)
        acc = acc + e
    final = acc / (n_layers + 1)
    return final[:u.shape[0]], final[u.shape[0]:]


# ----------------------------------- main ------------------------------------

if __name__ == "__main__":
    # row counts multiples of 8 (sublane-aligned), D multiple of 128 (lane-dense)
    num_users, num_items = 128, 384
    embedding_dim = 128
    n_layers = 3
    user_feat_dim, item_feat_dim = 32, 64
    n_total = num_users + num_items

    key = jax.random.PRNGKey(0)
    kp, ka, ku, ki = jax.random.split(key, 4)

    params = init_params(kp, num_users, num_items, embedding_dim,
                         user_feat_dim, item_feat_dim)

    # symmetric, row-normalized dense adjacency (deterministic)
    raw = jax.random.uniform(ka, (n_total, n_total), jnp.float32)
    adj = (raw + raw.T) * 0.5
    adj = adj / adj.sum(axis=1, keepdims=True)

    user_features = jax.random.normal(ku, (num_users, user_feat_dim), jnp.float32)
    item_features = jax.random.normal(ki, (num_items, item_feat_dim), jnp.float32)

    # small explicit tiles so the demo exercises the pipelined M x K grid;
    # production sizes use the auto-picked (<= 512) tiles.
    user_final, item_final = lightgcn_forward(
        params, adj, user_features, item_features, n_layers,
        prop_tm=128, prop_tk=128, enc_tm=64)
    jax.block_until_ready((user_final, item_final))

    assert user_final.shape == (num_users, embedding_dim)
    assert item_final.shape == (num_items, embedding_dim)

    # tight check vs a reference that applies the same bf16 quantization of adj
    ref_u, ref_i = reference_forward(params, adj, user_features, item_features,
                                     n_layers, adj_matmul_dtype=jnp.bfloat16)
    assert jnp.allclose(user_final, ref_u, rtol=5e-4, atol=5e-4), \
        float(jnp.max(jnp.abs(user_final - ref_u)))
    assert jnp.allclose(item_final, ref_i, rtol=5e-4, atol=5e-4), \
        float(jnp.max(jnp.abs(item_final - ref_i)))

    # loose check vs the exact f32 PyTorch semantics (bf16-adj error only)
    f32_u, f32_i = reference_forward(params, adj, user_features, item_features,
                                     n_layers, adj_matmul_dtype=jnp.float32)
    assert jnp.allclose(user_final, f32_u, rtol=1e-2, atol=1e-2)
    assert jnp.allclose(item_final, f32_i, rtol=1e-2, atol=1e-2)

    print("KERNEL_OK")
</pallas_src>

<mosaic_0001>
module attributes {stable_mosaic.version = 11 : i64} {
  func.func @_col_stats_kernel(%arg0: i32, %arg1: memref<64x64xf32, #tpu.memory_space<vmem>>, %arg2: memref<1x64xf32, #tpu.memory_space<vmem>>, %arg3: memref<1x64xf32, #tpu.memory_space<vmem>>) attributes {dimension_semantics = [#tpu.dimension_semantics<arbitrary>], iteration_bounds = array<i64: 6>, scalar_prefetch = 0 : i64, scratch_operands = 0 : i64, tpu.core_type = #tpu.core_type<tc>, window_params = [{transform_indices = @transform_0, window_bounds = array<i64: 64, 64>}, {pipeline_mode = #tpu.pipeline_mode<synchronous>, transform_indices = @transform_1, window_bounds = array<i64: 1, 64>}, {pipeline_mode = #tpu.pipeline_mode<synchronous>, transform_indices = @transform_2, window_bounds = array<i64: 1, 64>}]} {
    %c0_i32 = arith.constant 0 : i32
    %0 = arith.cmpi eq, %arg0, %c0_i32 : i32
    %1 = arith.extui %0 : i1 to i32
    %c0_i32_0 = arith.constant 0 : i32
    %2 = arith.cmpi ne, %1, %c0_i32_0 : i32
    scf.if %2 {
      %cst_12 = arith.constant 0.000000e+00 : f32
      %18 = vector.broadcast %cst_12 : f32 to vector<1x64xf32>
      %c0_13 = arith.constant 0 : index
      %c0_14 = arith.constant 0 : index
      %19 = vector.load %arg2[%c0_13, %c0_14] : memref<1x64xf32, #tpu.memory_space<vmem>>, vector<1x64xf32>
      tpu.vector_store %arg2[%c0_13, %c0_14], %18 {strides = array<i32>} : memref<1x64xf32, #tpu.memory_space<vmem>>, vector<1x64xf32>,
      %cst_15 = arith.constant 0.000000e+00 : f32
      %20 = vector.broadcast %cst_15 : f32 to vector<1x64xf32>
      %c0_16 = arith.constant 0 : index
      %c0_17 = arith.constant 0 : index
      %21 = vector.load %arg3[%c0_16, %c0_17] : memref<1x64xf32, #tpu.memory_space<vmem>>, vector<1x64xf32>
      tpu.vector_store %arg3[%c0_16, %c0_17], %20 {strides = array<i32>} : memref<1x64xf32, #tpu.memory_space<vmem>>, vector<1x64xf32>,
    } else {
    }
    %c0 = arith.constant 0 : index
    %c0_1 = arith.constant 0 : index
    %3 = vector.load %arg1[%c0, %c0_1] : memref<64x64xf32, #tpu.memory_space<vmem>>, vector<64x64xf32>
    %c0_2 = arith.constant 0 : index
    %c0_3 = arith.constant 0 : index
    %4 = vector.load %arg2[%c0_2, %c0_3] : memref<1x64xf32, #tpu.memory_space<vmem>>, vector<1x64xf32>
    %cst = arith.constant dense<0.000000e+00> : vector<64xf32>
    %5 = vector.multi_reduction <add>, %3, %cst [0] : vector<64x64xf32> to vector<64xf32>
    %6 = vector.shape_cast %5 : vector<64xf32> to vector<1x64xf32>
    %7 = arith.addf %4, %6 : vector<1x64xf32>
    %c0_4 = arith.constant 0 : index
    %c0_5 = arith.constant 0 : index
    %8 = vector.load %arg2[%c0_4, %c0_5] : memref<1x64xf32, #tpu.memory_space<vmem>>, vector<1x64xf32>
    tpu.vector_store %arg2[%c0_4, %c0_5], %7 {strides = array<i32>} : memref<1x64xf32, #tpu.memory_space<vmem>>, vector<1x64xf32>,
    %c0_6 = arith.constant 0 : index
    %c0_7 = arith.constant 0 : index
    %9 = vector.load %arg3[%c0_6, %c0_7] : memref<1x64xf32, #tpu.memory_space<vmem>>, vector<1x64xf32>
    %10 = arith.mulf %3, %3 : vector<64x64xf32>
    %cst_8 = arith.constant dense<0.000000e+00> : vector<64xf32>
    %11 = vector.multi_reduction <add>, %10, %cst_8 [0] : vector<64x64xf32> to vector<64xf32>
    %12 = vector.shape_cast %11 : vector<64xf32> to vector<1x64xf32>
    %13 = arith.addf %9, %12 : vector<1x64xf32>
    %c0_9 = arith.constant 0 : index
    %c0_10 = arith.constant 0 : index
    %14 = vector.load %arg3[%c0_9, %c0_10] : memref<1x64xf32, #tpu.memory_space<vmem>>, vector<1x64xf32>
    tpu.vector_store %arg3[%c0_9, %c0_10], %13 {strides = array<i32>} : memref<1x64xf32, #tpu.memory_space<vmem>>, vector<1x64xf32>,
    %c5_i32 = arith.constant 5 : i32
    %15 = arith.cmpi eq, %arg0, %c5_i32 : i32
    %16 = arith.extui %15 : i1 to i32
    %c0_i32_11 = arith.constant 0 : i32
    %17 = arith.cmpi ne, %16, %c0_i32_11 : i32
    scf.if %17 {
      %c0_12 = arith.constant 0 : index
      %c0_13 = arith.constant 0 : index
      %18 = vector.load %arg2[%c0_12, %c0_13] : memref<1x64xf32, #tpu.memory_space<vmem>>, vector<1x64xf32>
      %cst_14 = arith.constant 0.00260416674 : f32
      %19 = vector.broadcast %cst_14 : f32 to vector<1x64xf32>
      %20 = arith.mulf %18, %19 : vector<1x64xf32>
      %c0_15 = arith.constant 0 : index
      %c0_16 = arith.constant 0 : index
      %21 = vector.load %arg3[%c0_15, %c0_16] : memref<1x64xf32, #tpu.memory_space<vmem>>, vector<1x64xf32>
      %cst_17 = arith.constant 3.840000e+02 : f32
      %22 = vector.broadcast %cst_17 : f32 to vector<1x64xf32>
      %23 = arith.mulf %22, %20 : vector<1x64xf32>
      %24 = arith.mulf %23, %20 : vector<1x64xf32>
      %25 = arith.subf %21, %24 : vector<1x64xf32>
      %cst_18 = arith.constant 3.830000e+02 : f32
      %26 = vector.broadcast %cst_18 : f32 to vector<1x64xf32>
      %27 = arith.divf %25, %26 : vector<1x64xf32>
      %cst_19 = arith.constant 0.000000e+00 : f32
      %28 = vector.broadcast %cst_19 : f32 to vector<1x64xf32>
      %29 = arith.maximumf %27, %28 : vector<1x64xf32>
      %c0_20 = arith.constant 0 : index
      %c0_21 = arith.constant 0 : index
      %30 = vector.load %arg2[%c0_20, %c0_21] : memref<1x64xf32, #tpu.memory_space<vmem>>, vector<1x64xf32>
      tpu.vector_store %arg2[%c0_20, %c0_21], %20 {strides = array<i32>} : memref<1x64xf32, #tpu.memory_space<vmem>>, vector<1x64xf32>,
      %31 = math.sqrt %29 : vector<1x64xf32>
      %cst_22 = arith.constant 9.99999993E-9 : f32
      %32 = vector.broadcast %cst_22 : f32 to vector<1x64xf32>
      %33 = arith.addf %31, %32 : vector<1x64xf32>
      %cst_23 = arith.constant 1.000000e+00 : f32
      %34 = vector.broadcast %cst_23 : f32 to vector<1x64xf32>
      %35 = arith.divf %34, %33 : vector<1x64xf32>
      %c0_24 = arith.constant 0 : index
      %c0_25 = arith.constant 0 : index
      %36 = vector.load %arg3[%c0_24, %c0_25] : memref<1x64xf32, #tpu.memory_space<vmem>>, vector<1x64xf32>
      tpu.vector_store %arg3[%c0_24, %c0_25], %35 {strides = array<i32>} : memref<1x64xf32, #tpu.memory_space<vmem>>, vector<1x64xf32>,
    } else {
    }
    return
  }
  func.func @transform_0(%arg0: i32) -> (i32, i32) {
    %c0_i32 = arith.constant 0 : i32
    %c0_i32_0 = arith.constant 0 : i32
    return %arg0, %c0_i32 : i32, i32
  }
  func.func @transform_1(%arg0: i32) -> (i32, i32) {
    %c0_i32 = arith.constant 0 : i32
    %c0_i32_0 = arith.constant 0 : i32
    %c0_i32_1 = arith.constant 0 : i32
    return %c0_i32, %c0_i32_0 : i32, i32
  }
  func.func @transform_2(%arg0: i32) -> (i32, i32) {
    %c0_i32 = arith.constant 0 : i32
    %c0_i32_0 = arith.constant 0 : i32
    %c0_i32_1 = arith.constant 0 : i32
    return %c0_i32, %c0_i32_0 : i32, i32
  }
}

module attributes {stable_mosaic.version = 11 : i64} {
  func.func @_col_stats_kernel(%arg0: i32, %arg1: memref<64x32xf32, #tpu.memory_space<vmem>>, %arg2: memref<1x32xf32, #tpu.memory_space<vmem>>, %arg3: memref<1x32xf32, #tpu.memory_space<vmem>>) attributes {dimension_semantics = [#tpu.dimension_semantics<arbitrary>], iteration_bounds = array<i64: 2>, scalar_prefetch = 0 : i64, scratch_operands = 0 : i64, tpu.core_type = #tpu.core_type<tc>, window_params = [{transform_indices = @transform_0, window_bounds = array<i64: 64, 32>}, {pipeline_mode = #tpu.pipeline_mode<synchronous>, transform_indices = @transform_1, window_bounds = array<i64: 1, 32>}, {pipeline_mode = #tpu.pipeline_mode<synchronous>, transform_indices = @transform_2, window_bounds = array<i64: 1, 32>}]} {
    %c0_i32 = arith.constant 0 : i32
    %0 = arith.cmpi eq, %arg0, %c0_i32 : i32
    %1 = arith.extui %0 : i1 to i32
    %c0_i32_0 = arith.constant 0 : i32
    %2 = arith.cmpi ne, %1, %c0_i32_0 : i32
    scf.if %2 {
      %cst_12 = arith.constant 0.000000e+00 : f32
      %18 = vector.broadcast %cst_12 : f32 to vector<1x32xf32>
      %c0_13 = arith.constant 0 : index
      %c0_14 = arith.constant 0 : index
      %19 = vector.load %arg2[%c0_13, %c0_14] : memref<1x32xf32, #tpu.memory_space<vmem>>, vector<1x32xf32>
      tpu.vector_store %arg2[%c0_13, %c0_14], %18 {strides = array<i32>} : memref<1x32xf32, #tpu.memory_space<vmem>>, vector<1x32xf32>,
      %cst_15 = arith.constant 0.000000e+00 : f32
      %20 = vector.broadcast %cst_15 : f32 to vector<1x32xf32>
      %c0_16 = arith.constant 0 : index
      %c0_17 = arith.constant 0 : index
      %21 = vector.load %arg3[%c0_16, %c0_17] : memref<1x32xf32, #tpu.memory_space<vmem>>, vector<1x32xf32>
      tpu.vector_store %arg3[%c0_16, %c0_17], %20 {strides = array<i32>} : memref<1x32xf32, #tpu.memory_space<vmem>>, vector<1x32xf32>,
    } else {
    }
    %c0 = arith.constant 0 : index
    %c0_1 = arith.constant 0 : index
    %3 = vector.load %arg1[%c0, %c0_1] : memref<64x32xf32, #tpu.memory_space<vmem>>, vector<64x32xf32>
    %c0_2 = arith.constant 0 : index
    %c0_3 = arith.constant 0 : index
    %4 = vector.load %arg2[%c0_2, %c0_3] : memref<1x32xf32, #tpu.memory_space<vmem>>, vector<1x32xf32>
    %cst = arith.constant dense<0.000000e+00> : vector<32xf32>
    %5 = vector.multi_reduction <add>, %3, %cst [0] : vector<64x32xf32> to vector<32xf32>
    %6 = vector.shape_cast %5 : vector<32xf32> to vector<1x32xf32>
    %7 = arith.addf %4, %6 : vector<1x32xf32>
    %c0_4 = arith.constant 0 : index
    %c0_5 = arith.constant 0 : index
    %8 = vector.load %arg2[%c0_4, %c0_5] : memref<1x32xf32, #tpu.memory_space<vmem>>, vector<1x32xf32>
    tpu.vector_store %arg2[%c0_4, %c0_5], %7 {strides = array<i32>} : memref<1x32xf32, #tpu.memory_space<vmem>>, vector<1x32xf32>,
    %c0_6 = arith.constant 0 : index
    %c0_7 = arith.constant 0 : index
    %9 = vector.load %arg3[%c0_6, %c0_7] : memref<1x32xf32, #tpu.memory_space<vmem>>, vector<1x32xf32>
    %10 = arith.mulf %3, %3 : vector<64x32xf32>
    %cst_8 = arith.constant dense<0.000000e+00> : vector<32xf32>
    %11 = vector.multi_reduction <add>, %10, %cst_8 [0] : vector<64x32xf32> to vector<32xf32>
    %12 = vector.shape_cast %11 : vector<32xf32> to vector<1x32xf32>
    %13 = arith.addf %9, %12 : vector<1x32xf32>
    %c0_9 = arith.constant 0 : index
    %c0_10 = arith.constant 0 : index
    %14 = vector.load %arg3[%c0_9, %c0_10] : memref<1x32xf32, #tpu.memory_space<vmem>>, vector<1x32xf32>
    tpu.vector_store %arg3[%c0_9, %c0_10], %13 {strides = array<i32>} : memref<1x32xf32, #tpu.memory_space<vmem>>, vector<1x32xf32>,
    %c1_i32 = arith.constant 1 : i32
    %15 = arith.cmpi eq, %arg0, %c1_i32 : i32
    %16 = arith.extui %15 : i1 to i32
    %c0_i32_11 = arith.constant 0 : i32
    %17 = arith.cmpi ne, %16, %c0_i32_11 : i32
    scf.if %17 {
      %c0_12 = arith.constant 0 : index
      %c0_13 = arith.constant 0 : index
      %18 = vector.load %arg2[%c0_12, %c0_13] : memref<1x32xf32, #tpu.memory_space<vmem>>, vector<1x32xf32>
      %cst_14 = arith.constant 7.812500e-03 : f32
      %19 = vector.broadcast %cst_14 : f32 to vector<1x32xf32>
      %20 = arith.mulf %18, %19 : vector<1x32xf32>
      %c0_15 = arith.constant 0 : index
      %c0_16 = arith.constant 0 : index
      %21 = vector.load %arg3[%c0_15, %c0_16] : memref<1x32xf32, #tpu.memory_space<vmem>>, vector<1x32xf32>
      %cst_17 = arith.constant 1.280000e+02 : f32
      %22 = vector.broadcast %cst_17 : f32 to vector<1x32xf32>
      %23 = arith.mulf %22, %20 : vector<1x32xf32>
      %24 = arith.mulf %23, %20 : vector<1x32xf32>
      %25 = arith.subf %21, %24 : vector<1x32xf32>
      %cst_18 = arith.constant 1.270000e+02 : f32
      %26 = vector.broadcast %cst_18 : f32 to vector<1x32xf32>
      %27 = arith.divf %25, %26 : vector<1x32xf32>
      %cst_19 = arith.constant 0.000000e+00 : f32
      %28 = vector.broadcast %cst_19 : f32 to vector<1x32xf32>
      %29 = arith.maximumf %27, %28 : vector<1x32xf32>
      %c0_20 = arith.constant 0 : index
      %c0_21 = arith.constant 0 : index
      %30 = vector.load %arg2[%c0_20, %c0_21] : memref<1x32xf32, #tpu.memory_space<vmem>>, vector<1x32xf32>
      tpu.vector_store %arg2[%c0_20, %c0_21], %20 {strides = array<i32>} : memref<1x32xf32, #tpu.memory_space<vmem>>, vector<1x32xf32>,
      %31 = math.sqrt %29 : vector<1x32xf32>
      %cst_22 = arith.constant 9.99999993E-9 : f32
      %32 = vector.broadcast %cst_22 : f32 to vector<1x32xf32>
      %33 = arith.addf %31, %32 : vector<1x32xf32>
      %cst_23 = arith.constant 1.000000e+00 : f32
      %34 = vector.broadcast %cst_23 : f32 to vector<1x32xf32>
      %35 = arith.divf %34, %33 : vector<1x32xf32>
      %c0_24 = arith.constant 0 : index
      %c0_25 = arith.constant 0 : index
      %36 = vector.load %arg3[%c0_24, %c0_25] : memref<1x32xf32, #tpu.memory_space<vmem>>, vector<1x32xf32>
      tpu.vector_store %arg3[%c0_24, %c0_25], %35 {strides = array<i32>} : memref<1x32xf32, #tpu.memory_space<vmem>>, vector<1x32xf32>,
    } else {
    }
    return
  }
  func.func @transform_0(%arg0: i32) -> (i32, i32) {
    %c0_i32 = arith.constant 0 : i32
    %c0_i32_0 = arith.constant 0 : i32
    return %arg0, %c0_i32 : i32, i32
  }
  func.func @transform_1(%arg0: i32) -> (i32, i32) {
    %c0_i32 = arith.constant 0 : i32
    %c0_i32_0 = arith.constant 0 : i32
    %c0_i32_1 = arith.constant 0 : i32
    return %c0_i32, %c0_i32_0 : i32, i32
  }
  func.func @transform_2(%arg0: i32) -> (i32, i32) {
    %c0_i32 = arith.constant 0 : i32
    %c0_i32_0 = arith.constant 0 : i32
    %c0_i32_1 = arith.constant 0 : i32
    return %c0_i32, %c0_i32_0 : i32, i32
  }
}

module attributes {stable_mosaic.version = 11 : i64} {
  func.func @_encode_kernel(%arg0: i32, %arg1: memref<64x128xf32, #tpu.memory_space<vmem>>, %arg2: memref<1x64xf32, #tpu.memory_space<vmem>>, %arg3: memref<1x64xf32, #tpu.memory_space<vmem>>, %arg4: memref<64x64xf32, #tpu.memory_space<vmem>>, %arg5: memref<64x128xf32, #tpu.memory_space<vmem>>, %arg6: memref<1x128xf32, #tpu.memory_space<vmem>>, %arg7: memref<64x128xf32, #tpu.memory_space<vmem>>, %arg8: memref<64x128xf32, #tpu.memory_space<vmem>>) attributes {dimension_semantics = [#tpu.dimension_semantics<parallel>], iteration_bounds = array<i64: 6>, scalar_prefetch = 0 : i64, scratch_operands = 0 : i64, tpu.core_type = #tpu.core_type<tc>, window_params = [{transform_indices = @transform_0, window_bounds = array<i64: 64, 128>}, {pipeline_mode = #tpu.pipeline_mode<synchronous>, transform_indices = @transform_1, window_bounds = array<i64: 1, 64>}, {pipeline_mode = #tpu.pipeline_mode<synchronous>, transform_indices = @transform_2, window_bounds = array<i64: 1, 64>}, {transform_indices = @transform_3, window_bounds = array<i64: 64, 64>}, {pipeline_mode = #tpu.pipeline_mode<synchronous>, transform_indices = @transform_4, window_bounds = array<i64: 64, 128>}, {pipeline_mode = #tpu.pipeline_mode<synchronous>, transform_indices = @transform_5, window_bounds = array<i64: 1, 128>}, {transform_indices = @transform_6, window_bounds = array<i64: 64, 128>}, {transform_indices = @transform_7, window_bounds = array<i64: 64, 128>}]} {
    %c0 = arith.constant 0 : index
    %c0_0 = arith.constant 0 : index
    %0 = vector.load %arg4[%c0, %c0_0] : memref<64x64xf32, #tpu.memory_space<vmem>>, vector<64x64xf32>
    %c0_1 = arith.constant 0 : index
    %c0_2 = arith.constant 0 : index
    %1 = vector.load %arg2[%c0_1, %c0_2] : memref<1x64xf32, #tpu.memory_space<vmem>>, vector<1x64xf32>
    %2 = vector.broadcast %1 : vector<1x64xf32> to vector<64x64xf32>
    %3 = arith.subf %0, %2 : vector<64x64xf32>
    %c0_3 = arith.constant 0 : index
    %c0_4 = arith.constant 0 : index
    %4 = vector.load %arg3[%c0_3, %c0_4] : memref<1x64xf32, #tpu.memory_space<vmem>>, vector<1x64xf32>
    %5 = vector.broadcast %4 : vector<1x64xf32> to vector<64x64xf32>
    %6 = arith.mulf %3, %5 : vector<64x64xf32>
    %c0_5 = arith.constant 0 : index
    %c0_6 = arith.constant 0 : index
    %7 = vector.load %arg7[%c0_5, %c0_6] : memref<64x128xf32, #tpu.memory_space<vmem>>, vector<64x128xf32>
    %c0_7 = arith.constant 0 : index
    %c0_8 = arith.constant 0 : index
    %8 = vector.load %arg6[%c0_7, %c0_8] : memref<1x128xf32, #tpu.memory_space<vmem>>, vector<1x128xf32>
    %9 = vector.broadcast %8 : vector<1x128xf32> to vector<64x128xf32>
    %10 = arith.addf %7, %9 : vector<64x128xf32>
    %c0_9 = arith.constant 0 : index
    %c0_10 = arith.constant 0 : index
    %11 = vector.load %arg5[%c0_9, %c0_10] : memref<64x128xf32, #tpu.memory_space<vmem>>, vector<64x128xf32>
    %cst = arith.constant dense<0.000000e+00> : vector<64x128xf32>
    %12 = tpu.matmul %6, %11, %cst {dimension_numbers = #tpu.dot_dimension_numbers<[1], [0], [0], [1], [0, 0, 1, 1], [], []>} : vector<64x64xf32>, vector<64x128xf32>, vector<64x128xf32> -> vector<64x128xf32>
    %13 = arith.addf %10, %12 : vector<64x128xf32>
    %cst_11 = arith.constant dense<0.000000e+00> : vector<64xf32>
    %14 = vector.multi_reduction <add>, %13, %cst_11 [1] : vector<64x128xf32> to vector<64xf32>
    %15 = vector.shape_cast %14 : vector<64xf32> to vector<64x1xf32>
    %cst_12 = arith.constant 1.280000e+02 : f32
    %16 = vector.broadcast %cst_12 : f32 to vector<64x1xf32>
    %17 = arith.divf %15, %16 : vector<64x1xf32>
    %18 = vector.broadcast %17 : vector<64x1xf32> to vector<64x128xf32>
    %19 = arith.subf %13, %18 : vector<64x128xf32>
    %20 = arith.mulf %19, %19 : vector<64x128xf32>
    %cst_13 = arith.constant dense<0.000000e+00> : vector<64xf32>
    %21 = vector.multi_reduction <add>, %20, %cst_13 [1] : vector<64x128xf32> to vector<64xf32>
    %22 = vector.shape_cast %21 : vector<64xf32> to vector<64x1xf32>
    %cst_14 = arith.constant 1.280000e+02 : f32
    %23 = vector.broadcast %cst_14 : f32 to vector<64x1xf32>
    %24 = arith.divf %22, %23 : vector<64x1xf32>
    %25 = vector.broadcast %17 : vector<64x1xf32> to vector<64x128xf32>
    %26 = arith.subf %13, %25 : vector<64x128xf32>
    %cst_15 = arith.constant 9.99999974E-6 : f32
    %27 = vector.broadcast %cst_15 : f32 to vector<64x1xf32>
    %28 = arith.addf %24, %27 : vector<64x1xf32>
    %29 = math.rsqrt %28 : vector<64x1xf32>
    %30 = vector.broadcast %29 : vector<64x1xf32> to vector<64x128xf32>
    %31 = arith.mulf %26, %30 : vector<64x128xf32>
    %c0_16 = arith.constant 0 : index
    %c0_17 = arith.constant 0 : index
    %32 = vector.load %arg8[%c0_16, %c0_17] : memref<64x128xf32, #tpu.memory_space<vmem>>, vector<64x128xf32>
    tpu.vector_store %arg8[%c0_16, %c0_17], %31 {strides = array<i32>} : memref<64x128xf32, #tpu.memory_space<vmem>>, vector<64x128xf32>,
    return
  }
  func.func @transform_0(%arg0: i32) -> (i32, i32) {
    %c2_i32 = arith.constant 2 : i32
    %0 = arith.addi %arg0, %c2_i32 : i32
    %c0_i32 = arith.constant 0 : i32
    %c0_i32_0 = arith.constant 0 : i32
    return %0, %c0_i32 : i32, i32
  }
  func.func @transform_1(%arg0: i32) -> (i32, i32) {
    %c0_i32 = arith.constant 0 : i32
    %c0_i32_0 = arith.constant 0 : i32
    %c0_i32_1 = arith.constant 0 : i32
    return %c0_i32, %c0_i32_0 : i32, i32
  }
  func.func @transform_2(%arg0: i32) -> (i32, i32) {
    %c0_i32 = arith.constant 0 : i32
    %c0_i32_0 = arith.constant 0 : i32
    %c0_i32_1 = arith.constant 0 : i32
    return %c0_i32, %c0_i32_0 : i32, i32
  }
  func.func @transform_3(%arg0: i32) -> (i32, i32) {
    %c0_i32 = arith.constant 0 : i32
    %c0_i32_0 = arith.constant 0 : i32
    return %arg0, %c0_i32 : i32, i32
  }
  func.func @transform_4(%arg0: i32) -> (i32, i32) {
    %c0_i32 = arith.constant 0 : i32
    %c0_i32_0 = arith.constant 0 : i32
    %c0_i32_1 = arith.constant 0 : i32
    return %c0_i32, %c0_i32_0 : i32, i32
  }
  func.func @transform_5(%arg0: i32) -> (i32, i32) {
    %c0_i32 = arith.constant 0 : i32
    %c0_i32_0 = arith.constant 0 : i32
    %c0_i32_1 = arith.constant 0 : i32
    return %c0_i32, %c0_i32_0 : i32, i32
  }
  func.func @transform_6(%arg0: i32) -> (i32, i32) {
    %c0_i32 = arith.constant 0 : i32
    %c0_i32_0 = arith.constant 0 : i32
    return %arg0, %c0_i32 : i32, i32
  }
  func.func @transform_7(%arg0: i32) -> (i32, i32) {
    %c2_i32 = arith.constant 2 : i32
    %0 = arith.addi %arg0, %c2_i32 : i32
    %c0_i32 = arith.constant 0 : i32
    %c0_i32_0 = arith.constant 0 : i32
    return %0, %c0_i32 : i32, i32
  }
}

module attributes {stable_mosaic.version = 11 : i64} {
  func.func @_encode_kernel(%arg0: i32, %arg1: memref<64x128xf32, #tpu.memory_space<vmem>>, %arg2: memref<1x32xf32, #tpu.memory_space<vmem>>, %arg3: memref<1x32xf32, #tpu.memory_space<vmem>>, %arg4: memref<64x32xf32, #tpu.memory_space<vmem>>, %arg5: memref<32x128xf32, #tpu.memory_space<vmem>>, %arg6: memref<1x128xf32, #tpu.memory_space<vmem>>, %arg7: memref<64x128xf32, #tpu.memory_space<vmem>>, %arg8: memref<64x128xf32, #tpu.memory_space<vmem>>) attributes {dimension_semantics = [#tpu.dimension_semantics<parallel>], iteration_bounds = array<i64: 2>, scalar_prefetch = 0 : i64, scratch_operands = 0 : i64, tpu.core_type = #tpu.core_type<tc>, window_params = [{transform_indices = @transform_0, window_bounds = array<i64: 64, 128>}, {pipeline_mode = #tpu.pipeline_mode<synchronous>, transform_indices = @transform_1, window_bounds = array<i64: 1, 32>}, {pipeline_mode = #tpu.pipeline_mode<synchronous>, transform_indices = @transform_2, window_bounds = array<i64: 1, 32>}, {transform_indices = @transform_3, window_bounds = array<i64: 64, 32>}, {pipeline_mode = #tpu.pipeline_mode<synchronous>, transform_indices = @transform_4, window_bounds = array<i64: 32, 128>}, {pipeline_mode = #tpu.pipeline_mode<synchronous>, transform_indices = @transform_5, window_bounds = array<i64: 1, 128>}, {transform_indices = @transform_6, window_bounds = array<i64: 64, 128>}, {transform_indices = @transform_7, window_bounds = array<i64: 64, 128>}]} {
    %c0 = arith.constant 0 : index
    %c0_0 = arith.constant 0 : index
    %0 = vector.load %arg4[%c0, %c0_0] : memref<64x32xf32, #tpu.memory_space<vmem>>, vector<64x32xf32>
    %c0_1 = arith.constant 0 : index
    %c0_2 = arith.constant 0 : index
    %1 = vector.load %arg2[%c0_1, %c0_2] : memref<1x32xf32, #tpu.memory_space<vmem>>, vector<1x32xf32>
    %2 = vector.broadcast %1 : vector<1x32xf32> to vector<64x32xf32>
    %3 = arith.subf %0, %2 : vector<64x32xf32>
    %c0_3 = arith.constant 0 : index
    %c0_4 = arith.constant 0 : index
    %4 = vector.load %arg3[%c0_3, %c0_4] : memref<1x32xf32, #tpu.memory_space<vmem>>, vector<1x32xf32>
    %5 = vector.broadcast %4 : vector<1x32xf32> to vector<64x32xf32>
    %6 = arith.mulf %3, %5 : vector<64x32xf32>
    %c0_5 = arith.constant 0 : index
    %c0_6 = arith.constant 0 : index
    %7 = vector.load %arg7[%c0_5, %c0_6] : memref<64x128xf32, #tpu.memory_space<vmem>>, vector<64x128xf32>
    %c0_7 = arith.constant 0 : index
    %c0_8 = arith.constant 0 : index
    %8 = vector.load %arg6[%c0_7, %c0_8] : memref<1x128xf32, #tpu.memory_space<vmem>>, vector<1x128xf32>
    %9 = vector.broadcast %8 : vector<1x128xf32> to vector<64x128xf32>
    %10 = arith.addf %7, %9 : vector<64x128xf32>
    %c0_9 = arith.constant 0 : index
    %c0_10 = arith.constant 0 : index
    %11 = vector.load %arg5[%c0_9, %c0_10] : memref<32x128xf32, #tpu.memory_space<vmem>>, vector<32x128xf32>
    %cst = arith.constant dense<0.000000e+00> : vector<64x128xf32>
    %12 = tpu.matmul %6, %11, %cst {dimension_numbers = #tpu.dot_dimension_numbers<[1], [0], [0], [1], [0, 0, 1, 1], [], []>} : vector<64x32xf32>, vector<32x128xf32>, vector<64x128xf32> -> vector<64x128xf32>
    %13 = arith.addf %10, %12 : vector<64x128xf32>
    %cst_11 = arith.constant dense<0.000000e+00> : vector<64xf32>
    %14 = vector.multi_reduction <add>, %13, %cst_11 [1] : vector<64x128xf32> to vector<64xf32>
    %15 = vector.shape_cast %14 : vector<64xf32> to vector<64x1xf32>
    %cst_12 = arith.constant 1.280000e+02 : f32
    %16 = vector.broadcast %cst_12 : f32 to vector<64x1xf32>
    %17 = arith.divf %15, %16 : vector<64x1xf32>
    %18 = vector.broadcast %17 : vector<64x1xf32> to vector<64x128xf32>
    %19 = arith.subf %13, %18 : vector<64x128xf32>
    %20 = arith.mulf %19, %19 : vector<64x128xf32>
    %cst_13 = arith.constant dense<0.000000e+00> : vector<64xf32>
    %21 = vector.multi_reduction <add>, %20, %cst_13 [1] : vector<64x128xf32> to vector<64xf32>
    %22 = vector.shape_cast %21 : vector<64xf32> to vector<64x1xf32>
    %cst_14 = arith.constant 1.280000e+02 : f32
    %23 = vector.broadcast %cst_14 : f32 to vector<64x1xf32>
    %24 = arith.divf %22, %23 : vector<64x1xf32>
    %25 = vector.broadcast %17 : vector<64x1xf32> to vector<64x128xf32>
    %26 = arith.subf %13, %25 : vector<64x128xf32>
    %cst_15 = arith.constant 9.99999974E-6 : f32
    %27 = vector.broadcast %cst_15 : f32 to vector<64x1xf32>
    %28 = arith.addf %24, %27 : vector<64x1xf32>
    %29 = math.rsqrt %28 : vector<64x1xf32>
    %30 = vector.broadcast %29 : vector<64x1xf32> to vector<64x128xf32>
    %31 = arith.mulf %26, %30 : vector<64x128xf32>
    %c0_16 = arith.constant 0 : index
    %c0_17 = arith.constant 0 : index
    %32 = vector.load %arg8[%c0_16, %c0_17] : memref<64x128xf32, #tpu.memory_space<vmem>>, vector<64x128xf32>
    tpu.vector_store %arg8[%c0_16, %c0_17], %31 {strides = array<i32>} : memref<64x128xf32, #tpu.memory_space<vmem>>, vector<64x128xf32>,
    return
  }
  func.func @transform_0(%arg0: i32) -> (i32, i32) {
    %c0_i32 = arith.constant 0 : i32
    %0 = arith.addi %arg0, %c0_i32 : i32
    %c0_i32_0 = arith.constant 0 : i32
    %c0_i32_1 = arith.constant 0 : i32
    return %0, %c0_i32_0 : i32, i32
  }
  func.func @transform_1(%arg0: i32) -> (i32, i32) {
    %c0_i32 = arith.constant 0 : i32
    %c0_i32_0 = arith.constant 0 : i32
    %c0_i32_1 = arith.constant 0 : i32
    return %c0_i32, %c0_i32_0 : i32, i32
  }
  func.func @transform_2(%arg0: i32) -> (i32, i32) {
    %c0_i32 = arith.constant 0 : i32
    %c0_i32_0 = arith.constant 0 : i32
    %c0_i32_1 = arith.constant 0 : i32
    return %c0_i32, %c0_i32_0 : i32, i32
  }
  func.func @transform_3(%arg0: i32) -> (i32, i32) {
    %c0_i32 = arith.constant 0 : i32
    %c0_i32_0 = arith.constant 0 : i32
    return %arg0, %c0_i32 : i32, i32
  }
  func.func @transform_4(%arg0: i32) -> (i32, i32) {
    %c0_i32 = arith.constant 0 : i32
    %c0_i32_0 = arith.constant 0 : i32
    %c0_i32_1 = arith.constant 0 : i32
    return %c0_i32, %c0_i32_0 : i32, i32
  }
  func.func @transform_5(%arg0: i32) -> (i32, i32) {
    %c0_i32 = arith.constant 0 : i32
    %c0_i32_0 = arith.constant 0 : i32
    %c0_i32_1 = arith.constant 0 : i32
    return %c0_i32, %c0_i32_0 : i32, i32
  }
  func.func @transform_6(%arg0: i32) -> (i32, i32) {
    %c0_i32 = arith.constant 0 : i32
    %c0_i32_0 = arith.constant 0 : i32
    return %arg0, %c0_i32 : i32, i32
  }
  func.func @transform_7(%arg0: i32) -> (i32, i32) {
    %c0_i32 = arith.constant 0 : i32
    %0 = arith.addi %arg0, %c0_i32 : i32
    %c0_i32_0 = arith.constant 0 : i32
    %c0_i32_1 = arith.constant 0 : i32
    return %0, %c0_i32_0 : i32, i32
  }
}

module attributes {stable_mosaic.version = 11 : i64} {
  func.func @_prop_layer_kernel(%arg0: i32, %arg1: i32, %arg2: memref<128x128xbf16, #tpu.memory_space<vmem>>, %arg3: memref<128x128xf32, #tpu.memory_space<vmem>>, %arg4: memref<128x128xf32, #tpu.memory_space<vmem>>, %arg5: memref<128x128xf32, #tpu.memory_space<vmem>>, %arg6: memref<128x128xf32, #tpu.memory_space<vmem>>, %arg7: memref<128x128xf32, #tpu.memory_space<vmem>>) attributes {dimension_semantics = [#tpu.dimension_semantics<parallel>, #tpu.dimension_semantics<arbitrary>], iteration_bounds = array<i64: 4, 4>, scalar_prefetch = 0 : i64, scratch_operands = 1 : i64, tpu.core_type = #tpu.core_type<tc>, window_params = [{transform_indices = @transform_0, window_bounds = array<i64: 128, 128>}, {transform_indices = @transform_1, window_bounds = array<i64: 128, 128>}, {transform_indices = @transform_2, window_bounds = array<i64: 128, 128>}, {transform_indices = @transform_3, window_bounds = array<i64: 128, 128>}, {transform_indices = @transform_4, window_bounds = array<i64: 128, 128>}]} {
    %c0_i32 = arith.constant 0 : i32
    %0 = arith.cmpi eq, %arg1, %c0_i32 : i32
    %1 = arith.extui %0 : i1 to i32
    %c0_i32_0 = arith.constant 0 : i32
    %2 = arith.cmpi ne, %1, %c0_i32_0 : i32
    scf.if %2 {
      %cst_9 = arith.constant 0.000000e+00 : f32
      %13 = vector.broadcast %cst_9 : f32 to vector<128x128xf32>
      %c0_10 = arith.constant 0 : index
      %c0_11 = arith.constant 0 : index
      %14 = vector.load %arg7[%c0_10, %c0_11] : memref<128x128xf32, #tpu.memory_space<vmem>>, vector<128x128xf32>
      tpu.vector_store %arg7[%c0_10, %c0_11], %13 {strides = array<i32>} : memref<128x128xf32, #tpu.memory_space<vmem>>, vector<128x128xf32>,
    } else {
    }
    %c0 = arith.constant 0 : index
    %c0_1 = arith.constant 0 : index
    %3 = vector.load %arg7[%c0, %c0_1] : memref<128x128xf32, #tpu.memory_space<vmem>>, vector<128x128xf32>
    %c0_2 = arith.constant 0 : index
    %c0_3 = arith.constant 0 : index
    %4 = vector.load %arg2[%c0_2, %c0_3] : memref<128x128xbf16, #tpu.memory_space<vmem>>, vector<128x128xbf16>
    %5 = arith.extf %4 : vector<128x128xbf16> to vector<128x128xf32>
    %c0_4 = arith.constant 0 : index
    %c0_5 = arith.constant 0 : index
    %6 = vector.load %arg3[%c0_4, %c0_5] : memref<128x128xf32, #tpu.memory_space<vmem>>, vector<128x128xf32>
    %cst = arith.constant dense<0.000000e+00> : vector<128x128xf32>
    %7 = tpu.matmul %5, %6, %cst {dimension_numbers = #tpu.dot_dimension_numbers<[1], [0], [0], [1], [0, 0, 1, 1], [], []>} : vector<128x128xf32>, vector<128x128xf32>, vector<128x128xf32> -> vector<128x128xf32>
    %8 = arith.addf %3, %7 : vector<128x128xf32>
    %c0_6 = arith.constant 0 : index
    %c0_7 = arith.constant 0 : index
    %9 = vector.load %arg7[%c0_6, %c0_7] : memref<128x128xf32, #tpu.memory_space<vmem>>, vector<128x128xf32>
    tpu.vector_store %arg7[%c0_6, %c0_7], %8 {strides = array<i32>} : memref<128x128xf32, #tpu.memory_space<vmem>>, vector<128x128xf32>,
    %c3_i32 = arith.constant 3 : i32
    %10 = arith.cmpi eq, %arg1, %c3_i32 : i32
    %11 = arith.extui %10 : i1 to i32
    %c0_i32_8 = arith.constant 0 : i32
    %12 = arith.cmpi ne, %11, %c0_i32_8 : i32
    scf.if %12 {
      %c0_9 = arith.constant 0 : index
      %c0_10 = arith.constant 0 : index
      %13 = vector.load %arg7[%c0_9, %c0_10] : memref<128x128xf32, #tpu.memory_space<vmem>>, vector<128x128xf32>
      %c0_11 = arith.constant 0 : index
      %c0_12 = arith.constant 0 : index
      %14 = vector.load %arg5[%c0_11, %c0_12] : memref<128x128xf32, #tpu.memory_space<vmem>>, vector<128x128xf32>
      tpu.vector_store %arg5[%c0_11, %c0_12], %13 {strides = array<i32>} : memref<128x128xf32, #tpu.memory_space<vmem>>, vector<128x128xf32>,
      %c0_13 = arith.constant 0 : index
      %c0_14 = arith.constant 0 : index
      %15 = vector.load %arg4[%c0_13, %c0_14] : memref<128x128xf32, #tpu.memory_space<vmem>>, vector<128x128xf32>
      %16 = arith.addf %15, %13 : vector<128x128xf32>
      %cst_15 = arith.constant 1.000000e+00 : f32
      %17 = vector.broadcast %cst_15 : f32 to vector<128x128xf32>
      %18 = arith.mulf %16, %17 : vector<128x128xf32>
      %c0_16 = arith.constant 0 : index
      %c0_17 = arith.constant 0 : index
      %19 = vector.load %arg6[%c0_16, %c0_17] : memref<128x128xf32, #tpu.memory_space<vmem>>, vector<128x128xf32>
      tpu.vector_store %arg6[%c0_16, %c0_17], %18 {strides = array<i32>} : memref<128x128xf32, #tpu.memory_space<vmem>>, vector<128x128xf32>,
    } else {
    }
    return
  }
  func.func @transform_0(%arg0: i32, %arg1: i32) -> (i32, i32) {
    %c0_i32 = arith.constant 0 : i32
    return %arg0, %arg1 : i32, i32
  }
  func.func @transform_1(%arg0: i32, %arg1: i32) -> (i32, i32) {
    %c0_i32 = arith.constant 0 : i32
    %c0_i32_0 = arith.constant 0 : i32
    return %arg1, %c0_i32 : i32, i32
  }
  func.func @transform_2(%arg0: i32, %arg1: i32) -> (i32, i32) {
    %c0_i32 = arith.constant 0 : i32
    %c0_i32_0 = arith.constant 0 : i32
    return %arg0, %c0_i32 : i32, i32
  }
  func.func @transform_3(%arg0: i32, %arg1: i32) -> (i32, i32) {
    %c0_i32 = arith.constant 0 : i32
    %c0_i32_0 = arith.constant 0 : i32
    return %arg0, %c0_i32 : i32, i32
  }
  func.func @transform_4(%arg0: i32, %arg1: i32) -> (i32, i32) {
    %c0_i32 = arith.constant 0 : i32
    %c0_i32_0 = arith.constant 0 : i32
    return %arg0, %c0_i32 : i32, i32
  }
}

module attributes {stable_mosaic.version = 11 : i64} {
  func.func @_prop_layer_kernel(%arg0: i32, %arg1: i32, %arg2: memref<128x128xbf16, #tpu.memory_space<vmem>>, %arg3: memref<128x128xf32, #tpu.memory_space<vmem>>, %arg4: memref<128x128xf32, #tpu.memory_space<vmem>>, %arg5: memref<128x128xf32, #tpu.memory_space<vmem>>, %arg6: memref<128x128xf32, #tpu.memory_space<vmem>>, %arg7: memref<128x128xf32, #tpu.memory_space<vmem>>) attributes {dimension_semantics = [#tpu.dimension_semantics<parallel>, #tpu.dimension_semantics<arbitrary>], iteration_bounds = array<i64: 4, 4>, scalar_prefetch = 0 : i64, scratch_operands = 1 : i64, tpu.core_type = #tpu.core_type<tc>, window_params = [{transform_indices = @transform_0, window_bounds = array<i64: 128, 128>}, {transform_indices = @transform_1, window_bounds = array<i64: 128, 128>}, {transform_indices = @transform_2, window_bounds = array<i64: 128, 128>}, {transform_indices = @transform_3, window_bounds = array<i64: 128, 128>}, {transform_indices = @transform_4, window_bounds = array<i64: 128, 128>}]} {
    %c0_i32 = arith.constant 0 : i32
    %0 = arith.cmpi eq, %arg1, %c0_i32 : i32
    %1 = arith.extui %0 : i1 to i32
    %c0_i32_0 = arith.constant 0 : i32
    %2 = arith.cmpi ne, %1, %c0_i32_0 : i32
    scf.if %2 {
      %cst_9 = arith.constant 0.000000e+00 : f32
      %13 = vector.broadcast %cst_9 : f32 to vector<128x128xf32>
      %c0_10 = arith.constant 0 : index
      %c0_11 = arith.constant 0 : index
      %14 = vector.load %arg7[%c0_10, %c0_11] : memref<128x128xf32, #tpu.memory_space<vmem>>, vector<128x128xf32>
      tpu.vector_store %arg7[%c0_10, %c0_11], %13 {strides = array<i32>} : memref<128x128xf32, #tpu.memory_space<vmem>>, vector<128x128xf32>,
    } else {
    }
    %c0 = arith.constant 0 : index
    %c0_1 = arith.constant 0 : index
    %3 = vector.load %arg7[%c0, %c0_1] : memref<128x128xf32, #tpu.memory_space<vmem>>, vector<128x128xf32>
    %c0_2 = arith.constant 0 : index
    %c0_3 = arith.constant 0 : index
    %4 = vector.load %arg2[%c0_2, %c0_3] : memref<128x128xbf16, #tpu.memory_space<vmem>>, vector<128x128xbf16>
    %5 = arith.extf %4 : vector<128x128xbf16> to vector<128x128xf32>
    %c0_4 = arith.constant 0 : index
    %c0_5 = arith.constant 0 : index
    %6 = vector.load %arg3[%c0_4, %c0_5] : memref<128x128xf32, #tpu.memory_space<vmem>>, vector<128x128xf32>
    %cst = arith.constant dense<0.000000e+00> : vector<128x128xf32>
    %7 = tpu.matmul %5, %6, %cst {dimension_numbers = #tpu.dot_dimension_numbers<[1], [0], [0], [1], [0, 0, 1, 1], [], []>} : vector<128x128xf32>, vector<128x128xf32>, vector<128x128xf32> -> vector<128x128xf32>
    %8 = arith.addf %3, %7 : vector<128x128xf32>
    %c0_6 = arith.constant 0 : index
    %c0_7 = arith.constant 0 : index
    %9 = vector.load %arg7[%c0_6, %c0_7] : memref<128x128xf32, #tpu.memory_space<vmem>>, vector<128x128xf32>
    tpu.vector_store %arg7[%c0_6, %c0_7], %8 {strides = array<i32>} : memref<128x128xf32, #tpu.memory_space<vmem>>, vector<128x128xf32>,
    %c3_i32 = arith.constant 3 : i32
    %10 = arith.cmpi eq, %arg1, %c3_i32 : i32
    %11 = arith.extui %10 : i1 to i32
    %c0_i32_8 = arith.constant 0 : i32
    %12 = arith.cmpi ne, %11, %c0_i32_8 : i32
    scf.if %12 {
      %c0_9 = arith.constant 0 : index
      %c0_10 = arith.constant 0 : index
      %13 = vector.load %arg7[%c0_9, %c0_10] : memref<128x128xf32, #tpu.memory_space<vmem>>, vector<128x128xf32>
      %c0_11 = arith.constant 0 : index
      %c0_12 = arith.constant 0 : index
      %14 = vector.load %arg5[%c0_11, %c0_12] : memref<128x128xf32, #tpu.memory_space<vmem>>, vector<128x128xf32>
      tpu.vector_store %arg5[%c0_11, %c0_12], %13 {strides = array<i32>} : memref<128x128xf32, #tpu.memory_space<vmem>>, vector<128x128xf32>,
      %c0_13 = arith.constant 0 : index
      %c0_14 = arith.constant 0 : index
      %15 = vector.load %arg4[%c0_13, %c0_14] : memref<128x128xf32, #tpu.memory_space<vmem>>, vector<128x128xf32>
      %16 = arith.addf %15, %13 : vector<128x128xf32>
      %cst_15 = arith.constant 2.500000e-01 : f32
      %17 = vector.broadcast %cst_15 : f32 to vector<128x128xf32>
      %18 = arith.mulf %16, %17 : vector<128x128xf32>
      %c0_16 = arith.constant 0 : index
      %c0_17 = arith.constant 0 : index
      %19 = vector.load %arg6[%c0_16, %c0_17] : memref<128x128xf32, #tpu.memory_space<vmem>>, vector<128x128xf32>
      tpu.vector_store %arg6[%c0_16, %c0_17], %18 {strides = array<i32>} : memref<128x128xf32, #tpu.memory_space<vmem>>, vector<128x128xf32>,
    } else {
    }
    return
  }
  func.func @transform_0(%arg0: i32, %arg1: i32) -> (i32, i32) {
    %c0_i32 = arith.constant 0 : i32
    return %arg0, %arg1 : i32, i32
  }
  func.func @transform_1(%arg0: i32, %arg1: i32) -> (i32, i32) {
    %c0_i32 = arith.constant 0 : i32
    %c0_i32_0 = arith.constant 0 : i32
    return %arg1, %c0_i32 : i32, i32
  }
  func.func @transform_2(%arg0: i32, %arg1: i32) -> (i32, i32) {
    %c0_i32 = arith.constant 0 : i32
    %c0_i32_0 = arith.constant 0 : i32
    return %arg0, %c0_i32 : i32, i32
  }
  func.func @transform_3(%arg0: i32, %arg1: i32) -> (i32, i32) {
    %c0_i32 = arith.constant 0 : i32
    %c0_i32_0 = arith.constant 0 : i32
    return %arg0, %c0_i32 : i32, i32
  }
  func.func @transform_4(%arg0: i32, %arg1: i32) -> (i32, i32) {
    %c0_i32 = arith.constant 0 : i32
    %c0_i32_0 = arith.constant 0 : i32
    return %arg0, %c0_i32 : i32, i32
  }
}

</mosaic_0001>

<bundles_post_ra>
// kernel: lightgcn_forward.9
= control target key start
LH: loop header
LB: loop body
LE: loop exit
PB: predicated region body
PF: predicated region fallthrough
CT: control target
= control target key end

     0   :  { %s308_s9 = smov 0   ;;  %s387_s0 = inlined_call_operand.vmem [shape: f32[384,64], index: 0, kind: input, shape index: {}]   ;;  %s388_s1 = inlined_call_operand.vmem [shape: f32[1,64], index: 1, kind: output, shape index: {0}]   ;;  %s389_s2 = inlined_call_operand.vmem [shape: f32[1,64], index: 2, kind: output, shape index: {1}]  }
   0x1 LB: > { %s314_s10 = sadd.s32 4294967295, %s290_s9   ;;  %p264_p0 = scmp.ge.s32.totalorder %s290_s9, 1  ;;  %s290_s9 = sphi %s308_s9, %s13_s9  }
   0x2   : > { %p106_p1 = scmp.lt.s32.totalorder %s290_s9, 7 }
   0x4   : > { %p107_p2 = pnand %p264_p0, %p106_p1 }
   0x5   : > { %s265_s11 = sshll.u32 (!%p107_p2), %s314_s10, 3  ;;  %p267_p4 = scmp.ne.s32.totalorder (!%p107_p2), %s314_s10, 0 }
   0x6   : > { %110 = sbr.rel (%p107_p2) target bundleno = 103 (0x67), region = 24  ;;  %p124_p3 = scmp.lt.s32.totalorder (!%p107_p2), %s265_s11, 47 }
   0xb   : > { %s391_s11 = smov (!%p124_p3, %s265_s11), 47  ;;  %132 = sbr.rel (%p267_p4) target bundleno = 18 (0x12), region = 28 }
   0xc   : > { %s266_s12 = sshll.u32 %s391_s11, 3 }
   0xd   : > { %s322_s15 = scalar_lea.vmem %s387_s0, %s266_s12 }
  0x10   : > { %vm133_vm0 = vcmask 516096   ;;  %v292_v0 = vmov 0.0  }
  0x11   : > { %134 = vst.msk [vmem:[%s388_s1] sm:$0x1] %vm133_vm0, %v292_v0  ;;  %135 = vst.msk [vmem:[%s389_s2] sm:$0x1] %vm133_vm0, %v292_v0 }
  0x12 PF: > { %v136_v1 = vld [vmem:[%s322_s15] sm:$0xff]  ;;  %v137_v2 = vld [vmem:[%s322_s15 + $0x8] sm:$0xff]  ;;  %v138_v3 = vld [vmem:[%s322_s15 + $0x10] sm:$0xff]  ;;  %vm145_vm1 = vcmask 523264   ;;  %vm168_vm2 = vcmask 516096   ;;  %p268_p5 = scmp.ne.s32.totalorder %s314_s10, 5 }
  0x13   : > { %v139_v4 = vld [vmem:[%s322_s15 + $0x18] sm:$0xff]  ;;  %v146_v5 = vsel %vm145_vm1, %v136_v1, 0.0  ;;  %v147_v6 = vsel %vm145_vm1, %v137_v2, 0.0  ;;  %v149_v7 = vsel %vm145_vm1, %v138_v3, 0.0  ;;  %v171_v8 = vmul.f32 %v136_v1, %v136_v1  ;;  %v140_v9 = vld [vmem:[%s322_s15 + $0x20] sm:$0xff]  ;;  %v141_v14 = vld [vmem:[%s322_s15 + $0x28] sm:$0xff] }
  0x14   : > { %v148_v10 = vadd.f32 %v147_v6, %v146_v5  ;;  %v172_v11 = vmul.f32 %v137_v2, %v137_v2  ;;  %v151_v12 = vsel %vm145_vm1, %v139_v4, 0.0  ;;  %v173_v13 = vmul.f32 %v138_v3, %v138_v3  ;;  %v142_v21 = vld [vmem:[%s322_s15 + $0x30] sm:$0xff]  ;;  %v143_v28 = vld [vmem:[%s322_s15 + $0x38] sm:$0xff] }
  0x15   : > { %v174_v16 = vmul.f32 %v139_v4, %v139_v4  ;;  %v153_v17 = vsel %vm145_vm1, %v140_v9, 0.0  ;;  %v175_v18 = vmul.f32 %v140_v9, %v140_v9  ;;  %v179_v19 = vsel %vm145_vm1, %v171_v8, 0.0 }
  0x16   : > { %v150_v15 = vadd.f32 %v149_v7, %v148_v10  ;;  %v180_v20 = vsel %vm145_vm1, %v172_v11, 0.0  ;;  %v182_v24 = vsel %vm145_vm1, %v173_v13, 0.0  ;;  %v155_v25 = vsel %vm145_vm1, %v141_v14, 0.0 }
  0x17   : > { %v181_v23 = vadd.f32 %v180_v20, %v179_v19  ;;  %v176_v26 = vmul.f32 %v141_v14, %v141_v14  ;;  %v184_v27 = vsel %vm145_vm1, %v174_v16, 0.0  ;;  %v157_v31 = vsel %vm145_vm1, %v142_v21, 0.0 }
  0x18   : > { %v152_v22 = vadd.f32 %v151_v12, %v150_v15  ;;  %v177_v32 = vmul.f32 %v142_v21, %v142_v21  ;;  %v186_v33 = vsel %vm145_vm1, %v175_v18, 0.0  ;;  %v159_v36 = vsel %vm145_vm1, %v143_v28, 0.0  ;;  %v144_v55 = vld [vmem:[%s388_s1] sm:$0x1] }
  0x19   : > { %v183_v30 = vadd.f32 %v182_v24, %v181_v23  ;;  %v178_v37 = vmul.f32 %v143_v28, %v143_v28  ;;  %v188_v38 = vsel %vm145_vm1, %v176_v26, 0.0  ;;  %v170_v60 = vld [vmem:[%s389_s2] sm:$0x1] }
  0x1a   : > { %v154_v29 = vadd.f32 %v153_v17, %v152_v22  ;;  %v190_v41 = vsel %vm145_vm1, %v177_v32, 0.0 }
  0x1b   : > { %v185_v35 = vadd.f32 %v184_v27, %v183_v30  ;;  %v192_v44 = vsel %vm145_vm1, %v178_v37, 0.0 }
  0x1c   : > { %v156_v34 = vadd.f32 %v155_v25, %v154_v29 }
  0x1d   : > { %v187_v40 = vadd.f32 %v186_v33, %v185_v35 }
  0x1e   : > { %v158_v39 = vadd.f32 %v157_v31, %v156_v34 }
  0x1f   : > { %v189_v43 = vadd.f32 %v188_v38, %v187_v40 }
  0x20   : > { %v160_v42 = vadd.f32 %v159_v36, %v158_v39 }
  0x21   : > { %v191_v46 = vadd.f32 %v190_v41, %v189_v43 }
  0x22   : > { %v161_v45 = vrot.slane %v160_v42, 4 }
  0x23   : > { %v193_v48 = vadd.f32 %v192_v44, %v191_v46 }
  0x24   : > { %v162_v47 = vadd.f32 %v161_v45, %v160_v42 }
  0x25   : > { %v194_v50 = vrot.slane %v193_v48, 4 }
  0x26   : > { %v163_v49 = vrot.slane %v162_v47, 2 }
  0x27   : > { %v195_v52 = vadd.f32 %v194_v50, %v193_v48 }
  0x28   : > { %v164_v51 = vadd.f32 %v163_v49, %v162_v47 }
  0x29   : > { %v196_v54 = vrot.slane %v195_v52, 2 }
  0x2a   : > { %v165_v53 = vrot.slane %v164_v51, 1 }
  0x2b   : > { %v197_v57 = vadd.f32 %v196_v54, %v195_v52 }
  0x2c   : > { %v166_v56 = vadd.f32 %v165_v53, %v164_v51 }
  0x2d   : > { %v198_v59 = vrot.slane %v197_v57, 1 }
  0x2e   : > { %v167_v58 = vadd.f32 %v166_v56, %v144_v55 }
  0x2f   : > { %v199_v61 = vadd.f32 %v198_v59, %v197_v57  ;;  %205 = sbr.rel (%p268_p5) target bundleno = 103 (0x67), region = 32 }
  0x30   : > { %169 = vst.msk [vmem:[%s388_s1] sm:$0x1] %vm168_vm2, %v167_v58 }
  0x31   : > { %v200_v62 = vadd.f32 %v199_v61, %v170_v60 }
  0x33   : > { %201 = vst.msk [vmem:[%s389_s2] sm:$0x1] %vm168_vm2, %v200_v62 }
  0x37   : > { %v206_v63 = vld [vmem:[%s388_s1] sm:$0x1] }
  0x38   : > { %v207_v0 = vmul.f32 0.0026041667, %v206_v63 }
  0x3a   : > { %215 = vst.msk [vmem:[%s388_s1] sm:$0x1] %vm168_vm2, %v207_v0  ;;  %v209_v1 = vmul.f32 384.0, %v207_v0  ;;  %v208_v2 = vld [vmem:[%s389_s2] sm:$0x1] }
  0x3c   : > { %v210_v3 = vmul.f32 %v209_v1, %v207_v0 }
  0x3e   : > { %v211_v4 = vsub.f32 %v208_v2, %v210_v3 }
  0x40   : > { %v213_v5 = vmul.f32 0.002610966, %v211_v4 }
  0x42   : > { %v214_v6 = vmax.f32 %v213_v5, 0.0 }
  0x44   : > { %280 = vrsqrt.f32 %v214_v6  ;;  %vm218_vm3 = vcmp.eq.f32.partialorder %v214_v6, inf  ;;  %v221_v8 = vand.u32 2147483648, %v214_v6  ;;  %vm220_vm4 = vcmp.eq.f32.partialorder %v214_v6, 0.0 }
  0x51   : > { %v281_v7 = vpop.eup %280 }
  0x52   : > { %v217_v9 = vmul.f32 %v281_v7, %v214_v6 }
  0x54   : > { %v219_v10 = vsel %vm218_vm3, %v214_v6, %v217_v9 }
  0x55   : > { %v222_v11 = vsel %vm220_vm4, %v221_v8, %v219_v10 }
  0x56   : > { %v223_v12 = vadd.f32 1e-08, %v222_v11 }
  0x58   : > { %282 = vrcp.f32 %v223_v12 }
  0x65   : > { %v283_v13 = vpop.eup %282 }
  0x66   : > { %226 = vst.msk [vmem:[%s389_s2] sm:$0x1] %vm168_vm2, %v283_v13 }
  0x67 PF: > { %s13_s9 = sadd.s32 1, %s290_s9  }
  0x68   : > { %p10_p6 = scmp.ge.s32.totalorder %s13_s9, 8  }
  0x6a   :  { %12 = sbr.rel (!%p10_p6) target bundleno = 1 (0x1), region = 66 }

// kernel: lightgcn_forward.7
= control target key start
LH: loop header
LB: loop body
LE: loop exit
PB: predicated region body
PF: predicated region fallthrough
CT: control target
= control target key end

     0   :  { %s308_s9 = smov 0   ;;  %s387_s0 = inlined_call_operand.vmem [shape: f32[128,32], index: 0, kind: input, shape index: {}]   ;;  %s388_s1 = inlined_call_operand.vmem [shape: f32[1,32], index: 1, kind: output, shape index: {0}]   ;;  %s389_s2 = inlined_call_operand.vmem [shape: f32[1,32], index: 2, kind: output, shape index: {1}]  }
   0x1 LB: > { %s314_s10 = sadd.s32 4294967295, %s290_s9   ;;  %p264_p0 = scmp.ge.s32.totalorder %s290_s9, 1  ;;  %s290_s9 = sphi %s308_s9, %s13_s9  }
   0x2   : > { %p106_p1 = scmp.lt.s32.totalorder %s290_s9, 3 }
   0x4   : > { %p107_p2 = pnand %p264_p0, %p106_p1 }
   0x5   : > { %s265_s11 = sshll.u32 (!%p107_p2), %s314_s10, 3  ;;  %p267_p4 = scmp.ne.s32.totalorder (!%p107_p2), %s314_s10, 0 }
   0x6   : > { %110 = sbr.rel (%p107_p2) target bundleno = 103 (0x67), region = 24  ;;  %p124_p3 = scmp.lt.s32.totalorder (!%p107_p2), %s265_s11, 15 }
   0xb   : > { %s391_s11 = smov (!%p124_p3, %s265_s11), 15  ;;  %132 = sbr.rel (%p267_p4) target bundleno = 18 (0x12), region = 28 }
   0xc   : > { %s266_s12 = sshll.u32 %s391_s11, 3 }
   0xd   : > { %s322_s15 = scalar_lea.vmem %s387_s0, %s266_s12 }
  0x10   : > { %vm133_vm0 = vcmask 253952   ;;  %v292_v0 = vmov 0.0  }
  0x11   : > { %134 = vst.msk [vmem:[%s388_s1] sm:$0x1] %vm133_vm0, %v292_v0  ;;  %135 = vst.msk [vmem:[%s389_s2] sm:$0x1] %vm133_vm0, %v292_v0 }
  0x12 PF: > { %v136_v1 = vld [vmem:[%s322_s15] sm:$0xff]  ;;  %v137_v2 = vld [vmem:[%s322_s15 + $0x8] sm:$0xff]  ;;  %v138_v3 = vld [vmem:[%s322_s15 + $0x10] sm:$0xff]  ;;  %vm145_vm1 = vcmask 261120   ;;  %vm168_vm2 = vcmask 253952   ;;  %p268_p5 = scmp.ne.s32.totalorder %s314_s10, 1 }
  0x13   : > { %v139_v4 = vld [vmem:[%s322_s15 + $0x18] sm:$0xff]  ;;  %v146_v5 = vsel %vm145_vm1, %v136_v1, 0.0  ;;  %v147_v6 = vsel %vm145_vm1, %v137_v2, 0.0  ;;  %v149_v7 = vsel %vm145_vm1, %v138_v3, 0.0  ;;  %v171_v8 = vmul.f32 %v136_v1, %v136_v1  ;;  %v140_v9 = vld [vmem:[%s322_s15 + $0x20] sm:$0xff]  ;;  %v141_v14 = vld [vmem:[%s322_s15 + $0x28] sm:$0xff] }
  0x14   : > { %v148_v10 = vadd.f32 %v147_v6, %v146_v5  ;;  %v172_v11 = vmul.f32 %v137_v2, %v137_v2  ;;  %v151_v12 = vsel %vm145_vm1, %v139_v4, 0.0  ;;  %v173_v13 = vmul.f32 %v138_v3, %v138_v3  ;;  %v142_v21 = vld [vmem:[%s322_s15 + $0x30] sm:$0xff]  ;;  %v143_v28 = vld [vmem:[%s322_s15 + $0x38] sm:$0xff] }
  0x15   : > { %v174_v16 = vmul.f32 %v139_v4, %v139_v4  ;;  %v153_v17 = vsel %vm145_vm1, %v140_v9, 0.0  ;;  %v175_v18 = vmul.f32 %v140_v9, %v140_v9  ;;  %v179_v19 = vsel %vm145_vm1, %v171_v8, 0.0 }
  0x16   : > { %v150_v15 = vadd.f32 %v149_v7, %v148_v10  ;;  %v180_v20 = vsel %vm145_vm1, %v172_v11, 0.0  ;;  %v182_v24 = vsel %vm145_vm1, %v173_v13, 0.0  ;;  %v155_v25 = vsel %vm145_vm1, %v141_v14, 0.0 }
  0x17   : > { %v181_v23 = vadd.f32 %v180_v20, %v179_v19  ;;  %v176_v26 = vmul.f32 %v141_v14, %v141_v14  ;;  %v184_v27 = vsel %vm145_vm1, %v174_v16, 0.0  ;;  %v157_v31 = vsel %vm145_vm1, %v142_v21, 0.0 }
  0x18   : > { %v152_v22 = vadd.f32 %v151_v12, %v150_v15  ;;  %v177_v32 = vmul.f32 %v142_v21, %v142_v21  ;;  %v186_v33 = vsel %vm145_vm1, %v175_v18, 0.0  ;;  %v159_v36 = vsel %vm145_vm1, %v143_v28, 0.0  ;;  %v144_v55 = vld [vmem:[%s388_s1] sm:$0x1] }
  0x19   : > { %v183_v30 = vadd.f32 %v182_v24, %v181_v23  ;;  %v178_v37 = vmul.f32 %v143_v28, %v143_v28  ;;  %v188_v38 = vsel %vm145_vm1, %v176_v26, 0.0  ;;  %v170_v60 = vld [vmem:[%s389_s2] sm:$0x1] }
  0x1a   : > { %v154_v29 = vadd.f32 %v153_v17, %v152_v22  ;;  %v190_v41 = vsel %vm145_vm1, %v177_v32, 0.0 }
  0x1b   : > { %v185_v35 = vadd.f32 %v184_v27, %v183_v30  ;;  %v192_v44 = vsel %vm145_vm1, %v178_v37, 0.0 }
  0x1c   : > { %v156_v34 = vadd.f32 %v155_v25, %v154_v29 }
  0x1d   : > { %v187_v40 = vadd.f32 %v186_v33, %v185_v35 }
  0x1e   : > { %v158_v39 = vadd.f32 %v157_v31, %v156_v34 }
  0x1f   : > { %v189_v43 = vadd.f32 %v188_v38, %v187_v40 }
  0x20   : > { %v160_v42 = vadd.f32 %v159_v36, %v158_v39 }
  0x21   : > { %v191_v46 = vadd.f32 %v190_v41, %v189_v43 }
  0x22   : > { %v161_v45 = vrot.slane %v160_v42, 4 }
  0x23   : > { %v193_v48 = vadd.f32 %v192_v44, %v191_v46 }
  0x24   : > { %v162_v47 = vadd.f32 %v161_v45, %v160_v42 }
  0x25   : > { %v194_v50 = vrot.slane %v193_v48, 4 }
  0x26   : > { %v163_v49 = vrot.slane %v162_v47, 2 }
  0x27   : > { %v195_v52 = vadd.f32 %v194_v50, %v193_v48 }
  0x28   : > { %v164_v51 = vadd.f32 %v163_v49, %v162_v47 }
  0x29   : > { %v196_v54 = vrot.slane %v195_v52, 2 }
  0x2a   : > { %v165_v53 = vrot.slane %v164_v51, 1 }
  0x2b   : > { %v197_v57 = vadd.f32 %v196_v54, %v195_v52 }
  0x2c   : > { %v166_v56 = vadd.f32 %v165_v53, %v164_v51 }
  0x2d   : > { %v198_v59 = vrot.slane %v197_v57, 1 }
  0x2e   : > { %v167_v58 = vadd.f32 %v166_v56, %v144_v55 }
  0x2f   : > { %v199_v61 = vadd.f32 %v198_v59, %v197_v57  ;;  %205 = sbr.rel (%p268_p5) target bundleno = 103 (0x67), region = 32 }
  0x30   : > { %169 = vst.msk [vmem:[%s388_s1] sm:$0x1] %vm168_vm2, %v167_v58 }
  0x31   : > { %v200_v62 = vadd.f32 %v199_v61, %v170_v60 }
  0x33   : > { %201 = vst.msk [vmem:[%s389_s2] sm:$0x1] %vm168_vm2, %v200_v62 }
  0x37   : > { %v206_v63 = vld [vmem:[%s388_s1] sm:$0x1] }
  0x38   : > { %v207_v0 = vmul.f32 0.0078125, %v206_v63 }
  0x3a   : > { %215 = vst.msk [vmem:[%s388_s1] sm:$0x1] %vm168_vm2, %v207_v0  ;;  %v209_v1 = vmul.f32 128.0, %v207_v0  ;;  %v208_v2 = vld [vmem:[%s389_s2] sm:$0x1] }
  0x3c   : > { %v210_v3 = vmul.f32 %v209_v1, %v207_v0 }
  0x3e   : > { %v211_v4 = vsub.f32 %v208_v2, %v210_v3 }
  0x40   : > { %v213_v5 = vmul.f32 0.007874016, %v211_v4 }
  0x42   : > { %v214_v6 = vmax.f32 %v213_v5, 0.0 }
  0x44   : > { %280 = vrsqrt.f32 %v214_v6  ;;  %vm218_vm3 = vcmp.eq.f32.partialorder %v214_v6, inf  ;;  %v221_v8 = vand.u32 2147483648, %v214_v6  ;;  %vm220_vm4 = vcmp.eq.f32.partialorder %v214_v6, 0.0 }
  0x51   : > { %v281_v7 = vpop.eup %280 }
  0x52   : > { %v217_v9 = vmul.f32 %v281_v7, %v214_v6 }
  0x54   : > { %v219_v10 = vsel %vm218_vm3, %v214_v6, %v217_v9 }
  0x55   : > { %v222_v11 = vsel %vm220_vm4, %v221_v8, %v219_v10 }
  0x56   : > { %v223_v12 = vadd.f32 1e-08, %v222_v11 }
  0x58   : > { %282 = vrcp.f32 %v223_v12 }
  0x65   : > { %v283_v13 = vpop.eup %282 }
  0x66   : > { %226 = vst.msk [vmem:[%s389_s2] sm:$0x1] %vm168_vm2, %v283_v13 }
  0x67 PF: > { %s13_s9 = sadd.s32 1, %s290_s9  }
  0x68   : > { %p10_p6 = scmp.ge.s32.totalorder %s13_s9, 4  }
  0x6a   :  { %12 = sbr.rel (!%p10_p6) target bundleno = 1 (0x1), region = 66 }

// kernel: lightgcn_forward.10
= control target key start
LH: loop header
LB: loop body
LE: loop exit
PB: predicated region body
PF: predicated region fallthrough
CT: control target
= control target key end

     0   :  { %s883_s23 = smov 0   ;;  %s996_s0 = inlined_call_operand.vmem [shape: f32[512,128], index: 0, kind: input, shape index: {}, may-alias: {0,7}]   ;;  %s997_s1 = inlined_call_operand.vmem [shape: f32[1,64], index: 1, kind: input, shape index: {}]   ;;  %s998_s2 = inlined_call_operand.vmem [shape: f32[1,64], index: 2, kind: input, shape index: {}]   ;;  %s999_s3 = inlined_call_operand.vmem [shape: f32[384,64], index: 3, kind: input, shape index: {}]   ;;  %s1000_s4 = inlined_call_operand.vmem [shape: f32[64,128], index: 4, kind: input, shape index: {}]   ;;  %s1001_s5 = inlined_call_operand.vmem [shape: f32[1,128], index: 5, kind: input, shape index: {}]   ;;  %s1002_s6 = inlined_call_operand.vmem [shape: f32[384,128], index: 6, kind: input, shape index: {}]   ;;  %s1003_s7 = inlined_call_operand.vmem [shape: f32[512,128], index: 7, kind: output, shape index: {}, may-alias: {0,7}]  }
   0x1 LB: > { %s725_s24 = sadd.s32 4294967295, %s841_s23   ;;  %p729_p0 = scmp.ge.s32.totalorder %s841_s23, 1  ;;  %s841_s23 = sphi %s883_s23, %s17_s23  }
   0x2   : > { %p266_p1 = scmp.lt.s32.totalorder %s841_s23, 7 }
   0x4   : > { %p267_p2 = pnand %p729_p0, %p266_p1 }
   0x5   : > { %s897_s29 = sshll.u32 (!%p267_p2), %s725_s24, 3 }
   0x6   : > { %270 = sbr.rel (%p267_p2) target bundleno = 543 (0x21f), region = 48  ;;  %p319_p3 = scmp.lt.s32.totalorder (!%p267_p2), %s897_s29, 47 }
   0xb   : > { %v406_v0 = vld [vmem:[%s1000_s4 + $0x38] sm:$0xff]  ;;  %v405_v1 = vld [vmem:[%s1000_s4 + $0x30] sm:$0xff]  ;;  %v404_v2 = vld [vmem:[%s1000_s4 + $0x28] sm:$0xff]  ;;  %s904_s9 = scalar_select %p319_p3, %s897_s29, 47  ;;  %vm407_vm0 = vcmask 523264  }
   0xc   : > { %767 = vmatprep.subr.mxu0 %v406_v0  ;;  %795 = vmatprep.subr.mxu1 %v406_v0  ;;  %v403_v3 = vld [vmem:[%s1000_s4 + $0x20] sm:$0xff]  ;;  %v402_v4 = vld [vmem:[%s1000_s4 + $0x18] sm:$0xff]  ;;  %v401_v9 = vld [vmem:[%s1000_s4 + $0x10] sm:$0xff] }
   0xd   : > { %768 = vmatpush3.msra.mxu0 %v406_v0  ;;  %803 = vmatpush3.msra.mxu1 %v406_v0  ;;  %s731_s12 = sshll.u32 %s904_s9, 3  ;;  %v736_v5 = vld [vmem:[%s997_s1] ss:$0 sm:$0xff]  ;;  %v400_v15 = vld [vmem:[%s1000_s4 + $0x8] sm:$0xff]  ;;  %s750_s9 = sadd.s32 16, %s897_s29 }
   0xe   : > { %769 = vmatprep.subr.mxu0 %v405_v1  ;;  %796 = vmatprep.subr.mxu1 %v405_v1  ;;  %s322_s17 = scalar_lea.vmem %s999_s3, %s731_s12  ;;  %v737_v16 = vld [vmem:[%s998_s2] ss:$0 sm:$0xff]  ;;  %s328_s8 = scalar_lea.vmem %s1002_s6, %s731_s12 }
   0xf   : > { %770 = vmatpush3.msra.mxu0 %v405_v1  ;;  %804 = vmatpush3.msra.mxu1 %v405_v1  ;;  %v338_v6 = vld [vmem:[%s322_s17] sm:$0xff]  ;;  %v339_v8 = vld [vmem:[%s322_s17 + $0x8] sm:$0xff]  ;;  %v340_v11 = vld [vmem:[%s322_s17 + $0x10] sm:$0xff]  ;;  %p332_p4 = scmp.lt.s32.totalorder %s750_s9, 63 }
  0x10   : > { %771 = vmatprep.subr.mxu0 %v404_v2  ;;  %797 = vmatprep.subr.mxu1 %v404_v2  ;;  %v342_v7 = vld [vmem:[%s322_s17 + $0x20] sm:$0xff]  ;;  %v343_v10 = vld [vmem:[%s322_s17 + $0x28] sm:$0xff]  ;;  %v353_v12 = vsub.f32 %v338_v6, %v736_v5  ;;  %v344_v14 = vld [vmem:[%s322_s17 + $0x30] sm:$0xff]  ;;  %v354_v17 = vsub.f32 %v339_v8, %v736_v5  ;;  %v355_v20 = vsub.f32 %v340_v11, %v736_v5 }
  0x11   : > { %772 = vmatpush3.msra.mxu0 %v404_v2  ;;  %805 = vmatpush3.msra.mxu1 %v404_v2  ;;  %v357_v13 = vsub.f32 %v342_v7, %v736_v5  ;;  %v358_v18 = vsub.f32 %v343_v10, %v736_v5  ;;  %v341_v19 = vld [vmem:[%s322_s17 + $0x18] sm:$0xff]  ;;  %v399_v22 = vld [vmem:[%s1000_s4] sm:$0xff]  ;;  %v359_v23 = vsub.f32 %v344_v14, %v736_v5  ;;  %v377_v34 = vld [vmem:[%s328_s8 + $0x8] sm:$0xff]  ;;  %s1005_s9 = smov (!%p332_p4, %s750_s9), 63 }
  0x12   : > { %773 = vmatprep.subr.mxu0 %v403_v3  ;;  %798 = vmatprep.subr.mxu1 %v403_v3  ;;  %v345_v21 = vld [vmem:[%s322_s17 + $0x38] sm:$0xff]  ;;  %v368_v24 = vmul.f32 %v737_v16, %v353_v12  ;;  %v356_v26 = vsub.f32 %v341_v19, %v736_v5  ;;  %v369_v27 = vmul.f32 %v737_v16, %v354_v17  ;;  %v738_v35 = vld [vmem:[%s1001_s5] ss:$0 sm:$0xff]  ;;  %v381_v36 = vld [vmem:[%s328_s8 + $0x28] sm:$0xff]  ;;  %s735_s29 = sshll.u32 %s1005_s9, 3 }
  0x13   : > { %774 = vmatpush3.msra.mxu0 %v403_v3  ;;  %806 = vmatpush3.msra.mxu1 %v403_v3  ;;  %v372_v25 = vmul.f32 %v737_v16, %v357_v13  ;;  %v373_v28 = vmul.f32 %v737_v16, %v358_v18  ;;  %v360_v29 = vsub.f32 %v345_v21, %v736_v5  ;;  %v376_v39 = vld [vmem:[%s328_s8] sm:$0xff]  ;;  %v379_v40 = vld [vmem:[%s328_s8 + $0x18] sm:$0xff]  ;;  %v378_v43 = vld [vmem:[%s328_s8 + $0x10] sm:$0xff]  ;;  %s335_s14 = scalar_lea.vmem %s1003_s7, %s735_s29 }
  0x14   : > { %775 = vmatprep.subr.mxu0 %v402_v4  ;;  %799 = vmatprep.subr.mxu1 %v402_v4  ;;  %v370_v30 = vmul.f32 %v737_v16, %v355_v20  ;;  %v374_v31 = vmul.f32 %v737_v16, %v359_v23  ;;  %v371_v32 = vmul.f32 %v737_v16, %v356_v26  ;;  %v380_v49 = vld [vmem:[%s328_s8 + $0x20] sm:$0xff]  ;;  %v383_v53 = vld [vmem:[%s328_s8 + $0x38] sm:$0xff]  ;;  %v382_v55 = vld [vmem:[%s328_s8 + $0x30] sm:$0xff] }
  0x15   : > { %776 = vmatpush3.msra.mxu0 %v402_v4  ;;  %807 = vmatpush3.msra.mxu1 %v402_v4  ;;  %v375_v33 = vmul.f32 %v737_v16, %v360_v29  ;;  %v392_v37 = vadd.f32 %v738_v35, %v377_v34  ;;  %v396_v38 = vadd.f32 %v738_v35, %v381_v36 }
  0x16   : > { %777 = vmatprep.subr.mxu0 %v401_v9  ;;  %800 = vmatprep.subr.mxu1 %v401_v9  ;;  %v391_v46 = vadd.f32 %v738_v35, %v376_v39  ;;  %v394_v47 = vadd.f32 %v738_v35, %v379_v40  ;;  %v393_v51 = vadd.f32 %v738_v35, %v378_v43 }
  0x17   : > { %778 = vmatpush3.msra.mxu0 %v401_v9  ;;  %808 = vmatpush3.msra.mxu1 %v401_v9  ;;  %v395_v58 = vadd.f32 %v738_v35, %v380_v49  ;;  %v398_v61 = vadd.f32 %v738_v35, %v383_v53  ;;  %v397_v62 = vadd.f32 %v738_v35, %v382_v55 }
  0x18   : > { %779 = vmatprep.subr.mxu0 %v400_v15  ;;  %801 = vmatprep.subr.mxu1 %v400_v15 }
  0x19   : > { %780 = vmatpush3.msra.mxu0 %v400_v15  ;;  %809 = vmatpush3.msra.mxu1 %v400_v15 }
  0x1a   : > { %781 = vmatprep.subr.mxu0 %v399_v22  ;;  %802 = vmatprep.subr.mxu1 %v399_v22 }
  0x1b   : > { %782 = vmatpush3.msra.mxu0 %v399_v22  ;;  %810 = vmatpush3.msra.mxu1 %v399_v22 }
  0x1c   : > { %783 = vmatprep.mubr.msk.f32.mxu0 %vm407_vm0, %v368_v24  ;;  %789 = vmatprep.mubr.msk.f32.mxu1 %vm407_vm0, %v372_v25 }
  0x1d   : > { %784 = vmatmul.mubr.msk.f32.vlgmr.msra.gmra.mxu0 %vm407_vm0, %v369_v27  ;;  %790 = vmatmul.mubr.msk.f32.vlgmr.msra.gmra.mxu1 %vm407_vm0, %v373_v28 }
  0x1e   : > { %786 = vmatprep.mubr.msk.f32.mxu0 %vm407_vm0, %v370_v30  ;;  %792 = vmatprep.mubr.msk.f32.mxu1 %vm407_vm0, %v374_v31 }
  0x21   : > { %787 = vmatmul.mubr.msk.f32.gmra.mxu0 %vm407_vm0, %v371_v32  ;;  %793 = vmatmul.mubr.msk.f32.gmra.mxu1 %vm407_vm0, %v375_v33 }
  0xdd   : > { %v785_v41 = vpop.f32.mrf.mxu0  ;;  %v791_v42 = vpop.f32.mrf.mxu1 }
  0xde   : > { %v538_v44 = vadd.f32 %v785_v41, %v392_v37  ;;  %v542_v45 = vadd.f32 %v791_v42, %v396_v38 }
  0xdf   : > { %v498_v48 = vpop.f32.mrf.mxu0  ;;  %v518_v50 = vpop.f32.mrf.mxu1 }
  0xe0   : > { %555 = vadd.xlane.f32.xlu1 %v542_v45  ;;  %547 = vadd.xlane.f32.xlu0 %v538_v44  ;;  %v537_v56 = vadd.f32 %v498_v48, %v391_v46  ;;  %v541_v0 = vadd.f32 %v518_v50, %v395_v58 }
  0xe1   : > { %v788_v52 = vpop.f32.mrf.mxu0  ;;  %v794_v54 = vpop.f32.mrf.mxu1 }
  0xe2   : > { %v540_v57 = vadd.f32 %v788_v52, %v394_v47  ;;  %v544_v1 = vadd.f32 %v794_v54, %v398_v61 }
  0xe3   : > { %v508_v59 = vpop.f32.mrf.mxu0  ;;  %v528_v63 = vpop.f32.mrf.mxu1 }
  0xe4   : > { %545 = vadd.xlane.f32.xlu0 %v537_v56  ;;  %551 = vadd.xlane.f32.xlu1 %v540_v57  ;;  %v539_v60 = vadd.f32 %v508_v59, %v393_v51  ;;  %v543_v2 = vadd.f32 %v528_v63, %v397_v62 }
  0xe8   : > { %553 = vadd.xlane.f32.xlu0 %v541_v0  ;;  %549 = vadd.xlane.f32.xlu1 %v539_v60 }
  0xec   : > { %557 = vadd.xlane.f32.xlu0 %v543_v2  ;;  %559 = vadd.xlane.f32.xlu1 %v544_v1 }
 0x169   : > { %v556_v3 = vpop.xlane.xlu1 %555  ;;  %v548_v4 = vpop.xlane.xlu0 %547 }
 0x16a   : > { %v567_v5 = vmul.f32 0.0078125, %v556_v3  ;;  %v563_v6 = vmul.f32 0.0078125, %v548_v4 }
 0x16c   : > { %v949_v7 = vsub.f32 %v538_v44, %v563_v6  ;;  %v951_v10 = vsub.f32 %v542_v45, %v567_v5 }
 0x16d   : > { %v546_v8 = vpop.xlane.xlu0 %545  ;;  %v552_v9 = vpop.xlane.xlu1 %551 }
 0x16e   : > { %v562_v11 = vmul.f32 0.0078125, %v546_v8  ;;  %v565_v12 = vmul.f32 0.0078125, %v552_v9  ;;  %v579_v13 = vmul.f32 %v949_v7, %v949_v7  ;;  %v583_v21 = vmul.f32 %v951_v10, %v951_v10 }
 0x170   : > { %v955_v14 = vsub.f32 %v537_v56, %v562_v11  ;;  %588 = vadd.xlane.f32.xlu1 %v579_v13  ;;  %v957_v15 = vsub.f32 %v540_v57, %v565_v12 }
 0x171   : > { %v554_v16 = vpop.xlane.xlu0 %553  ;;  %v550_v17 = vpop.xlane.xlu1 %549 }
 0x172   : > { %v566_v18 = vmul.f32 0.0078125, %v554_v16  ;;  %v564_v19 = vmul.f32 0.0078125, %v550_v17  ;;  %v578_v20 = vmul.f32 %v955_v14, %v955_v14  ;;  %v581_v25 = vmul.f32 %v957_v15, %v957_v15 }
 0x174   : > { %v963_v22 = vsub.f32 %v541_v0, %v566_v18  ;;  %586 = vadd.xlane.f32.xlu0 %v578_v20  ;;  %596 = vadd.xlane.f32.xlu1 %v583_v21  ;;  %v967_v26 = vsub.f32 %v539_v60, %v564_v19 }
 0x175   : > { %v558_v23 = vpop.xlane.xlu0 %557  ;;  %v560_v24 = vpop.xlane.xlu1 %559 }
 0x176   : > { %v568_v27 = vmul.f32 0.0078125, %v558_v23  ;;  %v569_v28 = vmul.f32 0.0078125, %v560_v24  ;;  %v582_v29 = vmul.f32 %v963_v22, %v963_v22  ;;  %v580_v32 = vmul.f32 %v967_v26, %v967_v26 }
 0x178   : > { %v971_v30 = vsub.f32 %v544_v1, %v569_v28  ;;  %594 = vadd.xlane.f32.xlu0 %v582_v29  ;;  %592 = vadd.xlane.f32.xlu1 %v581_v25  ;;  %v973_v31 = vsub.f32 %v543_v2, %v568_v27 }
 0x17a   : > { %v585_v33 = vmul.f32 %v971_v30, %v971_v30  ;;  %v584_v34 = vmul.f32 %v973_v31, %v973_v31 }
 0x17c   : > { %590 = vadd.xlane.f32.xlu0 %v580_v32  ;;  %600 = vadd.xlane.f32.xlu1 %v585_v33 }
 0x180   : > { %598 = vadd.xlane.f32.xlu0 %v584_v34 }
 0x1f9   : > { %v589_v35 = vpop.xlane.xlu1 %588 }
 0x1fa   : > { %v603_v36 = vmul.f32 0.0078125, %v589_v35 }
 0x1fc   : > { %v611_v37 = vadd.f32 1e-05, %v603_v36 }
 0x1fd   : > { %v587_v38 = vpop.xlane.xlu0 %586  ;;  %v597_v39 = vpop.xlane.xlu1 %596 }
 0x1fe   : > { %819 = vrsqrt.f32 %v611_v37  ;;  %v602_v40 = vmul.f32 0.0078125, %v587_v38  ;;  %v607_v41 = vmul.f32 0.0078125, %v597_v39 }
 0x200   : > { %v610_v42 = vadd.f32 1e-05, %v602_v40  ;;  %v615_v43 = vadd.f32 1e-05, %v607_v41 }
 0x201   : > { %v595_v44 = vpop.xlane.xlu0 %594  ;;  %v593_v45 = vpop.xlane.xlu1 %592 }
 0x202   : > { %821 = vrsqrt.f32 %v610_v42  ;;  %v606_v46 = vmul.f32 0.0078125, %v595_v44  ;;  %v605_v47 = vmul.f32 0.0078125, %v593_v45 }
 0x203   : > { %823 = vrsqrt.f32 %v615_v43 }
 0x204   : > { %v614_v48 = vadd.f32 1e-05, %v606_v46  ;;  %v613_v49 = vadd.f32 1e-05, %v605_v47 }
 0x205   : > { %v591_v50 = vpop.xlane.xlu0 %590  ;;  %v601_v51 = vpop.xlane.xlu1 %600 }
 0x206   : > { %825 = vrsqrt.f32 %v614_v48  ;;  %v604_v52 = vmul.f32 0.0078125, %v591_v50  ;;  %v609_v53 = vmul.f32 0.0078125, %v601_v51 }
 0x207   : > { %827 = vrsqrt.f32 %v613_v49 }
 0x208   : > { %v612_v54 = vadd.f32 1e-05, %v604_v52  ;;  %v617_v55 = vadd.f32 1e-05, %v609_v53 }
 0x209   : > { %v599_v56 = vpop.xlane.xlu0 %598 }
 0x20a   : > { %829 = vrsqrt.f32 %v612_v54  ;;  %v608_v57 = vmul.f32 0.0078125, %v599_v56 }
 0x20b   : > { %v820_v58 = vpop.eup %819  ;;  %831 = vrsqrt.f32 %v617_v55 }
 0x20c   : > { %v627_v59 = vmul.f32 %v820_v58, %v949_v7  ;;  %v616_v60 = vadd.f32 1e-05, %v608_v57 }
 0x20e   : > { %635 = vst [vmem:[%s335_s14 + $0x8] sm:$0xff] %v627_v59  ;;  %833 = vrsqrt.f32 %v616_v60 }
 0x20f   : > { %v822_v61 = vpop.eup %821 }
 0x210   : > { %v824_v62 = vpop.eup %823  ;;  %v626_v63 = vmul.f32 %v822_v61, %v955_v14 }
 0x211   : > { %v631_v0 = vmul.f32 %v824_v62, %v951_v10 }
 0x212   : > { %634 = vst [vmem:[%s335_s14] sm:$0xff] %v626_v63 }
 0x213   : > { %v826_v1 = vpop.eup %825  ;;  %639 = vst [vmem:[%s335_s14 + $0x28] sm:$0xff] %v631_v0 }
 0x214   : > { %v828_v2 = vpop.eup %827  ;;  %v630_v3 = vmul.f32 %v826_v1, %v963_v22 }
 0x215   : > { %v629_v4 = vmul.f32 %v828_v2, %v957_v15 }
 0x216   : > { %638 = vst [vmem:[%s335_s14 + $0x20] sm:$0xff] %v630_v3 }
 0x217   : > { %v830_v5 = vpop.eup %829  ;;  %637 = vst [vmem:[%s335_s14 + $0x18] sm:$0xff] %v629_v4 }
 0x218   : > { %v832_v6 = vpop.eup %831  ;;  %v628_v7 = vmul.f32 %v830_v5, %v967_v26 }
 0x219   : > { %v633_v8 = vmul.f32 %v832_v6, %v971_v30 }
 0x21a   : > { %636 = vst [vmem:[%s335_s14 + $0x10] sm:$0xff] %v628_v7 }
 0x21b   : > { %v834_v9 = vpop.eup %833  ;;  %641 = vst [vmem:[%s335_s14 + $0x38] sm:$0xff] %v633_v8 }
 0x21c   : > { %v632_v10 = vmul.f32 %v834_v9, %v973_v31 }
 0x21e   : > { %640 = vst [vmem:[%s335_s14 + $0x30] sm:$0xff] %v632_v10 }
 0x21f PF: > { %s17_s23 = sadd.s32 1, %s841_s23  }
 0x220   : > { %p14_p5 = scmp.ge.s32.totalorder %s17_s23, 8  }
 0x222   :  { %16 = sbr.rel (!%p14_p5) target bundleno = 1 (0x1), region = 84 }

// kernel: lightgcn_forward.8
= control target key start
LH: loop header
LB: loop body
LE: loop exit
PB: predicated region body
PF: predicated region fallthrough
CT: control target
= control target key end

     0   :  { %s842_s23 = smov 0   ;;  %s944_s0 = inlined_call_operand.vmem [shape: f32[512,128], index: 0, kind: input, shape index: {}, may-alias: {0,7}]   ;;  %s945_s1 = inlined_call_operand.vmem [shape: f32[1,32], index: 1, kind: input, shape index: {}]   ;;  %s946_s2 = inlined_call_operand.vmem [shape: f32[1,32], index: 2, kind: input, shape index: {}]   ;;  %s947_s3 = inlined_call_operand.vmem [shape: f32[128,32], index: 3, kind: input, shape index: {}]   ;;  %s948_s4 = inlined_call_operand.vmem [shape: f32[32,128], index: 4, kind: input, shape index: {}]   ;;  %s949_s5 = inlined_call_operand.vmem [shape: f32[1,128], index: 5, kind: input, shape index: {}]   ;;  %s950_s6 = inlined_call_operand.vmem [shape: f32[128,128], index: 6, kind: input, shape index: {}]   ;;  %s951_s7 = inlined_call_operand.vmem [shape: f32[512,128], index: 7, kind: output, shape index: {}, may-alias: {0,7}]  }
   0x1 LB: > { %s706_s24 = sadd.s32 4294967295, %s800_s23   ;;  %p710_p0 = scmp.ge.s32.totalorder %s800_s23, 1  ;;  %s800_s23 = sphi %s842_s23, %s17_s23  }
   0x2   : > { %p260_p1 = scmp.lt.s32.totalorder %s800_s23, 3 }
   0x4   : > { %p261_p2 = pnand %p710_p0, %p260_p1 }
   0x5   : > { %s856_s29 = sshll.u32 (!%p261_p2), %s706_s24, 3 }
   0x6   : > { %264 = sbr.rel (%p261_p2) target bundleno = 535 (0x217), region = 48  ;;  %p309_p3 = scmp.lt.s32.totalorder (!%p261_p2), %s856_s29, 15 }
   0x7   : > { %p321_p4 = scmp.lt.s32.totalorder (!%p261_p2), %s856_s29, 63 }
   0xb   : > { %v390_v0 = vld [vmem:[%s948_s4 + $0x18] sm:$0xff]  ;;  %v389_v1 = vld [vmem:[%s948_s4 + $0x10] sm:$0xff]  ;;  %v388_v2 = vld [vmem:[%s948_s4 + $0x8] sm:$0xff]  ;;  %s863_s9 = scalar_select %p309_p3, %s856_s29, 15  ;;  %vm391_vm0 = vcmask 261120  }
   0xc   : > { %742 = vmatprep.subr.mxu0 %v390_v0  ;;  %762 = vmatprep.subr.mxu1 %v390_v0  ;;  %v387_v3 = vld [vmem:[%s948_s4] sm:$0xff]  ;;  %s953_s29 = smov (!%p321_p4, %s856_s29), 63 }
   0xd   : > { %743 = vmatpush3.msra.mxu0 %v390_v0  ;;  %766 = vmatpush3.msra.mxu1 %v390_v0  ;;  %s712_s12 = sshll.u32 %s863_s9, 3  ;;  %v717_v4 = vld [vmem:[%s945_s1] ss:$0 sm:$0xff]  ;;  %s716_s25 = sshll.u32 %s953_s29, 3 }
   0xe   : > { %744 = vmatprep.subr.mxu0 %v389_v1  ;;  %763 = vmatprep.subr.mxu1 %v389_v1  ;;  %s312_s17 = scalar_lea.vmem %s947_s3, %s712_s12  ;;  %v718_v5 = vld [vmem:[%s946_s2] ss:$0 sm:$0xff]  ;;  %s318_s22 = scalar_lea.vmem %s950_s6, %s712_s12 }
   0xf   : > { %745 = vmatpush3.msra.mxu0 %v389_v1  ;;  %767 = vmatpush3.msra.mxu1 %v389_v1  ;;  %v326_v6 = vld [vmem:[%s312_s17] sm:$0xff]  ;;  %v327_v8 = vld [vmem:[%s312_s17 + $0x8] sm:$0xff]  ;;  %v328_v13 = vld [vmem:[%s312_s17 + $0x10] sm:$0xff]  ;;  %s324_s28 = scalar_lea.vmem %s951_s7, %s716_s25 }
  0x10   : > { %746 = vmatprep.subr.mxu0 %v388_v2  ;;  %764 = vmatprep.subr.mxu1 %v388_v2  ;;  %v330_v7 = vld [vmem:[%s312_s17 + $0x20] sm:$0xff]  ;;  %v341_v9 = vsub.f32 %v326_v6, %v717_v4  ;;  %v342_v11 = vsub.f32 %v327_v8, %v717_v4  ;;  %v331_v12 = vld [vmem:[%s312_s17 + $0x28] sm:$0xff]  ;;  %v329_v14 = vld [vmem:[%s312_s17 + $0x18] sm:$0xff]  ;;  %v343_v16 = vsub.f32 %v328_v13, %v717_v4 }
  0x11   : > { %747 = vmatpush3.msra.mxu0 %v388_v2  ;;  %768 = vmatpush3.msra.mxu1 %v388_v2  ;;  %v345_v10 = vsub.f32 %v330_v7, %v717_v4  ;;  %v346_v15 = vsub.f32 %v331_v12, %v717_v4  ;;  %v344_v17 = vsub.f32 %v329_v14, %v717_v4  ;;  %v332_v18 = vld [vmem:[%s312_s17 + $0x30] sm:$0xff]  ;;  %v333_v19 = vld [vmem:[%s312_s17 + $0x38] sm:$0xff]  ;;  %v365_v30 = vld [vmem:[%s318_s22 + $0x8] sm:$0xff] }
  0x12   : > { %748 = vmatprep.subr.mxu0 %v387_v3  ;;  %765 = vmatprep.subr.mxu1 %v387_v3  ;;  %v356_v20 = vmul.f32 %v718_v5, %v341_v9  ;;  %v357_v22 = vmul.f32 %v718_v5, %v342_v11  ;;  %v347_v23 = vsub.f32 %v332_v18, %v717_v4  ;;  %v719_v31 = vld [vmem:[%s949_s5] ss:$0 sm:$0xff]  ;;  %v369_v32 = vld [vmem:[%s318_s22 + $0x28] sm:$0xff]  ;;  %v367_v36 = vld [vmem:[%s318_s22 + $0x18] sm:$0xff] }
  0x13   : > { %749 = vmatpush3.msra.mxu0 %v387_v3  ;;  %769 = vmatpush3.msra.mxu1 %v387_v3  ;;  %v360_v21 = vmul.f32 %v718_v5, %v345_v10  ;;  %v361_v24 = vmul.f32 %v718_v5, %v346_v15  ;;  %v358_v25 = vmul.f32 %v718_v5, %v343_v16  ;;  %v364_v35 = vld [vmem:[%s318_s22] sm:$0xff]  ;;  %v366_v39 = vld [vmem:[%s318_s22 + $0x10] sm:$0xff]  ;;  %v371_v49 = vld [vmem:[%s318_s22 + $0x38] sm:$0xff] }
  0x14   : > { %v348_v26 = vsub.f32 %v333_v19, %v717_v4  ;;  %750 = vmatprep.mubr.msk.f32.mxu0 %vm391_vm0, %v356_v20  ;;  %v362_v27 = vmul.f32 %v718_v5, %v347_v23  ;;  %v359_v28 = vmul.f32 %v718_v5, %v344_v17  ;;  %v380_v33 = vadd.f32 %v719_v31, %v365_v30  ;;  %v368_v45 = vld [vmem:[%s318_s22 + $0x20] sm:$0xff]  ;;  %v370_v51 = vld [vmem:[%s318_s22 + $0x30] sm:$0xff] }
  0x15   : > { %756 = vmatprep.mubr.msk.f32.mxu1 %vm391_vm0, %v360_v21  ;;  %751 = vmatmul.mubr.msk.f32.vlgmr.msra.gmra.mxu0 %vm391_vm0, %v357_v22  ;;  %v384_v34 = vadd.f32 %v719_v31, %v369_v32  ;;  %v379_v42 = vadd.f32 %v719_v31, %v364_v35  ;;  %v382_v43 = vadd.f32 %v719_v31, %v367_v36 }
  0x16   : > { %757 = vmatmul.mubr.msk.f32.vlgmr.msra.gmra.mxu1 %vm391_vm0, %v361_v24  ;;  %v363_v29 = vmul.f32 %v718_v5, %v348_v26  ;;  %753 = vmatprep.mubr.msk.f32.mxu0 %vm391_vm0, %v358_v25  ;;  %v381_v47 = vadd.f32 %v719_v31, %v366_v39  ;;  %v383_v54 = vadd.f32 %v719_v31, %v368_v45 }
  0x17   : > { %759 = vmatprep.mubr.msk.f32.mxu1 %vm391_vm0, %v362_v27  ;;  %v386_v57 = vadd.f32 %v719_v31, %v371_v49  ;;  %v385_v58 = vadd.f32 %v719_v31, %v370_v51 }
  0x19   : > { %754 = vmatmul.mubr.msk.f32.gmra.mxu0 %vm391_vm0, %v359_v28 }
  0x1a   : > { %760 = vmatmul.mubr.msk.f32.gmra.mxu1 %vm391_vm0, %v363_v29 }
  0xd5   : > { %v752_v37 = vpop.f32.mrf.mxu0 }
  0xd6   : > { %v758_v38 = vpop.f32.mrf.mxu1  ;;  %v522_v40 = vadd.f32 %v752_v37, %v380_v33 }
  0xd7   : > { %v526_v41 = vadd.f32 %v758_v38, %v384_v34  ;;  %v482_v44 = vpop.f32.mrf.mxu0 }
  0xd8   : > { %v502_v46 = vpop.f32.mrf.mxu1  ;;  %531 = vadd.xlane.f32.xlu0 %v522_v40  ;;  %v521_v52 = vadd.f32 %v482_v44, %v379_v42 }
  0xd9   : > { %539 = vadd.xlane.f32.xlu1 %v526_v41  ;;  %v755_v48 = vpop.f32.mrf.mxu0  ;;  %v525_v60 = vadd.f32 %v502_v46, %v383_v54 }
  0xda   : > { %v761_v50 = vpop.f32.mrf.mxu1  ;;  %v524_v53 = vadd.f32 %v755_v48, %v382_v43 }
  0xdb   : > { %v492_v55 = vpop.f32.mrf.mxu0  ;;  %v528_v61 = vadd.f32 %v761_v50, %v386_v57 }
  0xdc   : > { %529 = vadd.xlane.f32.xlu0 %v521_v52  ;;  %v523_v56 = vadd.f32 %v492_v55, %v381_v47  ;;  %v512_v59 = vpop.f32.mrf.mxu1 }
  0xdd   : > { %535 = vadd.xlane.f32.xlu1 %v524_v53  ;;  %v527_v62 = vadd.f32 %v512_v59, %v385_v58 }
  0xe0   : > { %537 = vadd.xlane.f32.xlu0 %v525_v60 }
  0xe1   : > { %533 = vadd.xlane.f32.xlu1 %v523_v56 }
  0xe4   : > { %541 = vadd.xlane.f32.xlu0 %v527_v62 }
  0xe5   : > { %543 = vadd.xlane.f32.xlu1 %v528_v61 }
 0x161   : > { %v532_v0 = vpop.xlane.xlu0 %531 }
 0x162   : > { %v540_v63 = vpop.xlane.xlu1 %539  ;;  %v547_v2 = vmul.f32 0.0078125, %v532_v0 }
 0x163   : > { %v551_v1 = vmul.f32 0.0078125, %v540_v63 }
 0x164   : > { %v896_v3 = vsub.f32 %v522_v40, %v547_v2 }
 0x165   : > { %v530_v4 = vpop.xlane.xlu0 %529  ;;  %v898_v6 = vsub.f32 %v526_v41, %v551_v1 }
 0x166   : > { %v536_v5 = vpop.xlane.xlu1 %535  ;;  %v546_v7 = vmul.f32 0.0078125, %v530_v4  ;;  %v563_v9 = vmul.f32 %v896_v3, %v896_v3 }
 0x167   : > { %v549_v8 = vmul.f32 0.0078125, %v536_v5  ;;  %v567_v17 = vmul.f32 %v898_v6, %v898_v6 }
 0x168   : > { %v902_v10 = vsub.f32 %v521_v52, %v546_v7  ;;  %572 = vadd.xlane.f32.xlu1 %v563_v9 }
 0x169   : > { %v904_v11 = vsub.f32 %v524_v53, %v549_v8  ;;  %v538_v12 = vpop.xlane.xlu0 %537 }
 0x16a   : > { %v534_v13 = vpop.xlane.xlu1 %533  ;;  %v550_v14 = vmul.f32 0.0078125, %v538_v12  ;;  %v562_v16 = vmul.f32 %v902_v10, %v902_v10 }
 0x16b   : > { %v548_v15 = vmul.f32 0.0078125, %v534_v13  ;;  %v565_v21 = vmul.f32 %v904_v11, %v904_v11 }
 0x16c   : > { %v910_v18 = vsub.f32 %v525_v60, %v550_v14  ;;  %570 = vadd.xlane.f32.xlu0 %v562_v16  ;;  %580 = vadd.xlane.f32.xlu1 %v567_v17 }
 0x16d   : > { %v542_v19 = vpop.xlane.xlu0 %541  ;;  %v914_v22 = vsub.f32 %v523_v56, %v548_v15 }
 0x16e   : > { %v544_v20 = vpop.xlane.xlu1 %543  ;;  %v552_v23 = vmul.f32 0.0078125, %v542_v19  ;;  %v566_v25 = vmul.f32 %v910_v18, %v910_v18 }
 0x16f   : > { %v553_v24 = vmul.f32 0.0078125, %v544_v20  ;;  %v564_v28 = vmul.f32 %v914_v22, %v914_v22 }
 0x170   : > { %578 = vadd.xlane.f32.xlu0 %v566_v25  ;;  %576 = vadd.xlane.f32.xlu1 %v565_v21  ;;  %v920_v27 = vsub.f32 %v527_v62, %v552_v23 }
 0x171   : > { %v918_v26 = vsub.f32 %v528_v61, %v553_v24 }
 0x172   : > { %v568_v30 = vmul.f32 %v920_v27, %v920_v27 }
 0x173   : > { %v569_v29 = vmul.f32 %v918_v26, %v918_v26 }
 0x174   : > { %574 = vadd.xlane.f32.xlu0 %v564_v28 }
 0x175   : > { %584 = vadd.xlane.f32.xlu1 %v569_v29 }
 0x178   : > { %582 = vadd.xlane.f32.xlu0 %v568_v30 }
 0x1f1   : > { %v573_v31 = vpop.xlane.xlu1 %572 }
 0x1f2   : > { %v587_v32 = vmul.f32 0.0078125, %v573_v31 }
 0x1f4   : > { %v595_v33 = vadd.f32 1e-05, %v587_v32 }
 0x1f5   : > { %v571_v34 = vpop.xlane.xlu0 %570  ;;  %v581_v35 = vpop.xlane.xlu1 %580 }
 0x1f6   : > { %778 = vrsqrt.f32 %v595_v33  ;;  %v586_v36 = vmul.f32 0.0078125, %v571_v34  ;;  %v591_v37 = vmul.f32 0.0078125, %v581_v35 }
 0x1f8   : > { %v594_v38 = vadd.f32 1e-05, %v586_v36  ;;  %v599_v39 = vadd.f32 1e-05, %v591_v37 }
 0x1f9   : > { %v579_v40 = vpop.xlane.xlu0 %578  ;;  %v577_v41 = vpop.xlane.xlu1 %576 }
 0x1fa   : > { %780 = vrsqrt.f32 %v594_v38  ;;  %v590_v42 = vmul.f32 0.0078125, %v579_v40  ;;  %v589_v43 = vmul.f32 0.0078125, %v577_v41 }
 0x1fb   : > { %782 = vrsqrt.f32 %v599_v39 }
 0x1fc   : > { %v598_v44 = vadd.f32 1e-05, %v590_v42  ;;  %v597_v45 = vadd.f32 1e-05, %v589_v43 }
 0x1fd   : > { %v575_v46 = vpop.xlane.xlu0 %574 }
 0x1fe   : > { %v585_v47 = vpop.xlane.xlu1 %584  ;;  %784 = vrsqrt.f32 %v598_v44  ;;  %v588_v48 = vmul.f32 0.0078125, %v575_v46 }
 0x1ff   : > { %v593_v49 = vmul.f32 0.0078125, %v585_v47  ;;  %786 = vrsqrt.f32 %v597_v45 }
 0x200   : > { %v596_v50 = vadd.f32 1e-05, %v588_v48 }
 0x201   : > { %v601_v51 = vadd.f32 1e-05, %v593_v49  ;;  %v583_v52 = vpop.xlane.xlu0 %582 }
 0x202   : > { %788 = vrsqrt.f32 %v596_v50  ;;  %v592_v53 = vmul.f32 0.0078125, %v583_v52 }
 0x203   : > { %v779_v54 = vpop.eup %778  ;;  %790 = vrsqrt.f32 %v601_v51 }
 0x204   : > { %v611_v55 = vmul.f32 %v779_v54, %v896_v3  ;;  %v600_v56 = vadd.f32 1e-05, %v592_v53 }
 0x206   : > { %619 = vst [vmem:[%s324_s28 + $0x8] sm:$0xff] %v611_v55  ;;  %792 = vrsqrt.f32 %v600_v56 }
 0x207   : > { %v781_v57 = vpop.eup %780 }
 0x208   : > { %v783_v58 = vpop.eup %782  ;;  %v610_v59 = vmul.f32 %v781_v57, %v902_v10 }
 0x209   : > { %v615_v60 = vmul.f32 %v783_v58, %v898_v6 }
 0x20a   : > { %618 = vst [vmem:[%s324_s28] sm:$0xff] %v610_v59 }
 0x20b   : > { %v785_v61 = vpop.eup %784  ;;  %623 = vst [vmem:[%s324_s28 + $0x28] sm:$0xff] %v615_v60 }
 0x20c   : > { %v787_v62 = vpop.eup %786  ;;  %v614_v63 = vmul.f32 %v785_v61, %v910_v18 }
 0x20d   : > { %v613_v0 = vmul.f32 %v787_v62, %v904_v11 }
 0x20e   : > { %622 = vst [vmem:[%s324_s28 + $0x20] sm:$0xff] %v614_v63 }
 0x20f   : > { %v789_v1 = vpop.eup %788  ;;  %621 = vst [vmem:[%s324_s28 + $0x18] sm:$0xff] %v613_v0 }
 0x210   : > { %v791_v2 = vpop.eup %790  ;;  %v612_v3 = vmul.f32 %v789_v1, %v914_v22 }
 0x211   : > { %v617_v4 = vmul.f32 %v791_v2, %v918_v26 }
 0x212   : > { %620 = vst [vmem:[%s324_s28 + $0x10] sm:$0xff] %v612_v3 }
 0x213   : > { %v793_v5 = vpop.eup %792  ;;  %625 = vst [vmem:[%s324_s28 + $0x38] sm:$0xff] %v617_v4 }
 0x214   : > { %v616_v6 = vmul.f32 %v793_v5, %v920_v27 }
 0x216   : > { %624 = vst [vmem:[%s324_s28 + $0x30] sm:$0xff] %v616_v6 }
 0x217 PF: > { %s17_s23 = sadd.s32 1, %s800_s23  }
 0x218   : > { %p14_p5 = scmp.ge.s32.totalorder %s17_s23, 4  }
 0x21a   :  { %16 = sbr.rel (!%p14_p5) target bundleno = 1 (0x1), region = 84 }

// kernel: lightgcn_forward.11
= control target key start
LH: loop header
LB: loop body
LE: loop exit
PB: predicated region body
PF: predicated region fallthrough
CT: control target
= control target key end

     0   :  { %s1178_s15 = smov 0   ;;  %s1180_s16 = smov 0   ;;  %s1378_s0 = inlined_call_operand.vmem [shape: bf16[512,512], index: 0, kind: input, shape index: {}]   ;;  %s1379_s1 = inlined_call_operand.vmem [shape: f32[512,128], index: 1, kind: input, shape index: {}, may-alias: {1,2}]   ;;  %s1380_s2 = inlined_call_operand.vmem [shape: f32[512,128], index: 2, kind: input, shape index: {}, may-alias: {1,2}]   ;;  %s1381_s3 = inlined_call_operand.vmem [shape: f32[512,128], index: 3, kind: output, shape index: {0}]   ;;  %s1382_s4 = inlined_call_operand.vmem [shape: f32[512,128], index: 4, kind: output, shape index: {1}]  }
   0x1   :  { %s1182_s17 = smov 0   ;;  %s1184_s18 = smov 0  }
   0x2   :  { %s1186_s19 = smov 0   ;;  %s1188_s20 = smov 0  }
   0x3   :  { %s1190_s21 = smov 0  }
   0x4 LB: > { %s24_s22 = sadd.s32 1, %s1142_s19  ;;  %s27_s23 = sadd.s32 1, %s1146_s20  ;;  %s1150_s21 = sphi %s1190_s21, %s15_s21   ;;  %s1146_s20 = sphi %s1188_s20, %s1388_s20   ;;  %s1142_s19 = sphi %s1186_s19, %s1387_s19   ;;  %s1138_s18 = sphi %s1184_s18, %s1386_s18   ;;  %s1134_s17 = sphi %s1182_s17, %s1385_s17   ;;  %s1130_s16 = sphi %s1180_s16, %s1384_s16   ;;  %s1126_s15 = sphi %s1178_s15, %s1383_s15  }
   0x5   : > { %p25_p0 = scmp.ge.s32.totalorder %s24_s22, 4  ;;  %p43_p1 = scmp.ne.s32.totalorder %s1130_s16, %s1126_s15 }
   0x6   : > { %p44_p2 = scmp.eq.s32.totalorder %s1150_s21, 0  ;;  %s36_s27 = sadd.s32 1, %s1130_s16 }
   0x7   : > { %s1390_s22 = smov (%p25_p0, %s24_s22), 0  ;;  %s1392_s23 = smov (!%p25_p0, %s27_s23), %s1146_s20 }
   0x8   : > { %p45_p3 = por %p44_p2, %p43_p1  ;;  %p29_p4 = scmp.ge.s32.totalorder %s1392_s23, 4 }
   0x9   : > { %s32_s24 = ssub.s32 %s1142_s19, %s1390_s22  ;;  %p860_p6 = scmp.ge.s32.totalorder %s1150_s21, 16 }
   0xa   : > { %s1394_s23 = smov (%p29_p4, %s1392_s23), 0 }
   0xb   : > { %s31_s25 = ssub.s32 %s1146_s20, %s1394_s23  ;;  %173 = sbr.rel (%p860_p6) target bundleno = 33 (0x21), region = 16 }
   0xc   : > { %s33_s26 = sor.u32 %s32_s24, %s31_s25 }
   0xd   : > { %p34_p5 = scmp.eq.s32.totalorder %s33_s26, 0 }
   0xf   : > { %s1229_s28 = scalar_select %p34_p5, %s1130_s16, %s36_s27  }
  0x10   : > { %176 = sbr.rel (!%p45_p3) target bundleno = 33 (0x21), region = 20  ;;  %s178_s29 = sand.u32 (%p45_p3), 1, %s1130_s16  }
  0x11   : > { %s879_s30 = sshll.u32 (%p45_p3), %s1146_s20, 6  ;;  %s861_s5 = sshll.u32 (%p45_p3), %s178_s29, 6 }
  0x12   : > { %s183_s6 = sadd.s32 (%p45_p3), %s1142_s19, %s879_s30  ;;  %s180_s11 = scalar_lea.vmem (%p45_p3), [#allocation3], %s861_s5 }
  0x13   : > { %s864_s7 = sshll.u32 (%p45_p3), %s183_s6, 2 }
  0x14   : > { %s1238_s10 = scalar_lea.vmem (%p45_p3), %s1378_s0, %s864_s7 }
  0x15   : > { %v202_v0 = vld [vmem:[%s1238_s10] sm:$0xf]  ;;  %v204_v1 = vld [vmem:[%s1238_s10 + $0x10] sm:$0xf] }
  0x16   : > { %v206_v2 = vld [vmem:[%s1238_s10 + $0x20] sm:$0xf]  ;;  %203 = vst [vmem:[%s180_s11] sm:$0xf] %v202_v0  ;;  %205 = vst [vmem:[%s180_s11 + $0x4] sm:$0xf] %v204_v1 }
  0x17   : > { %207 = vst [vmem:[%s180_s11 + $0x8] sm:$0xf] %v206_v2  ;;  %v208_v3 = vld [vmem:[%s1238_s10 + $0x30] sm:$0xf]  ;;  %v210_v4 = vld [vmem:[%s1238_s10 + $0x40] sm:$0xf] }
  0x18   : > { %v212_v5 = vld [vmem:[%s1238_s10 + $0x50] sm:$0xf]  ;;  %209 = vst [vmem:[%s180_s11 + $0xc] sm:$0xf] %v208_v3  ;;  %211 = vst [vmem:[%s180_s11 + $0x10] sm:$0xf] %v210_v4 }
  0x19   : > { %213 = vst [vmem:[%s180_s11 + $0x14] sm:$0xf] %v212_v5  ;;  %v214_v6 = vld [vmem:[%s1238_s10 + $0x60] sm:$0xf]  ;;  %v216_v7 = vld [vmem:[%s1238_s10 + $0x70] sm:$0xf] }
  0x1a   : > { %v218_v8 = vld [vmem:[%s1238_s10 + $0x80] sm:$0xf]  ;;  %215 = vst [vmem:[%s180_s11 + $0x18] sm:$0xf] %v214_v6  ;;  %217 = vst [vmem:[%s180_s11 + $0x1c] sm:$0xf] %v216_v7 }
  0x1b   : > { %219 = vst [vmem:[%s180_s11 + $0x20] sm:$0xf] %v218_v8  ;;  %v220_v9 = vld [vmem:[%s1238_s10 + $0x90] sm:$0xf]  ;;  %v222_v10 = vld [vmem:[%s1238_s10 + $0xa0] sm:$0xf] }
  0x1c   : > { %v224_v11 = vld [vmem:[%s1238_s10 + $0xb0] sm:$0xf]  ;;  %221 = vst [vmem:[%s180_s11 + $0x24] sm:$0xf] %v220_v9  ;;  %223 = vst [vmem:[%s180_s11 + $0x28] sm:$0xf] %v222_v10 }
  0x1d   : > { %225 = vst [vmem:[%s180_s11 + $0x2c] sm:$0xf] %v224_v11  ;;  %v226_v12 = vld [vmem:[%s1238_s10 + $0xc0] sm:$0xf]  ;;  %v228_v13 = vld [vmem:[%s1238_s10 + $0xd0] sm:$0xf] }
  0x1e   : > { %v230_v14 = vld [vmem:[%s1238_s10 + $0xe0] sm:$0xf]  ;;  %227 = vst [vmem:[%s180_s11 + $0x30] sm:$0xf] %v226_v12  ;;  %229 = vst [vmem:[%s180_s11 + $0x34] sm:$0xf] %v228_v13 }
  0x1f   : > { %231 = vst [vmem:[%s180_s11 + $0x38] sm:$0xf] %v230_v14  ;;  %v232_v15 = vld [vmem:[%s1238_s10 + $0xf0] sm:$0xf] }
  0x20   : > { %233 = vst [vmem:[%s180_s11 + $0x3c] sm:$0xf] %v232_v15 }
  0x21 PF: > { %p865_p7 = scmp.ge.s32.totalorder %s1150_s21, 1  ;;  %p306_p8 = scmp.lt.s32.totalorder %s1150_s21, 17 }
  0x23   : > { %p307_p9 = pnand %p865_p7, %p306_p8 }
  0x24   : > { %s313_s12 = sand.u32 (!%p307_p9), 1, %s1126_s15   ;;  %s867_s13 = sshll.u32 (!%p307_p9), %s1134_s17, 4 }
  0x25   : > { %310 = sbr.rel (%p307_p9) target bundleno = 323 (0x143), region = 69  ;;  %s866_s14 = sshll.u32 (!%p307_p9), %s313_s12, 6 }
  0x26   : > { %p355_p10 = scmp.lt.s32.totalorder (!%p307_p9), %s867_s13, 63  ;;  %s869_s24 = sshll.u32 (!%p307_p9), %s1138_s18, 4 }
  0x27   : > { %p361_p11 = scmp.lt.s32.totalorder (!%p307_p9), %s869_s24, 63  ;;  %s1281_s12 = scalar_lea.vmem (!%p307_p9), [#allocation3], %s866_s14 }
  0x28   : > { %p875_p12 = scmp.ne.s32.totalorder (!%p307_p9), %s1134_s17, 0 }
  0x2a   : > { %s1396_s13 = smov (!%p355_p10, %s867_s13), 63  ;;  %s1398_s24 = smov (!%p361_p11, %s869_s24), 63 }
  0x2b   : > { %s868_s25 = sshll.u32 %s1396_s13, 3  ;;  %s870_s30 = sshll.u32 %s1398_s24, 3 }
  0x2c   : > { %s1264_s29 = scalar_lea.vmem %s1379_s1, %s868_s25  ;;  %s1269_s7 = scalar_lea.vmem %s1380_s2, %s870_s30 }
  0x2d   : > { %s1274_s9 = scalar_lea.vmem %s1381_s3, %s870_s30  ;;  %s1279_s11 = scalar_lea.vmem %s1382_s4, %s870_s30 }
  0x2e   : > { %381 = sbr.rel (%p875_p12) target bundleno = 60 (0x3c), region = 77 }
  0x33   : > { %v1152_v16 = vmov 0.0  }
  0x34   : > { %382 = vst [vmem:[#allocation2 + $0x30] sm:$0xff] %v1152_v16  ;;  %383 = vst [vmem:[#allocation2] sm:$0xff] %v1152_v16 }
  0x35   : > { %384 = vst [vmem:[#allocation2 + $0x58] sm:$0xff] %v1152_v16  ;;  %385 = vst [vmem:[#allocation2 + $0x18] sm:$0xff] %v1152_v16 }
  0x36   : > { %386 = vst [vmem:[#allocation2 + $0x50] sm:$0xff] %v1152_v16  ;;  %387 = vst [vmem:[#allocation2 + $0x68] sm:$0xff] %v1152_v16 }
  0x37   : > { %388 = vst [vmem:[#allocation2 + $0x8] sm:$0xff] %v1152_v16  ;;  %389 = vst [vmem:[#allocation2 + $0x48] sm:$0xff] %v1152_v16 }
  0x38   : > { %390 = vst [vmem:[#allocation2 + $0x40] sm:$0xff] %v1152_v16  ;;  %391 = vst [vmem:[#allocation2 + $0x20] sm:$0xff] %v1152_v16 }
  0x39   : > { %392 = vst [vmem:[#allocation2 + $0x10] sm:$0xff] %v1152_v16  ;;  %393 = vst [vmem:[#allocation2 + $0x38] sm:$0xff] %v1152_v16 }
  0x3a   : > { %394 = vst [vmem:[#allocation2 + $0x60] sm:$0xff] %v1152_v16  ;;  %395 = vst [vmem:[#allocation2 + $0x70] sm:$0xff] %v1152_v16 }
  0x3b   : > { %396 = vst [vmem:[#allocation2 + $0x78] sm:$0xff] %v1152_v16  ;;  %397 = vst [vmem:[#allocation2 + $0x28] sm:$0xff] %v1152_v16 }
  0x3c PF: > { %v461_v17 = vld [vmem:[%s1264_s29 + $0x78] sm:$0xff]  ;;  %v460_v18 = vld [vmem:[%s1264_s29 + $0x70] sm:$0xff]  ;;  %v459_v19 = vld [vmem:[%s1264_s29 + $0x68] sm:$0xff]  ;;  %p876_p13 = scmp.ne.s32.totalorder %s1134_s17, 3 }
  0x3d   : > { %951 = vmatprep.subr.mxu0 %v461_v17  ;;  %1007 = vmatprep.subr.mxu1 %v461_v17  ;;  %v458_v20 = vld [vmem:[%s1264_s29 + $0x60] sm:$0xff]  ;;  %v457_v21 = vld [vmem:[%s1264_s29 + $0x58] sm:$0xff]  ;;  %v456_v22 = vld [vmem:[%s1264_s29 + $0x50] sm:$0xff] }
  0x3e   : > { %952 = vmatpush3.msra.mxu0 %v461_v17  ;;  %1023 = vmatpush3.msra.mxu1 %v461_v17  ;;  %v455_v23 = vld [vmem:[%s1264_s29 + $0x48] sm:$0xff]  ;;  %v454_v24 = vld [vmem:[%s1264_s29 + $0x40] sm:$0xff]  ;;  %v453_v25 = vld [vmem:[%s1264_s29 + $0x38] sm:$0xff] }
  0x3f   : > { %953 = vmatprep.subr.mxu0 %v460_v18  ;;  %1008 = vmatprep.subr.mxu1 %v460_v18  ;;  %v452_v26 = vld [vmem:[%s1264_s29 + $0x30] sm:$0xff]  ;;  %v451_v27 = vld [vmem:[%s1264_s29 + $0x28] sm:$0xff]  ;;  %v450_v28 = vld [vmem:[%s1264_s29 + $0x20] sm:$0xff] }
  0x40   : > { %954 = vmatpush3.msra.mxu0 %v460_v18  ;;  %1024 = vmatpush3.msra.mxu1 %v460_v18  ;;  %v449_v29 = vld [vmem:[%s1264_s29 + $0x18] sm:$0xff]  ;;  %v448_v30 = vld [vmem:[%s1264_s29 + $0x10] sm:$0xff]  ;;  %v447_v31 = vld [vmem:[%s1264_s29 + $0x8] sm:$0xff] }
  0x41   : > { %955 = vmatprep.subr.mxu0 %v459_v19  ;;  %1009 = vmatprep.subr.mxu1 %v459_v19  ;;  %v881_v32 = vld [vmem:[%s1281_s12] sm:$0xff]   ;;  %v912_v35 = vld [vmem:[%s1281_s12 + $0x8] sm:$0xff]   ;;  %v913_v43 = vld [vmem:[%s1281_s12 + $0x10] sm:$0xff]  }
  0x42   : > { %956 = vmatpush3.msra.mxu0 %v459_v19  ;;  %1025 = vmatpush3.msra.mxu1 %v459_v19  ;;  %v915_v33 = vld [vmem:[%s1281_s12 + $0x20] sm:$0xff]   ;;  %v916_v36 = vld [vmem:[%s1281_s12 + $0x28] sm:$0xff]   ;;  %v882_v37 = vunpack.c.l.bf16 %v881_v32  ;;  %v883_v39 = vunpack.c.h.bf16 %v881_v32  ;;  %v886_v41 = vunpack.c.l.bf16 %v912_v35  ;;  %v917_v44 = vld [vmem:[%s1281_s12 + $0x30] sm:$0xff]   ;;  %v887_v45 = vunpack.c.h.bf16 %v912_v35 }
  0x43   : > { %957 = vmatprep.subr.mxu0 %v458_v20  ;;  %1010 = vmatprep.subr.mxu1 %v458_v20  ;;  %v446_v34 = vld [vmem:[%s1264_s29] sm:$0xff]  ;;  %v898_v38 = vunpack.c.l.bf16 %v915_v33  ;;  %v899_v40 = vunpack.c.h.bf16 %v915_v33  ;;  %v902_v42 = vunpack.c.l.bf16 %v916_v36  ;;  %v903_v46 = vunpack.c.h.bf16 %v916_v36  ;;  %v914_v49 = vld [vmem:[%s1281_s12 + $0x18] sm:$0xff]   ;;  %v398_v61 = vld [vmem:[#allocation2 + $0x30] sm:$0xff] }
  0x44   : > { %958 = vmatpush3.msra.mxu0 %v458_v20  ;;  %1026 = vmatpush3.msra.mxu1 %v458_v20  ;;  %v890_v47 = vunpack.c.l.bf16 %v913_v43  ;;  %v906_v48 = vunpack.c.l.bf16 %v917_v44  ;;  %v918_v50 = vld [vmem:[%s1281_s12 + $0x38] sm:$0xff]   ;;  %v891_v51 = vunpack.c.h.bf16 %v913_v43  ;;  %v907_v52 = vunpack.c.h.bf16 %v917_v44  ;;  %v399_v57 = vld [vmem:[#allocation2] sm:$0xff]  ;;  %v408_v10 = vld [vmem:[#allocation2 + $0x10] sm:$0xff] }
  0x45   : > { %959 = vmatprep.subr.mxu0 %v457_v21  ;;  %1011 = vmatprep.subr.mxu1 %v457_v21  ;;  %v894_v53 = vunpack.c.l.bf16 %v914_v49  ;;  %v910_v54 = vunpack.c.l.bf16 %v918_v50  ;;  %v895_v55 = vunpack.c.h.bf16 %v914_v49  ;;  %v911_v56 = vunpack.c.h.bf16 %v918_v50  ;;  %v407_v58 = vld [vmem:[#allocation2 + $0x20] sm:$0xff]  ;;  %v401_v3 = vld [vmem:[#allocation2 + $0x18] sm:$0xff]  ;;  %v403_v15 = vld [vmem:[#allocation2 + $0x68] sm:$0xff] }
  0x46   : > { %960 = vmatpush3.msra.mxu0 %v457_v21  ;;  %1027 = vmatpush3.msra.mxu1 %v457_v21  ;;  %v406_v62 = vld [vmem:[#allocation2 + $0x40] sm:$0xff]  ;;  %v409_v4 = vld [vmem:[#allocation2 + $0x38] sm:$0xff]  ;;  %v411_v16 = vld [vmem:[#allocation2 + $0x70] sm:$0xff] }
  0x47   : > { %961 = vmatprep.subr.mxu0 %v456_v22  ;;  %1012 = vmatprep.subr.mxu1 %v456_v22  ;;  %v400_v9 = vld [vmem:[#allocation2 + $0x58] sm:$0xff]  ;;  %v402_v21 = vld [vmem:[#allocation2 + $0x50] sm:$0xff]  ;;  %v404_v33 = vld [vmem:[#allocation2 + $0x8] sm:$0xff] }
  0x48   : > { %962 = vmatpush3.msra.mxu0 %v456_v22  ;;  %1028 = vmatpush3.msra.mxu1 %v456_v22  ;;  %v410_v22 = vld [vmem:[#allocation2 + $0x60] sm:$0xff] }
  0x49   : > { %963 = vmatprep.subr.mxu0 %v455_v23  ;;  %1013 = vmatprep.subr.mxu1 %v455_v23 }
  0x4a   : > { %964 = vmatpush3.msra.mxu0 %v455_v23  ;;  %1029 = vmatpush3.msra.mxu1 %v455_v23 }
  0x4b   : > { %965 = vmatprep.subr.mxu0 %v454_v24  ;;  %1014 = vmatprep.subr.mxu1 %v454_v24 }
  0x4c   : > { %966 = vmatpush3.msra.mxu0 %v454_v24  ;;  %1030 = vmatpush3.msra.mxu1 %v454_v24 }
  0x4d   : > { %967 = vmatprep.subr.mxu0 %v453_v25  ;;  %1015 = vmatprep.subr.mxu1 %v453_v25 }
  0x4e   : > { %968 = vmatpush3.msra.mxu0 %v453_v25  ;;  %1031 = vmatpush3.msra.mxu1 %v453_v25 }
  0x4f   : > { %969 = vmatprep.subr.mxu0 %v452_v26  ;;  %1016 = vmatprep.subr.mxu1 %v452_v26 }
  0x50   : > { %970 = vmatpush3.msra.mxu0 %v452_v26  ;;  %1032 = vmatpush3.msra.mxu1 %v452_v26 }
  0x51   : > { %971 = vmatprep.subr.mxu0 %v451_v27  ;;  %1017 = vmatprep.subr.mxu1 %v451_v27 }
  0x52   : > { %972 = vmatpush3.msra.mxu0 %v451_v27  ;;  %1033 = vmatpush3.msra.mxu1 %v451_v27  ;;  %v405_v27 = vld [vmem:[#allocation2 + $0x48] sm:$0xff] }
  0x53   : > { %973 = vmatprep.subr.mxu0 %v450_v28  ;;  %1018 = vmatprep.subr.mxu1 %v450_v28 }
  0x54   : > { %974 = vmatpush3.msra.mxu0 %v450_v28  ;;  %1034 = vmatpush3.msra.mxu1 %v450_v28  ;;  %v413_v28 = vld [vmem:[#allocation2 + $0x28] sm:$0xff] }
  0x55   : > { %975 = vmatprep.subr.mxu0 %v449_v29  ;;  %1019 = vmatprep.subr.mxu1 %v449_v29 }
  0x56   : > { %976 = vmatpush3.msra.mxu0 %v449_v29  ;;  %1035 = vmatpush3.msra.mxu1 %v449_v29 }
  0x57   : > { %977 = vmatprep.subr.mxu0 %v448_v30  ;;  %1020 = vmatprep.subr.mxu1 %v448_v30 }
  0x58   : > { %978 = vmatpush3.msra.mxu0 %v448_v30  ;;  %1036 = vmatpush3.msra.mxu1 %v448_v30 }
  0x59   : > { %979 = vmatprep.subr.mxu0 %v447_v31  ;;  %1021 = vmatprep.subr.mxu1 %v447_v31 }
  0x5a   : > { %980 = vmatpush3.msra.mxu0 %v447_v31  ;;  %1037 = vmatpush3.msra.mxu1 %v447_v31 }
  0x5b   : > { %981 = vmatprep.subr.mxu0 %v446_v34  ;;  %1022 = vmatprep.subr.mxu1 %v446_v34 }
  0x5c   : > { %982 = vmatpush3.msra.mxu0 %v446_v34  ;;  %1038 = vmatpush3.msra.mxu1 %v446_v34  ;;  %v412_v34 = vld [vmem:[#allocation2 + $0x78] sm:$0xff] }
  0x5d   : > { %983 = vmatprep.mubr.f32.mxu0 %v882_v37  ;;  %995 = vmatprep.mubr.f32.mxu1 %v898_v38 }
  0x5e   : > { %984 = vmatmul.mubr.f32.vlgmr.msra.gmra.mxu0 %v883_v39  ;;  %996 = vmatmul.mubr.f32.vlgmr.msra.gmra.mxu1 %v899_v40 }
  0x5f   : > { %986 = vmatprep.mubr.f32.mxu0 %v886_v41  ;;  %998 = vmatprep.mubr.f32.mxu1 %v902_v42 }
  0x62   : > { %987 = vmatmul.mubr.f32.gmra.mxu0 %v887_v45  ;;  %999 = vmatmul.mubr.f32.gmra.mxu1 %v903_v46 }
  0x63   : > { %989 = vmatprep.mubr.f32.mxu0 %v890_v47  ;;  %1001 = vmatprep.mubr.f32.mxu1 %v906_v48 }
  0x66   : > { %990 = vmatmul.mubr.f32.gmra.mxu0 %v891_v51  ;;  %1002 = vmatmul.mubr.f32.gmra.mxu1 %v907_v52 }
  0x67   : > { %992 = vmatprep.mubr.f32.mxu0 %v894_v53  ;;  %1004 = vmatprep.mubr.f32.mxu1 %v910_v54 }
  0x6a   : > { %993 = vmatmul.mubr.f32.gmra.mxu0 %v895_v55  ;;  %1005 = vmatmul.mubr.f32.gmra.mxu1 %v911_v56 }
 0x11e   : > { %v985_v59 = vpop.f32.mrf.mxu0  ;;  %v997_v60 = vpop.f32.mrf.mxu1 }
 0x11f   : > { %v608_v63 = vadd.f32 %v985_v59, %v399_v57  ;;  %v616_v0 = vadd.f32 %v997_v60, %v407_v58 }
 0x120   : > { %v528_v1 = vpop.f32.mrf.mxu0  ;;  %v568_v2 = vpop.f32.mrf.mxu1 }
 0x121   : > { %624 = vst [vmem:[#allocation2] sm:$0xff] %v608_v63  ;;  %632 = vst [vmem:[#allocation2 + $0x20] sm:$0xff] %v616_v0  ;;  %v607_v5 = vadd.f32 %v528_v1, %v398_v61  ;;  %v615_v6 = vadd.f32 %v568_v2, %v406_v62 }
 0x122   : > { %v988_v7 = vpop.f32.mrf.mxu0  ;;  %v1000_v8 = vpop.f32.mrf.mxu1 }
 0x123   : > { %623 = vst [vmem:[#allocation2 + $0x30] sm:$0xff] %v607_v5  ;;  %631 = vst [vmem:[#allocation2 + $0x40] sm:$0xff] %v615_v6  ;;  %v610_v11 = vadd.f32 %v988_v7, %v401_v3  ;;  %v618_v12 = vadd.f32 %v1000_v8, %v409_v4 }
 0x124   : > { %v538_v13 = vpop.f32.mrf.mxu0  ;;  %v578_v14 = vpop.f32.mrf.mxu1 }
 0x125   : > { %626 = vst [vmem:[#allocation2 + $0x18] sm:$0xff] %v610_v11  ;;  %634 = vst [vmem:[#allocation2 + $0x38] sm:$0xff] %v618_v12  ;;  %v609_v17 = vadd.f32 %v538_v13, %v400_v9  ;;  %v617_v18 = vadd.f32 %v578_v14, %v408_v10 }
 0x126   : > { %v991_v19 = vpop.f32.mrf.mxu0  ;;  %v1003_v20 = vpop.f32.mrf.mxu1 }
 0x127   : > { %625 = vst [vmem:[#allocation2 + $0x58] sm:$0xff] %v609_v17  ;;  %633 = vst [vmem:[#allocation2 + $0x10] sm:$0xff] %v617_v18  ;;  %v612_v23 = vadd.f32 %v991_v19, %v403_v15  ;;  %v620_v24 = vadd.f32 %v1003_v20, %v411_v16 }
 0x128   : > { %v548_v25 = vpop.f32.mrf.mxu0  ;;  %v588_v26 = vpop.f32.mrf.mxu1 }
 0x129   : > { %628 = vst [vmem:[#allocation2 + $0x68] sm:$0xff] %v612_v23  ;;  %636 = vst [vmem:[#allocation2 + $0x70] sm:$0xff] %v620_v24  ;;  %v611_v29 = vadd.f32 %v548_v25, %v402_v21  ;;  %v619_v30 = vadd.f32 %v588_v26, %v410_v22 }
 0x12a   : > { %v994_v31 = vpop.f32.mrf.mxu0  ;;  %v1006_v32 = vpop.f32.mrf.mxu1 }
 0x12b   : > { %627 = vst [vmem:[#allocation2 + $0x50] sm:$0xff] %v611_v29  ;;  %635 = vst [vmem:[#allocation2 + $0x60] sm:$0xff] %v619_v30  ;;  %v614_v35 = vadd.f32 %v994_v31, %v405_v27  ;;  %v622_v36 = vadd.f32 %v1006_v32, %v413_v28  ;;  %642 = sbr.rel (%p876_p13) target bundleno = 323 (0x143), region = 81 }
 0x12c   : > { %v558_v37 = vpop.f32.mrf.mxu0  ;;  %v598_v38 = vpop.f32.mrf.mxu1 }
 0x12d   : > { %630 = vst [vmem:[#allocation2 + $0x48] sm:$0xff] %v614_v35  ;;  %638 = vst [vmem:[#allocation2 + $0x28] sm:$0xff] %v622_v36  ;;  %v613_v39 = vadd.f32 %v558_v37, %v404_v33  ;;  %v621_v40 = vadd.f32 %v598_v38, %v412_v34 }
 0x12f   : > { %629 = vst [vmem:[#allocation2 + $0x8] sm:$0xff] %v613_v39  ;;  %637 = vst [vmem:[#allocation2 + $0x78] sm:$0xff] %v621_v40 }
 0x130   : > { %v643_v41 = vld [vmem:[#allocation2 + $0x30] sm:$0xff]  ;;  %v644_v42 = vld [vmem:[#allocation2] sm:$0xff]  ;;  %v645_v43 = vld [vmem:[#allocation2 + $0x58] sm:$0xff] }
 0x131   : > { %659 = vst [vmem:[%s1274_s9] sm:$0xff] %v643_v41  ;;  %660 = vst [vmem:[%s1274_s9 + $0x8] sm:$0xff] %v644_v42  ;;  %v646_v44 = vld [vmem:[#allocation2 + $0x18] sm:$0xff]  ;;  %v648_v46 = vld [vmem:[#allocation2 + $0x68] sm:$0xff] }
 0x132   : > { %661 = vst [vmem:[%s1274_s9 + $0x10] sm:$0xff] %v645_v43  ;;  %v647_v45 = vld [vmem:[#allocation2 + $0x50] sm:$0xff]  ;;  %662 = vst [vmem:[%s1274_s9 + $0x18] sm:$0xff] %v646_v44  ;;  %v651_v49 = vld [vmem:[#allocation2 + $0x40] sm:$0xff] }
 0x133   : > { %663 = vst [vmem:[%s1274_s9 + $0x20] sm:$0xff] %v647_v45  ;;  %664 = vst [vmem:[%s1274_s9 + $0x28] sm:$0xff] %v648_v46  ;;  %v652_v50 = vld [vmem:[#allocation2 + $0x20] sm:$0xff]  ;;  %v653_v51 = vld [vmem:[#allocation2 + $0x10] sm:$0xff] }
 0x134   : > { %v650_v48 = vld [vmem:[#allocation2 + $0x48] sm:$0xff]  ;;  %667 = vst [vmem:[%s1274_s9 + $0x40] sm:$0xff] %v651_v49  ;;  %v654_v52 = vld [vmem:[#allocation2 + $0x38] sm:$0xff]  ;;  %668 = vst [vmem:[%s1274_s9 + $0x48] sm:$0xff] %v652_v50 }
 0x135   : > { %666 = vst [vmem:[%s1274_s9 + $0x38] sm:$0xff] %v650_v48  ;;  %669 = vst [vmem:[%s1274_s9 + $0x50] sm:$0xff] %v653_v51  ;;  %v655_v53 = vld [vmem:[#allocation2 + $0x60] sm:$0xff]  ;;  %v656_v54 = vld [vmem:[#allocation2 + $0x70] sm:$0xff] }
 0x136   : > { %v649_v47 = vld [vmem:[#allocation2 + $0x8] sm:$0xff]  ;;  %670 = vst [vmem:[%s1274_s9 + $0x58] sm:$0xff] %v654_v52  ;;  %v657_v55 = vld [vmem:[#allocation2 + $0x78] sm:$0xff]  ;;  %671 = vst [vmem:[%s1274_s9 + $0x60] sm:$0xff] %v655_v53 }
 0x137   : > { %665 = vst [vmem:[%s1274_s9 + $0x30] sm:$0xff] %v649_v47  ;;  %672 = vst [vmem:[%s1274_s9 + $0x68] sm:$0xff] %v656_v54  ;;  %v658_v56 = vld [vmem:[#allocation2 + $0x28] sm:$0xff]  ;;  %v675_v57 = vld [vmem:[%s1269_s7] sm:$0xff] }
 0x138   : > { %673 = vst [vmem:[%s1274_s9 + $0x70] sm:$0xff] %v657_v55  ;;  %v676_v58 = vld [vmem:[%s1269_s7 + $0x8] sm:$0xff]  ;;  %674 = vst [vmem:[%s1274_s9 + $0x78] sm:$0xff] %v658_v56  ;;  %v691_v59 = vadd.f32 %v675_v57, %v643_v41  ;;  %v677_v61 = vld [vmem:[%s1269_s7 + $0x10] sm:$0xff] }
 0x139   : > { %v692_v60 = vadd.f32 %v676_v58, %v644_v42  ;;  %v678_v62 = vld [vmem:[%s1269_s7 + $0x18] sm:$0xff]  ;;  %v679_v63 = vld [vmem:[%s1269_s7 + $0x20] sm:$0xff]  ;;  %v693_v0 = vadd.f32 %v677_v61, %v645_v43  ;;  %v680_v3 = vld [vmem:[%s1269_s7 + $0x28] sm:$0xff] }
 0x13a   : > { %v694_v1 = vadd.f32 %v678_v62, %v646_v44  ;;  %v695_v2 = vadd.f32 %v679_v63, %v647_v45  ;;  %v681_v4 = vld [vmem:[%s1269_s7 + $0x30] sm:$0xff]  ;;  %v682_v5 = vld [vmem:[%s1269_s7 + $0x38] sm:$0xff]  ;;  %707 = vst [vmem:[%s1279_s11] sm:$0xff] %v691_v59  ;;  %v696_v6 = vadd.f32 %v680_v3, %v648_v46  ;;  %v683_v9 = vld [vmem:[%s1269_s7 + $0x40] sm:$0xff] }
 0x13b   : > { %708 = vst [vmem:[%s1279_s11 + $0x8] sm:$0xff] %v692_v60  ;;  %v697_v7 = vadd.f32 %v681_v4, %v649_v47  ;;  %v698_v8 = vadd.f32 %v682_v5, %v650_v48  ;;  %v684_v10 = vld [vmem:[%s1269_s7 + $0x48] sm:$0xff]  ;;  %v685_v11 = vld [vmem:[%s1269_s7 + $0x50] sm:$0xff]  ;;  %709 = vst [vmem:[%s1279_s11 + $0x10] sm:$0xff] %v693_v0  ;;  %v699_v12 = vadd.f32 %v683_v9, %v651_v49 }
 0x13c   : > { %710 = vst [vmem:[%s1279_s11 + $0x18] sm:$0xff] %v694_v1  ;;  %711 = vst [vmem:[%s1279_s11 + $0x20] sm:$0xff] %v695_v2  ;;  %v700_v13 = vadd.f32 %v684_v10, %v652_v50  ;;  %v701_v14 = vadd.f32 %v685_v11, %v653_v51  ;;  %v686_v15 = vld [vmem:[%s1269_s7 + $0x58] sm:$0xff]  ;;  %v687_v16 = vld [vmem:[%s1269_s7 + $0x60] sm:$0xff] }
 0x13d   : > { %v688_v17 = vld [vmem:[%s1269_s7 + $0x68] sm:$0xff]  ;;  %712 = vst [vmem:[%s1279_s11 + $0x28] sm:$0xff] %v696_v6  ;;  %713 = vst [vmem:[%s1279_s11 + $0x30] sm:$0xff] %v697_v7  ;;  %v702_v18 = vadd.f32 %v686_v15, %v654_v52  ;;  %v703_v19 = vadd.f32 %v687_v16, %v655_v53  ;;  %v689_v21 = vld [vmem:[%s1269_s7 + $0x70] sm:$0xff] }
 0x13e   : > { %714 = vst [vmem:[%s1279_s11 + $0x38] sm:$0xff] %v698_v8  ;;  %v704_v20 = vadd.f32 %v688_v17, %v656_v54  ;;  %v690_v22 = vld [vmem:[%s1269_s7 + $0x78] sm:$0xff]  ;;  %715 = vst [vmem:[%s1279_s11 + $0x40] sm:$0xff] %v699_v12  ;;  %v705_v23 = vadd.f32 %v689_v21, %v657_v55 }
 0x13f   : > { %716 = vst [vmem:[%s1279_s11 + $0x48] sm:$0xff] %v700_v13  ;;  %717 = vst [vmem:[%s1279_s11 + $0x50] sm:$0xff] %v701_v14  ;;  %v706_v24 = vadd.f32 %v690_v22, %v658_v56 }
 0x140   : > { %718 = vst [vmem:[%s1279_s11 + $0x58] sm:$0xff] %v702_v18  ;;  %719 = vst [vmem:[%s1279_s11 + $0x60] sm:$0xff] %v703_v19 }
 0x141   : > { %720 = vst [vmem:[%s1279_s11 + $0x68] sm:$0xff] %v704_v20  ;;  %721 = vst [vmem:[%s1279_s11 + $0x70] sm:$0xff] %v705_v23 }
 0x142   : > { %722 = vst [vmem:[%s1279_s11 + $0x78] sm:$0xff] %v706_v24 }
 0x143 PF: > { %s15_s21 = sadd.s32 1, %s1150_s21   ;;  %s1383_s15 = smov %s1130_s16 }
 0x144   : > { %p12_p0 = scmp.ge.s32.totalorder %s15_s21, 18   ;;  %s1384_s16 = smov %s1229_s28 }
 0x145   : > { %s1385_s17 = smov %s1142_s19  ;;  %s1386_s18 = smov %s1146_s20 }
 0x146   : > { %s1387_s19 = smov %s1390_s22  ;;  %s1388_s20 = smov %s1394_s23 }
 0x147   :  { %14 = sbr.rel (!%p12_p0) target bundleno = 4 (0x4), region = 134 }

// kernel: lightgcn_forward.13
= control target key start
LH: loop header
LB: loop body
LE: loop exit
PB: predicated region body
PF: predicated region fallthrough
CT: control target
= control target key end

     0   :  { %s1590_s0 = inlined_call_operand.vmem [shape: bf16[512,512], index: 0, kind: input, shape index: {}]   ;;  %s1591_s1 = inlined_call_operand.vmem [shape: f32[512,128], index: 1, kind: input, shape index: {}]   ;;  %s1592_s2 = inlined_call_operand.vmem [shape: f32[512,128], index: 2, kind: input, shape index: {}]   ;;  %s1593_s3 = inlined_call_operand.hbm [shape: f32[512,128], index: 3, kind: output, shape index: {0}]   ;;  %s1594_s4 = inlined_call_operand.vmem [shape: f32[512,128], index: 4, kind: output, shape index: {1}]  }
   0x1   :  { %1600 = sst [smem:[#allocation12_spill]] %s1590_s0 }
   0x2   :  { %10 = vsyncpa [#allocation5], 0 }
   0x3   :  { %12 = vsyncpa [#allocation5 + $0x1], 0  ;;  %s1304_s15 = smov 0   ;;  %s1306_s16 = smov 0  }
   0x4   :  { %s1308_s17 = smov 0   ;;  %s1310_s18 = smov 0  }
   0x5   :  { %s1312_s19 = smov 0   ;;  %s1314_s20 = smov 0  }
   0x6   :  { %s1316_s21 = smov 0   ;;  %s1318_s22 = smov 0  }
   0x7   :  { %s1320_s23 = smov 0   ;;  %s1322_s24 = smov 0  }
   0x8 LB: > { %1601 = sst [smem:[#allocation7_spill]] %s1265_s22  ;;  %s890_s25 = sadd.s32 4294967295, %s1273_s24   ;;  %s1273_s24 = sphi %s1322_s24, %s18_s24   ;;  %s1269_s23 = sphi %s1320_s23, %s1615_s23   ;;  %s1265_s22 = sphi %s1318_s22, %s1614_s22   ;;  %s1261_s21 = sphi %s1316_s21, %s1613_s21   ;;  %s1257_s20 = sphi %s1314_s20, %s1612_s20   ;;  %s1253_s19 = sphi %s1312_s19, %s1620_s19   ;;  %s1249_s18 = sphi %s1310_s18, %s1619_s18   ;;  %s1245_s17 = sphi %s1308_s17, %s1618_s17   ;;  %s1241_s16 = sphi %s1306_s16, %s1617_s16   ;;  %s1237_s15 = sphi %s1304_s15, %s1616_s15  }
   0x9   : > { %1602 = sst [smem:[#allocation8_spill]] %s1269_s23  ;;  %s891_s26 = sadd.s32 4294967294, %s1273_s24  }
   0xa   : > { %s27_s27 = sadd.s32 1, %s1265_s22  ;;  %s30_s28 = sadd.s32 1, %s1269_s23 }
   0xb   : > { %p28_p0 = scmp.ge.s32.totalorder %s27_s27, 4  ;;  %s39_s29 = sadd.s32 1, %s1253_s19 }
   0xc   : > { %p46_p1 = scmp.ne.s32.totalorder %s1253_s19, %s1249_s18  ;;  %p47_p2 = scmp.eq.s32.totalorder %s1273_s24, 0 }
   0xd   : > { %s1622_s27 = smov (%p28_p0, %s27_s27), 0  ;;  %s1624_s28 = smov (!%p28_p0, %s30_s28), %s1269_s23 }
   0xe   : > { %1603 = sst [smem:[#allocation9_spill]] %s1622_s27  ;;  %s35_s30 = ssub.s32 %s1265_s22, %s1622_s27 }
   0xf   : > { %p1367_p3 = por %p47_p2, %p46_p1  ;;  %p32_p4 = scmp.ge.s32.totalorder %s1624_s28, 4 }
  0x10   : > { %s117_s6 = sadd.s32 1, %s1245_s17  ;;  %p127_p5 = scmp.ne.s32.totalorder %s1245_s17, %s1241_s16 }
  0x11   : > { %p128_p6 = scmp.eq.s32.totalorder %s890_s25, 15  ;;  %s1626_s28 = smov (%p32_p4, %s1624_s28), 0 }
  0x12   : > { %1605 = sst [smem:[#allocation10_spill]] %s1626_s28  ;;  %p133_p8 = scmp.ne.s32.totalorder %s1241_s16, %s1237_s15 }
  0x13   : > { %p1376_p7 = por %p128_p6, %p127_p5  ;;  %s34_s8 = ssub.s32 %s1269_s23, %s1626_s28 }
  0x14   : > { %p134_p9 = scmp.eq.s32.totalorder %s891_s26, 15  ;;  %s36_s9 = sor.u32 %s35_s30, %s34_s8 }
  0x15   : > { %p115_p10 = scmp.eq.s32.totalorder %s34_s8, 0  ;;  %p37_p11 = scmp.eq.s32.totalorder %s36_s9, 0 }
  0x16   : > { %p1384_p12 = por %p134_p9, %p133_p8  ;;  %p893_p13 = scmp.ge.s32.totalorder %s1273_s24, 16 }
  0x17   : > { %s1389_s11 = scalar_select %p115_p10, %s1245_s17, %s117_s6  }
  0x18   : > { %s1392_s12 = scalar_select %p37_p11, %s1253_s19, %s39_s29  }
  0x19   : > { %176 = sbr.rel (%p893_p13) target bundleno = 51 (0x33), region = 16 }
  0x1a   : > { %1608 = sst [smem:[#allocation11_spill]] %s1392_s12 }
  0x1e   : > { %179 = sbr.rel (!%p1367_p3) target bundleno = 51 (0x33), region = 20  ;;  %s181_s13 = sand.u32 (%p1367_p3), 1, %s1253_s19  }
  0x1f   : > { %s914_s14 = sshll.u32 (%p1367_p3), %s1269_s23, 6  ;;  %s894_s25 = sshll.u32 (%p1367_p3), %s181_s13, 6 }
  0x20   : > { %s186_s26 = sadd.s32 (%p1367_p3), %s1265_s22, %s914_s14  ;;  %s1609_s0 = sld [smem:[#allocation12_spill]] (%p1367_p3) }
  0x21   : > { %s897_s30 = sshll.u32 (%p1367_p3), %s186_s26, 2  ;;  %s183_s29 = scalar_lea.vmem (%p1367_p3), [#allocation3], %s894_s25 }
  0x26   : > { %s1403_s6 = scalar_lea.vmem %s1609_s0, %s897_s30 }
  0x27   : > { %v205_v0 = vld [vmem:[%s1403_s6] sm:$0xf]  ;;  %v207_v1 = vld [vmem:[%s1403_s6 + $0x10] sm:$0xf] }
  0x28   : > { %v209_v2 = vld [vmem:[%s1403_s6 + $0x20] sm:$0xf]  ;;  %206 = vst [vmem:[%s183_s29] sm:$0xf] %v205_v0  ;;  %208 = vst [vmem:[%s183_s29 + $0x4] sm:$0xf] %v207_v1 }
  0x29   : > { %210 = vst [vmem:[%s183_s29 + $0x8] sm:$0xf] %v209_v2  ;;  %v211_v3 = vld [vmem:[%s1403_s6 + $0x30] sm:$0xf]  ;;  %v213_v4 = vld [vmem:[%s1403_s6 + $0x40] sm:$0xf] }
  0x2a   : > { %v215_v5 = vld [vmem:[%s1403_s6 + $0x50] sm:$0xf]  ;;  %212 = vst [vmem:[%s183_s29 + $0xc] sm:$0xf] %v211_v3  ;;  %214 = vst [vmem:[%s183_s29 + $0x10] sm:$0xf] %v213_v4 }
  0x2b   : > { %216 = vst [vmem:[%s183_s29 + $0x14] sm:$0xf] %v215_v5  ;;  %v217_v6 = vld [vmem:[%s1403_s6 + $0x60] sm:$0xf]  ;;  %v219_v7 = vld [vmem:[%s1403_s6 + $0x70] sm:$0xf] }
  0x2c   : > { %v221_v8 = vld [vmem:[%s1403_s6 + $0x80] sm:$0xf]  ;;  %218 = vst [vmem:[%s183_s29 + $0x18] sm:$0xf] %v217_v6  ;;  %220 = vst [vmem:[%s183_s29 + $0x1c] sm:$0xf] %v219_v7 }
  0x2d   : > { %222 = vst [vmem:[%s183_s29 + $0x20] sm:$0xf] %v221_v8  ;;  %v223_v9 = vld [vmem:[%s1403_s6 + $0x90] sm:$0xf]  ;;  %v225_v10 = vld [vmem:[%s1403_s6 + $0xa0] sm:$0xf] }
  0x2e   : > { %v227_v11 = vld [vmem:[%s1403_s6 + $0xb0] sm:$0xf]  ;;  %224 = vst [vmem:[%s183_s29 + $0x24] sm:$0xf] %v223_v9  ;;  %226 = vst [vmem:[%s183_s29 + $0x28] sm:$0xf] %v225_v10 }
  0x2f   : > { %228 = vst [vmem:[%s183_s29 + $0x2c] sm:$0xf] %v227_v11  ;;  %v229_v12 = vld [vmem:[%s1403_s6 + $0xc0] sm:$0xf]  ;;  %v231_v13 = vld [vmem:[%s1403_s6 + $0xd0] sm:$0xf] }
  0x30   : > { %v233_v14 = vld [vmem:[%s1403_s6 + $0xe0] sm:$0xf]  ;;  %230 = vst [vmem:[%s183_s29 + $0x30] sm:$0xf] %v229_v12  ;;  %232 = vst [vmem:[%s183_s29 + $0x34] sm:$0xf] %v231_v13 }
  0x31   : > { %234 = vst [vmem:[%s183_s29 + $0x38] sm:$0xf] %v233_v14  ;;  %v235_v15 = vld [vmem:[%s1403_s6 + $0xf0] sm:$0xf] }
  0x32   : > { %236 = vst [vmem:[%s183_s29 + $0x3c] sm:$0xf] %v235_v15 }
  0x33 PF: > { %p898_p0 = scmp.ge.s32.totalorder %s1273_s24, 1  ;;  %p309_p1 = scmp.lt.s32.totalorder %s1273_s24, 17 }
  0x35   : > { %p310_p2 = pnand %p898_p0, %p309_p1 }
  0x36   : > { %s316_s5 = sand.u32 (!%p310_p2), 1, %s1249_s18   ;;  %s1597_s13 = sand.u32 (!%p310_p2), 1, %s1241_s16  }
  0x37   : > { %313 = sbr.rel (%p310_p2) target bundleno = 367 (0x16f), region = 69  ;;  %s899_s14 = sshll.u32 (!%p310_p2), %s316_s5, 6 }
  0x38   : > { %s900_s25 = sshll.u32 (!%p310_p2), %s1597_s13, 7  ;;  %s901_s26 = sshll.u32 (!%p310_p2), %s1257_s20, 4 }
  0x39   : > { %s903_s30 = sshll.u32 (!%p310_p2), %s1261_s21, 4  ;;  %p358_p3 = scmp.lt.s32.totalorder (!%p310_p2), %s901_s26, 63 }
  0x3a   : > { %p364_p4 = scmp.lt.s32.totalorder (!%p310_p2), %s903_s30, 63  ;;  %s1444_s22 = scalar_lea.vmem (!%p310_p2), [#allocation3], %s899_s14 }
  0x3b   : > { %s1446_s12 = scalar_lea.vmem (!%p310_p2), [#allocation4], %s900_s25  ;;  %p907_p5 = scmp.ne.s32.totalorder (!%p310_p2), %s1257_s20, 0 }
  0x3c   : > { %s1628_s26 = smov (!%p358_p3, %s901_s26), 63  ;;  %s1630_s30 = smov (!%p364_p4, %s903_s30), 63 }
  0x3d   : > { %s902_s8 = sshll.u32 %s1628_s26, 3  ;;  %s904_s0 = sshll.u32 %s1630_s30, 3 }
  0x3e   : > { %s1432_s29 = scalar_lea.vmem %s1591_s1, %s902_s8  ;;  %s1437_s18 = scalar_lea.vmem %s1592_s2, %s904_s0 }
  0x3f   : > { %s1442_s23 = scalar_lea.vmem %s1594_s4, %s904_s0  ;;  %379 = sbr.rel (%p907_p5) target bundleno = 77 (0x4d), region = 77 }
  0x44   : > { %v1275_v16 = vmov 0.0  }
  0x45   : > { %380 = vst [vmem:[#allocation2 + $0x30] sm:$0xff] %v1275_v16  ;;  %381 = vst [vmem:[#allocation2] sm:$0xff] %v1275_v16 }
  0x46   : > { %382 = vst [vmem:[#allocation2 + $0x58] sm:$0xff] %v1275_v16  ;;  %383 = vst [vmem:[#allocation2 + $0x18] sm:$0xff] %v1275_v16 }
  0x47   : > { %384 = vst [vmem:[#allocation2 + $0x50] sm:$0xff] %v1275_v16  ;;  %385 = vst [vmem:[#allocation2 + $0x68] sm:$0xff] %v1275_v16 }
  0x48   : > { %386 = vst [vmem:[#allocation2 + $0x8] sm:$0xff] %v1275_v16  ;;  %387 = vst [vmem:[#allocation2 + $0x48] sm:$0xff] %v1275_v16 }
  0x49   : > { %388 = vst [vmem:[#allocation2 + $0x40] sm:$0xff] %v1275_v16  ;;  %389 = vst [vmem:[#allocation2 + $0x20] sm:$0xff] %v1275_v16 }
  0x4a   : > { %390 = vst [vmem:[#allocation2 + $0x10] sm:$0xff] %v1275_v16  ;;  %391 = vst [vmem:[#allocation2 + $0x38] sm:$0xff] %v1275_v16 }
  0x4b   : > { %392 = vst [vmem:[#allocation2 + $0x60] sm:$0xff] %v1275_v16  ;;  %393 = vst [vmem:[#allocation2 + $0x70] sm:$0xff] %v1275_v16 }
  0x4c   : > { %394 = vst [vmem:[#allocation2 + $0x78] sm:$0xff] %v1275_v16  ;;  %395 = vst [vmem:[#allocation2 + $0x28] sm:$0xff] %v1275_v16 }
  0x4d PF: > { %v459_v17 = vld [vmem:[%s1432_s29 + $0x78] sm:$0xff]  ;;  %v458_v18 = vld [vmem:[%s1432_s29 + $0x70] sm:$0xff]  ;;  %v457_v19 = vld [vmem:[%s1432_s29 + $0x68] sm:$0xff]  ;;  %p908_p6 = scmp.ne.s32.totalorder %s1257_s20, 3 }
  0x4e   : > { %987 = vmatprep.subr.mxu0 %v459_v17  ;;  %1043 = vmatprep.subr.mxu1 %v459_v17  ;;  %v456_v20 = vld [vmem:[%s1432_s29 + $0x60] sm:$0xff]  ;;  %v455_v21 = vld [vmem:[%s1432_s29 + $0x58] sm:$0xff]  ;;  %v454_v22 = vld [vmem:[%s1432_s29 + $0x50] sm:$0xff] }
  0x4f   : > { %988 = vmatpush3.msra.mxu0 %v459_v17  ;;  %1059 = vmatpush3.msra.mxu1 %v459_v17  ;;  %v453_v23 = vld [vmem:[%s1432_s29 + $0x48] sm:$0xff]  ;;  %v452_v24 = vld [vmem:[%s1432_s29 + $0x40] sm:$0xff]  ;;  %v451_v25 = vld [vmem:[%s1432_s29 + $0x38] sm:$0xff] }
  0x50   : > { %989 = vmatprep.subr.mxu0 %v458_v18  ;;  %1044 = vmatprep.subr.mxu1 %v458_v18  ;;  %v450_v26 = vld [vmem:[%s1432_s29 + $0x30] sm:$0xff]  ;;  %v449_v27 = vld [vmem:[%s1432_s29 + $0x28] sm:$0xff]  ;;  %v448_v28 = vld [vmem:[%s1432_s29 + $0x20] sm:$0xff] }
  0x51   : > { %990 = vmatpush3.msra.mxu0 %v458_v18  ;;  %1060 = vmatpush3.msra.mxu1 %v458_v18  ;;  %v447_v29 = vld [vmem:[%s1432_s29 + $0x18] sm:$0xff]  ;;  %v446_v30 = vld [vmem:[%s1432_s29 + $0x10] sm:$0xff]  ;;  %v445_v31 = vld [vmem:[%s1432_s29 + $0x8] sm:$0xff] }
  0x52   : > { %991 = vmatprep.subr.mxu0 %v457_v19  ;;  %1045 = vmatprep.subr.mxu1 %v457_v19  ;;  %v917_v32 = vld [vmem:[%s1444_s22] sm:$0xff]   ;;  %v948_v35 = vld [vmem:[%s1444_s22 + $0x8] sm:$0xff]   ;;  %v949_v43 = vld [vmem:[%s1444_s22 + $0x10] sm:$0xff]  }
  0x53   : > { %992 = vmatpush3.msra.mxu0 %v457_v19  ;;  %1061 = vmatpush3.msra.mxu1 %v457_v19  ;;  %v951_v33 = vld [vmem:[%s1444_s22 + $0x20] sm:$0xff]   ;;  %v952_v36 = vld [vmem:[%s1444_s22 + $0x28] sm:$0xff]   ;;  %v918_v37 = vunpack.c.l.bf16 %v917_v32  ;;  %v919_v39 = vunpack.c.h.bf16 %v917_v32  ;;  %v922_v41 = vunpack.c.l.bf16 %v948_v35  ;;  %v953_v44 = vld [vmem:[%s1444_s22 + $0x30] sm:$0xff]   ;;  %v923_v45 = vunpack.c.h.bf16 %v948_v35 }
  0x54   : > { %993 = vmatprep.subr.mxu0 %v456_v20  ;;  %1046 = vmatprep.subr.mxu1 %v456_v20  ;;  %v444_v34 = vld [vmem:[%s1432_s29] sm:$0xff]  ;;  %v934_v38 = vunpack.c.l.bf16 %v951_v33  ;;  %v935_v40 = vunpack.c.h.bf16 %v951_v33  ;;  %v938_v42 = vunpack.c.l.bf16 %v952_v36  ;;  %v939_v46 = vunpack.c.h.bf16 %v952_v36  ;;  %v950_v49 = vld [vmem:[%s1444_s22 + $0x18] sm:$0xff]   ;;  %v396_v61 = vld [vmem:[#allocation2 + $0x30] sm:$0xff] }
  0x55   : > { %994 = vmatpush3.msra.mxu0 %v456_v20  ;;  %1062 = vmatpush3.msra.mxu1 %v456_v20  ;;  %v926_v47 = vunpack.c.l.bf16 %v949_v43  ;;  %v942_v48 = vunpack.c.l.bf16 %v953_v44  ;;  %v954_v50 = vld [vmem:[%s1444_s22 + $0x38] sm:$0xff]   ;;  %v927_v51 = vunpack.c.h.bf16 %v949_v43  ;;  %v943_v52 = vunpack.c.h.bf16 %v953_v44  ;;  %v397_v57 = vld [vmem:[#allocation2] sm:$0xff]  ;;  %v406_v10 = vld [vmem:[#allocation2 + $0x10] sm:$0xff] }
  0x56   : > { %995 = vmatprep.subr.mxu0 %v455_v21  ;;  %1047 = vmatprep.subr.mxu1 %v455_v21  ;;  %v930_v53 = vunpack.c.l.bf16 %v950_v49  ;;  %v946_v54 = vunpack.c.l.bf16 %v954_v50  ;;  %v931_v55 = vunpack.c.h.bf16 %v950_v49  ;;  %v947_v56 = vunpack.c.h.bf16 %v954_v50  ;;  %v405_v58 = vld [vmem:[#allocation2 + $0x20] sm:$0xff]  ;;  %v399_v3 = vld [vmem:[#allocation2 + $0x18] sm:$0xff]  ;;  %v401_v15 = vld [vmem:[#allocation2 + $0x68] sm:$0xff] }
  0x57   : > { %996 = vmatpush3.msra.mxu0 %v455_v21  ;;  %1063 = vmatpush3.msra.mxu1 %v455_v21  ;;  %v404_v62 = vld [vmem:[#allocation2 + $0x40] sm:$0xff]  ;;  %v407_v4 = vld [vmem:[#allocation2 + $0x38] sm:$0xff]  ;;  %v409_v16 = vld [vmem:[#allocation2 + $0x70] sm:$0xff] }
  0x58   : > { %997 = vmatprep.subr.mxu0 %v454_v22  ;;  %1048 = vmatprep.subr.mxu1 %v454_v22  ;;  %v398_v9 = vld [vmem:[#allocation2 + $0x58] sm:$0xff]  ;;  %v400_v21 = vld [vmem:[#allocation2 + $0x50] sm:$0xff]  ;;  %v402_v33 = vld [vmem:[#allocation2 + $0x8] sm:$0xff] }
  0x59   : > { %998 = vmatpush3.msra.mxu0 %v454_v22  ;;  %1064 = vmatpush3.msra.mxu1 %v454_v22  ;;  %v408_v22 = vld [vmem:[#allocation2 + $0x60] sm:$0xff] }
  0x5a   : > { %999 = vmatprep.subr.mxu0 %v453_v23  ;;  %1049 = vmatprep.subr.mxu1 %v453_v23 }
  0x5b   : > { %1000 = vmatpush3.msra.mxu0 %v453_v23  ;;  %1065 = vmatpush3.msra.mxu1 %v453_v23 }
  0x5c   : > { %1001 = vmatprep.subr.mxu0 %v452_v24  ;;  %1050 = vmatprep.subr.mxu1 %v452_v24 }
  0x5d   : > { %1002 = vmatpush3.msra.mxu0 %v452_v24  ;;  %1066 = vmatpush3.msra.mxu1 %v452_v24 }
  0x5e   : > { %1003 = vmatprep.subr.mxu0 %v451_v25  ;;  %1051 = vmatprep.subr.mxu1 %v451_v25 }
  0x5f   : > { %1004 = vmatpush3.msra.mxu0 %v451_v25  ;;  %1067 = vmatpush3.msra.mxu1 %v451_v25 }
  0x60   : > { %1005 = vmatprep.subr.mxu0 %v450_v26  ;;  %1052 = vmatprep.subr.mxu1 %v450_v26 }
  0x61   : > { %1006 = vmatpush3.msra.mxu0 %v450_v26  ;;  %1068 = vmatpush3.msra.mxu1 %v450_v26 }
  0x62   : > { %1007 = vmatprep.subr.mxu0 %v449_v27  ;;  %1053 = vmatprep.subr.mxu1 %v449_v27 }
  0x63   : > { %1008 = vmatpush3.msra.mxu0 %v449_v27  ;;  %1069 = vmatpush3.msra.mxu1 %v449_v27  ;;  %v403_v27 = vld [vmem:[#allocation2 + $0x48] sm:$0xff] }
  0x64   : > { %1009 = vmatprep.subr.mxu0 %v448_v28  ;;  %1054 = vmatprep.subr.mxu1 %v448_v28 }
  0x65   : > { %1010 = vmatpush3.msra.mxu0 %v448_v28  ;;  %1070 = vmatpush3.msra.mxu1 %v448_v28  ;;  %v411_v28 = vld [vmem:[#allocation2 + $0x28] sm:$0xff] }
  0x66   : > { %1011 = vmatprep.subr.mxu0 %v447_v29  ;;  %1055 = vmatprep.subr.mxu1 %v447_v29 }
  0x67   : > { %1012 = vmatpush3.msra.mxu0 %v447_v29  ;;  %1071 = vmatpush3.msra.mxu1 %v447_v29 }
  0x68   : > { %1013 = vmatprep.subr.mxu0 %v446_v30  ;;  %1056 = vmatprep.subr.mxu1 %v446_v30 }
  0x69   : > { %1014 = vmatpush3.msra.mxu0 %v446_v30  ;;  %1072 = vmatpush3.msra.mxu1 %v446_v30 }
  0x6a   : > { %1015 = vmatprep.subr.mxu0 %v445_v31  ;;  %1057 = vmatprep.subr.mxu1 %v445_v31 }
  0x6b   : > { %1016 = vmatpush3.msra.mxu0 %v445_v31  ;;  %1073 = vmatpush3.msra.mxu1 %v445_v31 }
  0x6c   : > { %1017 = vmatprep.subr.mxu0 %v444_v34  ;;  %1058 = vmatprep.subr.mxu1 %v444_v34 }
  0x6d   : > { %1018 = vmatpush3.msra.mxu0 %v444_v34  ;;  %1074 = vmatpush3.msra.mxu1 %v444_v34  ;;  %v410_v34 = vld [vmem:[#allocation2 + $0x78] sm:$0xff] }
  0x6e   : > { %1019 = vmatprep.mubr.f32.mxu0 %v918_v37  ;;  %1031 = vmatprep.mubr.f32.mxu1 %v934_v38 }
  0x6f   : > { %1020 = vmatmul.mubr.f32.vlgmr.msra.gmra.mxu0 %v919_v39  ;;  %1032 = vmatmul.mubr.f32.vlgmr.msra.gmra.mxu1 %v935_v40 }
  0x70   : > { %1022 = vmatprep.mubr.f32.mxu0 %v922_v41  ;;  %1034 = vmatprep.mubr.f32.mxu1 %v938_v42 }
  0x73   : > { %1023 = vmatmul.mubr.f32.gmra.mxu0 %v923_v45  ;;  %1035 = vmatmul.mubr.f32.gmra.mxu1 %v939_v46 }
  0x74   : > { %1025 = vmatprep.mubr.f32.mxu0 %v926_v47  ;;  %1037 = vmatprep.mubr.f32.mxu1 %v942_v48 }
  0x77   : > { %1026 = vmatmul.mubr.f32.gmra.mxu0 %v927_v51  ;;  %1038 = vmatmul.mubr.f32.gmra.mxu1 %v943_v52 }
  0x78   : > { %1028 = vmatprep.mubr.f32.mxu0 %v930_v53  ;;  %1040 = vmatprep.mubr.f32.mxu1 %v946_v54 }
  0x7b   : > { %1029 = vmatmul.mubr.f32.gmra.mxu0 %v931_v55  ;;  %1041 = vmatmul.mubr.f32.gmra.mxu1 %v947_v56 }
 0x12f   : > { %v1021_v59 = vpop.f32.mrf.mxu0  ;;  %v1033_v60 = vpop.f32.mrf.mxu1 }
 0x130   : > { %v606_v63 = vadd.f32 %v1021_v59, %v397_v57  ;;  %v614_v0 = vadd.f32 %v1033_v60, %v405_v58 }
 0x131   : > { %v526_v1 = vpop.f32.mrf.mxu0  ;;  %v566_v2 = vpop.f32.mrf.mxu1 }
 0x132   : > { %622 = vst [vmem:[#allocation2] sm:$0xff] %v606_v63  ;;  %630 = vst [vmem:[#allocation2 + $0x20] sm:$0xff] %v614_v0  ;;  %v605_v5 = vadd.f32 %v526_v1, %v396_v61  ;;  %v613_v6 = vadd.f32 %v566_v2, %v404_v62 }
 0x133   : > { %v1024_v7 = vpop.f32.mrf.mxu0  ;;  %v1036_v8 = vpop.f32.mrf.mxu1 }
 0x134   : > { %621 = vst [vmem:[#allocation2 + $0x30] sm:$0xff] %v605_v5  ;;  %629 = vst [vmem:[#allocation2 + $0x40] sm:$0xff] %v613_v6  ;;  %v608_v11 = vadd.f32 %v1024_v7, %v399_v3  ;;  %v616_v12 = vadd.f32 %v1036_v8, %v407_v4 }
 0x135   : > { %v536_v13 = vpop.f32.mrf.mxu0  ;;  %v576_v14 = vpop.f32.mrf.mxu1 }
 0x136   : > { %624 = vst [vmem:[#allocation2 + $0x18] sm:$0xff] %v608_v11  ;;  %632 = vst [vmem:[#allocation2 + $0x38] sm:$0xff] %v616_v12  ;;  %v607_v17 = vadd.f32 %v536_v13, %v398_v9  ;;  %v615_v18 = vadd.f32 %v576_v14, %v406_v10 }
 0x137   : > { %v1027_v19 = vpop.f32.mrf.mxu0  ;;  %v1039_v20 = vpop.f32.mrf.mxu1 }
 0x138   : > { %623 = vst [vmem:[#allocation2 + $0x58] sm:$0xff] %v607_v17  ;;  %631 = vst [vmem:[#allocation2 + $0x10] sm:$0xff] %v615_v18  ;;  %v610_v23 = vadd.f32 %v1027_v19, %v401_v15  ;;  %v618_v24 = vadd.f32 %v1039_v20, %v409_v16 }
 0x139   : > { %v546_v25 = vpop.f32.mrf.mxu0  ;;  %v586_v26 = vpop.f32.mrf.mxu1 }
 0x13a   : > { %626 = vst [vmem:[#allocation2 + $0x68] sm:$0xff] %v610_v23  ;;  %634 = vst [vmem:[#allocation2 + $0x70] sm:$0xff] %v618_v24  ;;  %v609_v29 = vadd.f32 %v546_v25, %v400_v21  ;;  %v617_v30 = vadd.f32 %v586_v26, %v408_v22 }
 0x13b   : > { %v1030_v31 = vpop.f32.mrf.mxu0  ;;  %v1042_v32 = vpop.f32.mrf.mxu1 }
 0x13c   : > { %625 = vst [vmem:[#allocation2 + $0x50] sm:$0xff] %v609_v29  ;;  %633 = vst [vmem:[#allocation2 + $0x60] sm:$0xff] %v617_v30  ;;  %v612_v35 = vadd.f32 %v1030_v31, %v403_v27  ;;  %v620_v36 = vadd.f32 %v1042_v32, %v411_v28  ;;  %640 = sbr.rel (%p908_p6) target bundleno = 342 (0x156), region = 81 }
 0x13d   : > { %v556_v37 = vpop.f32.mrf.mxu0  ;;  %v596_v38 = vpop.f32.mrf.mxu1 }
 0x13e   : > { %628 = vst [vmem:[#allocation2 + $0x48] sm:$0xff] %v612_v35  ;;  %636 = vst [vmem:[#allocation2 + $0x28] sm:$0xff] %v620_v36  ;;  %v611_v39 = vadd.f32 %v556_v37, %v402_v33  ;;  %v619_v40 = vadd.f32 %v596_v38, %v410_v34 }
 0x140   : > { %627 = vst [vmem:[#allocation2 + $0x8] sm:$0xff] %v611_v39  ;;  %635 = vst [vmem:[#allocation2 + $0x78] sm:$0xff] %v619_v40 }
 0x141   : > { %v641_v41 = vld [vmem:[#allocation2 + $0x30] sm:$0xff]  ;;  %v642_v42 = vld [vmem:[#allocation2] sm:$0xff]  ;;  %v643_v43 = vld [vmem:[#allocation2 + $0x58] sm:$0xff] }
 0x142   : > { %657 = vst [vmem:[%s1446_s12] sm:$0xff] %v641_v41  ;;  %658 = vst [vmem:[%s1446_s12 + $0x8] sm:$0xff] %v642_v42  ;;  %v644_v44 = vld [vmem:[#allocation2 + $0x18] sm:$0xff]  ;;  %v646_v46 = vld [vmem:[#allocation2 + $0x68] sm:$0xff] }
 0x143   : > { %659 = vst [vmem:[%s1446_s12 + $0x10] sm:$0xff] %v643_v43  ;;  %v645_v45 = vld [vmem:[#allocation2 + $0x50] sm:$0xff]  ;;  %660 = vst [vmem:[%s1446_s12 + $0x18] sm:$0xff] %v644_v44  ;;  %v649_v49 = vld [vmem:[#allocation2 + $0x40] sm:$0xff] }
 0x144   : > { %661 = vst [vmem:[%s1446_s12 + $0x20] sm:$0xff] %v645_v45  ;;  %662 = vst [vmem:[%s1446_s12 + $0x28] sm:$0xff] %v646_v46  ;;  %v650_v50 = vld [vmem:[#allocation2 + $0x20] sm:$0xff]  ;;  %v651_v51 = vld [vmem:[#allocation2 + $0x10] sm:$0xff] }
 0x145   : > { %v648_v48 = vld [vmem:[#allocation2 + $0x48] sm:$0xff]  ;;  %665 = vst [vmem:[%s1446_s12 + $0x40] sm:$0xff] %v649_v49  ;;  %v652_v52 = vld [vmem:[#allocation2 + $0x38] sm:$0xff]  ;;  %666 = vst [vmem:[%s1446_s12 + $0x48] sm:$0xff] %v650_v50 }
 0x146   : > { %664 = vst [vmem:[%s1446_s12 + $0x38] sm:$0xff] %v648_v48  ;;  %667 = vst [vmem:[%s1446_s12 + $0x50] sm:$0xff] %v651_v51  ;;  %v653_v53 = vld [vmem:[#allocation2 + $0x60] sm:$0xff]  ;;  %v654_v54 = vld [vmem:[#allocation2 + $0x70] sm:$0xff] }
 0x147   : > { %v647_v47 = vld [vmem:[#allocation2 + $0x8] sm:$0xff]  ;;  %668 = vst [vmem:[%s1446_s12 + $0x58] sm:$0xff] %v652_v52  ;;  %v655_v55 = vld [vmem:[#allocation2 + $0x78] sm:$0xff]  ;;  %669 = vst [vmem:[%s1446_s12 + $0x60] sm:$0xff] %v653_v53 }
 0x148   : > { %663 = vst [vmem:[%s1446_s12 + $0x30] sm:$0xff] %v647_v47  ;;  %670 = vst [vmem:[%s1446_s12 + $0x68] sm:$0xff] %v654_v54  ;;  %v656_v56 = vld [vmem:[#allocation2 + $0x28] sm:$0xff]  ;;  %v673_v57 = vld [vmem:[%s1437_s18] sm:$0xff] }
 0x149   : > { %671 = vst [vmem:[%s1446_s12 + $0x70] sm:$0xff] %v655_v55  ;;  %v674_v58 = vld [vmem:[%s1437_s18 + $0x8] sm:$0xff]  ;;  %672 = vst [vmem:[%s1446_s12 + $0x78] sm:$0xff] %v656_v56  ;;  %v689_v59 = vadd.f32 %v673_v57, %v641_v41  ;;  %v675_v61 = vld [vmem:[%s1437_s18 + $0x10] sm:$0xff] }
 0x14a   : > { %v690_v60 = vadd.f32 %v674_v58, %v642_v42  ;;  %v676_v62 = vld [vmem:[%s1437_s18 + $0x18] sm:$0xff]  ;;  %v677_v63 = vld [vmem:[%s1437_s18 + $0x20] sm:$0xff]  ;;  %v691_v0 = vadd.f32 %v675_v61, %v643_v43  ;;  %v678_v3 = vld [vmem:[%s1437_s18 + $0x28] sm:$0xff] }
 0x14b   : > { %v692_v1 = vadd.f32 %v676_v62, %v644_v44  ;;  %v693_v2 = vadd.f32 %v677_v63, %v645_v45  ;;  %v679_v4 = vld [vmem:[%s1437_s18 + $0x30] sm:$0xff]  ;;  %v680_v5 = vld [vmem:[%s1437_s18 + $0x38] sm:$0xff]  ;;  %v705_v6 = vmul.f32 0.25, %v689_v59  ;;  %v694_v8 = vadd.f32 %v678_v3, %v646_v46  ;;  %v681_v10 = vld [vmem:[%s1437_s18 + $0x40] sm:$0xff] }
 0x14c   : > { %v706_v7 = vmul.f32 0.25, %v690_v60  ;;  %v695_v9 = vadd.f32 %v679_v4, %v647_v47  ;;  %v682_v11 = vld [vmem:[%s1437_s18 + $0x48] sm:$0xff]  ;;  %v683_v12 = vld [vmem:[%s1437_s18 + $0x50] sm:$0xff]  ;;  %v707_v13 = vmul.f32 0.25, %v691_v0  ;;  %v696_v16 = vadd.f32 %v680_v5, %v648_v48  ;;  %v684_v17 = vld [vmem:[%s1437_s18 + $0x58] sm:$0xff] }
 0x14d   : > { %v708_v14 = vmul.f32 0.25, %v692_v1  ;;  %v709_v15 = vmul.f32 0.25, %v693_v2  ;;  %v685_v18 = vld [vmem:[%s1437_s18 + $0x60] sm:$0xff]  ;;  %v686_v19 = vld [vmem:[%s1437_s18 + $0x68] sm:$0xff]  ;;  %721 = vst [vmem:[%s1442_s23] sm:$0xff] %v705_v6  ;;  %v710_v20 = vmul.f32 0.25, %v694_v8  ;;  %v697_v22 = vadd.f32 %v681_v10, %v649_v49  ;;  %v687_v24 = vld [vmem:[%s1437_s18 + $0x70] sm:$0xff] }
 0x14e   : > { %722 = vst [vmem:[%s1442_s23 + $0x8] sm:$0xff] %v706_v7  ;;  %v711_v21 = vmul.f32 0.25, %v695_v9  ;;  %v698_v23 = vadd.f32 %v682_v11, %v650_v50  ;;  %v688_v25 = vld [vmem:[%s1437_s18 + $0x78] sm:$0xff]  ;;  %723 = vst [vmem:[%s1442_s23 + $0x10] sm:$0xff] %v707_v13  ;;  %v712_v26 = vmul.f32 0.25, %v696_v16  ;;  %v699_v27 = vadd.f32 %v683_v12, %v651_v51 }
 0x14f   : > { %724 = vst [vmem:[%s1442_s23 + $0x18] sm:$0xff] %v708_v14  ;;  %725 = vst [vmem:[%s1442_s23 + $0x20] sm:$0xff] %v709_v15  ;;  %v700_v28 = vadd.f32 %v684_v17, %v652_v52  ;;  %v701_v29 = vadd.f32 %v685_v18, %v653_v53  ;;  %v713_v30 = vmul.f32 0.25, %v697_v22  ;;  %v702_v32 = vadd.f32 %v686_v19, %v654_v54 }
 0x150   : > { %726 = vst [vmem:[%s1442_s23 + $0x28] sm:$0xff] %v710_v20  ;;  %727 = vst [vmem:[%s1442_s23 + $0x30] sm:$0xff] %v711_v21  ;;  %v714_v31 = vmul.f32 0.25, %v698_v23  ;;  %v703_v33 = vadd.f32 %v687_v24, %v655_v55  ;;  %v715_v34 = vmul.f32 0.25, %v699_v27  ;;  %v704_v37 = vadd.f32 %v688_v25, %v656_v56 }
 0x151   : > { %728 = vst [vmem:[%s1442_s23 + $0x38] sm:$0xff] %v712_v26  ;;  %v716_v35 = vmul.f32 0.25, %v700_v28  ;;  %v717_v36 = vmul.f32 0.25, %v701_v29  ;;  %729 = vst [vmem:[%s1442_s23 + $0x40] sm:$0xff] %v713_v30  ;;  %v718_v38 = vmul.f32 0.25, %v702_v32 }
 0x152   : > { %730 = vst [vmem:[%s1442_s23 + $0x48] sm:$0xff] %v714_v31  ;;  %v719_v39 = vmul.f32 0.25, %v703_v33  ;;  %731 = vst [vmem:[%s1442_s23 + $0x50] sm:$0xff] %v715_v34  ;;  %v720_v40 = vmul.f32 0.25, %v704_v37 }
 0x153   : > { %732 = vst [vmem:[%s1442_s23 + $0x58] sm:$0xff] %v716_v35  ;;  %733 = vst [vmem:[%s1442_s23 + $0x60] sm:$0xff] %v717_v36 }
 0x154   : > { %734 = vst [vmem:[%s1442_s23 + $0x68] sm:$0xff] %v718_v38  ;;  %735 = vst [vmem:[%s1442_s23 + $0x70] sm:$0xff] %v719_v39 }
 0x155   : > { %736 = vst [vmem:[%s1442_s23 + $0x78] sm:$0xff] %v720_v40 }
 0x156 PF: > { %s915_s0 = sshll.u32 %s1261_s21, 11  ;;  %s756_s28 = sshll.u32 %s1446_s12, 4  ;;  %s1529_s28 = int_to_ptr.vmem [resolvable:$true] %s756_s28 }
 0x157   : > { %s1526_s27 = scalar_lea.hbm %s1593_s3, %s915_s0  ;;  %s1610_s13 = sand.u32 1, %s1241_s16  }
 0x158   : > { %s1533_s14 = scalar_lea.sflag [#allocation5], %s1610_s13  ;;  %s1165_s23 = scalar_lea.vmem %s1529_s28, 2048 }
 0x159   : > { %p1166_p8 = scmp.ne.s32.totalorder %s1529_s28, %s1165_s23  ;;  %s1276_s21 = smov [#allocation4]  }
 0x15a   : > { %s1169_s25 = sshll.u32 %s1276_s21, 4  ;;  %s1170_s25 = int_to_ptr.vmem [resolvable:$false] %s1169_s25 }
 0x15b   : > { %p1167_p9 = pnand %p1166_p8, %p1376_p7  ;;  %s1171_s26 = scalar_lea.vmem %s1170_s25, 4096 }
 0x15c   : > { %p1172_p11 = scmp.lt.s32.totalorder %s1529_s28, %s1170_s25  ;;  %p1173_p13 = scmp.lt.s32.totalorder %s1171_s26, %s1165_s23 }
 0x15d   : > { %p1168_p10 = pneg %p1167_p9 }
 0x15e   : > { %p1174_p0 = por %p1173_p13, %p1172_p11 }
 0x160   : > { %p1175_p1 = pnand %p1174_p0, %p1168_p10 }
 0x162   : > { %1178 = shalt.err (!%p1175_p1)
}
 0x163   : > { %s1179_s12 = scalar_lea.hbm %s1526_s27, 2048  ;;  %s1183_s9 = scalar_lea.hbm %s1593_s3, 8192 }
 0x164   : > { %p1180_p2 = scmp.ne.s32.totalorder %s1526_s27, %s1179_s12  ;;  %p1184_p5 = scmp.lt.s32.totalorder %s1526_s27, %s1593_s3 }
 0x165   : > { %p1185_p6 = scmp.lt.s32.totalorder %s1183_s9, %s1179_s12 }
 0x166   : > { %p1181_p3 = pnand %p1180_p2, %p1376_p7 }
 0x167   : > { %p1186_p8 = por %p1185_p6, %p1184_p5 }
 0x168   : > { %p1182_p4 = pneg %p1181_p3 }
 0x16a   : > { %p1187_p9 = pnand %p1186_p8, %p1182_p4 }
 0x16c   : > { %1190 = shalt.err (!%p1187_p9)
}
 0x16d   : > { %s1277_s18 = smov 128   ;;  %s1278_s5 = smov 8  }
 0x16e   : > { %1075 = dma.vmem_to_hbm [thread:$0]  (%p1376_p7), %s1529_s28, 2048, %s1526_s27, %s1533_s14, %s1277_s18, %s1277_s18, %s1278_s5  }
 0x16f PF: > { %p1081_p10 = scmp.ge.s32.totalorder %s1273_s24, 2  ;;  %s775_s0 = sand.u32 1, %s1237_s15  }
 0x170   : > { %s776_s20 = scalar_lea.sflag [#allocation5], %s775_s0 }
 0x171   : > { %p1078_p11 = pnand %p1081_p10, %p1384_p12 }
 0x173   : > { %p1079_p13 = pneg %p1078_p11 }
 0x175   : > { %1232 = dma.done.wait (%p1079_p13), %s776_s20, 2048  }
 0x176   : > { %1234 = vsyncadd (%p1079_p13), %s776_s20, 4294965248  ;;  %s18_s24 = sadd.s32 1, %s1273_s24   ;;  %s1611_s7 = sld [smem:[#allocation11_spill]] }
 0x177   : > { %p15_p0 = scmp.ge.s32.totalorder %s18_s24, 18   ;;  %s1612_s20 = sld [smem:[#allocation7_spill]] }
 0x178   : > { %s1613_s21 = sld [smem:[#allocation8_spill]]  ;;  %s1616_s15 = smov %s1241_s16 }
 0x179   : > { %s1614_s22 = sld [smem:[#allocation9_spill]]  ;;  %s1617_s16 = smov %s1245_s17 }
 0x17a   : > { %s1615_s23 = sld [smem:[#allocation10_spill]]  ;;  %s1618_s17 = smov %s1389_s11 }
 0x17b   : > { %s1619_s18 = smov %s1253_s19  ;;  %17 = sbr.rel (!%p15_p0) target bundleno = 8 (0x8), region = 139 }
 0x17c   : > { %s1620_s19 = smov %s1611_s7 }
 0x180   :  { %789 = vsyncpa [#allocation5], 1 }
 0x181   :  { %791 = vsyncpa [#allocation5 + $0x1], 1 }

</bundles_post_ra>
